<compile_context>
chip_gen: v7x
topology: tpu7x:2x2x1
jax: 0.10.0
libtpu: 0.0.40
codegen_flags: <defaults>
</compile_context>

<pallas_src>
import functools

import numpy as np
import jax
import jax.numpy as jnp
from jax import lax
from jax.experimental import pallas as pl
from jax.experimental.pallas import tpu as pltpu


# ----------------------------------------------------------------------------
# Fused Pallas kernel
# ----------------------------------------------------------------------------
def _subspacenet_kernel(x_ref, *refs, meta, n):
    f32, bf16 = jnp.float32, jnp.bfloat16
    nl = len(meta)
    layer_refs = refs[:3 * nl]
    p_ref, q_ref, eps_ref = refs[3 * nl:3 * nl + 3]
    out_ref = refs[3 * nl + 3]

    x = x_ref[0]                                   # (Min0, tau) f32 activations
    for li, (mode, mo, co, relu) in enumerate(meta):
        a_ref = layer_refs[3 * li]                 # 'S': vstack(S_k) ; 'W': hcat(W_k)
        t_ref = layer_refs[3 * li + 1]             # 'S': W taps      ; 'W': S taps
        b_ref = layer_refs[3 * li + 2]             # (1, Cout') f32 bias
        xb = x.astype(bf16)                        # bf16 MXU operands, f32 acc
        acc = None
        if mode == "S":
            # Conv layers (Cin < Cout'): contract through the smaller Cin first.
            # One big gather matmul (exact: each S row has <=1 nonzero), then 4
            # small channel matmuls on 8-aligned sublane slices of the result.
            h = jnp.dot(a_ref[...], xb, preferred_element_type=f32).astype(bf16)
            for k in range(4):
                t = jnp.dot(h[k * mo:(k + 1) * mo], t_ref[k],
                            preferred_element_type=f32)
                acc = t if acc is None else acc + t
        else:
            # Deconv layers (Cin > Cout'): one wide channel matmul
            # x @ [W_0|..|W_3], then 4 gather matmuls on static lane slices.
            g = jnp.dot(xb, a_ref[...], preferred_element_type=f32).astype(bf16)
            for k in range(4):
                t = jnp.dot(t_ref[k], g[:, k * co:(k + 1) * co],
                            preferred_element_type=f32)
                acc = t if acc is None else acc + t
        acc = acc + b_ref[...]                     # bias add + ReLU stay in f32
        x = jnp.maximum(acc, 0.0) if relu else acc
        # TODO(synk): nn.Dropout(0.2) is identity at inference; training-mode
        # (stochastic) dropout is not implemented.

    # x: (2N*N, 1) flattened deconv4 output.  Matmul-only unflatten:
    # Kstack[r, j] = y[r*N + j]  ->  Kstack = [Kr; Ki]  (2N, N).
    tmp = (x * q_ref[...]).astype(bf16)            # (2N*N, N)
    kstack = jnp.dot(p_ref[...], tmp, preferred_element_type=f32)      # (2N, N)
    # Rz = K^H K + eps*I packed as [rr | ri] = Kstack^T @ [Kstack | Kswap],
    # with Kswap = [Ki; -Kr].
    kswap = jnp.concatenate([kstack[n:], -kstack[:n]], axis=0)
    kcat = jnp.concatenate([kstack, kswap], axis=1).astype(bf16)       # (2N, 2N)
    packed = lax.dot_general(kstack.astype(bf16), kcat,
                             (((0,), (0,)), ((), ())),
                             preferred_element_type=f32)               # (N, 2N)
    out_ref[0] = packed + eps_ref[...]             # precomputed [eps*I | 0]


# ----------------------------------------------------------------------------
# One-time parameter preparation (all re-layout hoisted out of the forward)
# ----------------------------------------------------------------------------
def _pad8(m):
    return ((m + 7) // 8) * 8


def _shift_select(hin, win, hout, wout, pad, rows, cols):
    """0/1 gather matrices realizing the 4 shifted 2x2 windows (+ zero pad for
    ConvTranspose), allocated at 8-aligned padded (rows, cols)."""
    S = np.zeros((4, rows, cols), np.float32)
    for di in range(2):
        for dj in range(2):
            k = 2 * di + dj
            for i in range(hout):
                si = i + di - pad
                if not (0 <= si < hin):
                    continue
                for j in range(wout):
                    sj = j + dj - pad
                    if 0 <= sj < win:
                        S[k, i * wout + j, si * win + sj] = 1.0
    return S


def _conv_taps(w):
    """Conv2d weight (Cout, Cin, 2, 2) -> (4, Cin, Cout), k = 2*di+dj."""
    w = np.asarray(w, np.float32)
    return np.transpose(w, (2, 3, 1, 0)).reshape(4, w.shape[1], w.shape[0])


def _deconv_taps(wt):
    """ConvTranspose2d weight (Cin, Cout, 2, 2) -> flipped taps (4, Cin, Cout).

    ConvTranspose(k=2, s=1) == pad(1) + conv with a spatially flipped kernel.
    """
    wt = np.asarray(wt, np.float32)
    wf = wt[:, :, ::-1, ::-1]
    return np.transpose(wf, (2, 3, 0, 1)).reshape(4, wt.shape[0], wt.shape[1])


def _fold_anti(w4, b, anti):
    """Fold concat(ReLU(x), ReLU(-x)) into the weights: W'=[W,-W], b'=[b,-b]."""
    b = np.asarray(b, np.float32)
    if anti:
        w4 = np.concatenate([w4, -w4], axis=-1)
        b = np.concatenate([b, -b])
    return np.ascontiguousarray(w4), b.reshape(1, -1)


def prepare_params(params, N, eps=1.0):
    """Build padded gather matrices, bf16 folded weights, unflatten selectors
    and the packed eps*I constant (runs once, not per forward)."""
    layer_cfg = [("w1", "b1", "conv", True), ("w2", "b2", "conv", True),
                 ("w3", "b3", "conv", True), ("wd2", "bd2", "deconv", True),
                 ("wd3", "bd3", "deconv", True), ("wd4", "bd4", "deconv", False)]
    tensors, meta = [], []
    h, w = 2 * N, N
    min_pad = _pad8(h * w)
    for wk, bk, kind, anti in layer_cfg:
        if kind == "conv":
            ho, wo, pad = h - 1, w - 1, 0
            taps = _conv_taps(params[wk])
        else:
            ho, wo, pad = h + 1, w + 1, 1
            taps = _deconv_taps(params[wk])
        mout_pad = _pad8(ho * wo)
        S = _shift_select(h, w, ho, wo, pad, mout_pad, min_pad)
        w4, b = _fold_anti(taps, params[bk], anti)
        cin, cout = w4.shape[1], w4.shape[2]
        if cin < cout:   # conv layers: contract through the smaller Cin first
            mode, A, T = "S", np.concatenate(list(S), axis=0), w4
        else:            # deconv layers: contract through the smaller Cout'
            mode, A, T = "W", np.concatenate(list(w4), axis=1), S
        tensors += [jnp.asarray(A, jnp.bfloat16), jnp.asarray(T, jnp.bfloat16),
                    jnp.asarray(b, jnp.float32)]
        meta.append((mode, mout_pad, cout, anti))
        h, w, min_pad = ho, wo, mout_pad
    assert (h, w) == (2 * N, N) and min_pad == 2 * N * N

    # Matmul-only unflatten selectors: Kstack = P @ (y * Q).
    m = np.arange(2 * N * N)
    P = (m[None, :] // N == np.arange(2 * N)[:, None]).astype(np.float32)
    Q = (m[:, None] % N == np.arange(N)[None, :]).astype(np.float32)
    eps_eye = np.concatenate([eps * np.eye(N, dtype=np.float32),
                              np.zeros((N, N), np.float32)], axis=1)   # (N, 2N)
    tensors += [jnp.asarray(P, jnp.bfloat16), jnp.asarray(Q, jnp.bfloat16),
                jnp.asarray(eps_eye, jnp.float32)]
    return tensors, tuple(meta)


# ----------------------------------------------------------------------------
# TPU forward (single pallas_call) + host-side ESPRIT
# ----------------------------------------------------------------------------
@functools.partial(jax.jit, static_argnames=("meta",))
def _subspacenet_tpu(x_nchw, tensors, meta):
    B, tau, H, W = x_nchw.shape
    N = W
    HW = H * W
    # NCHW -> flat (B, H*W, C): the only per-call XLA glue (input layout).
    x = jnp.transpose(x_nchw, (0, 2, 3, 1)).reshape(B, HW, tau).astype(jnp.float32)

    def const_spec(a):
        # Constant index maps -> fetched once across the grid.  (Single
        # buffering via pipeline_mode=pl.Buffered(1) only matters for large N.)
        return pl.BlockSpec(a.shape, lambda i, _nd=a.ndim: (0,) * _nd)

    packed = pl.pallas_call(
        functools.partial(_subspacenet_kernel, meta=meta, n=N),
        out_shape=jax.ShapeDtypeStruct((B, N, 2 * N), jnp.float32),
        grid=(B,),
        in_specs=([pl.BlockSpec((1, HW, tau), lambda i: (i, 0, 0))] +
                  [const_spec(a) for a in tensors]),
        out_specs=pl.BlockSpec((1, N, 2 * N), lambda i: (i, 0, 0)),
        compiler_params=pltpu.CompilerParams(
            dimension_semantics=("parallel",)),
    )(x, *tensors)
    return packed[:, :, :N], packed[:, :, N:]


def esprit_np(Rz, D):
    """ESPRIT post-processing (general complex eig / pinv -> host numpy)."""
    # TODO(synk): torch.linalg.eig / pinv have no Pallas equivalent.
    doa_batches = []
    for R in Rz:
        eigenvalues, eigenvectors = np.linalg.eig(R)
        order = np.argsort(np.abs(eigenvalues))[::-1]
        Us = eigenvectors[:, order][:, :D]
        Us_upper, Us_lower = Us[:-1], Us[1:]
        phi = np.linalg.pinv(Us_upper) @ Us_lower
        phi_eig = np.linalg.eigvals(phi)
        doa_batches.append(-1.0 * np.arcsin(np.angle(phi_eig) / np.pi))
    return np.stack(doa_batches, axis=0)


def subspacenet_forward(Rx_tau, prepared_tensors, meta, D):
    rr, ri = _subspacenet_tpu(Rx_tau, prepared_tensors, meta=meta)
    rr, ri = jax.block_until_ready((rr, ri))
    Rz = np.asarray(rr) + 1j * np.asarray(ri)
    doa = esprit_np(Rz, D)
    return doa, Rz


# ----------------------------------------------------------------------------
# Plain-XLA replica of the kernel algorithm (tight numerical cross-check)
# ----------------------------------------------------------------------------
def _mirror_forward_xla(x_nchw, tensors, meta):
    f32, bf16 = jnp.float32, jnp.bfloat16
    B, tau, H, W = x_nchw.shape
    N = W
    nl = len(meta)
    p_c, q_c, eps_c = tensors[3 * nl:3 * nl + 3]
    x_all = jnp.transpose(x_nchw, (0, 2, 3, 1)).reshape(B, H * W, tau).astype(f32)
    outs = []
    for bidx in range(B):
        x = x_all[bidx]
        for li, (mode, mo, co, relu) in enumerate(meta):
            A, T = tensors[3 * li], tensors[3 * li + 1]
            bias = tensors[3 * li + 2]
            xb = x.astype(bf16)
            acc = None
            if mode == "S":
                h = jnp.dot(A, xb, preferred_element_type=f32).astype(bf16)
                for k in range(4):
                    t = jnp.dot(h[k * mo:(k + 1) * mo], T[k],
                                preferred_element_type=f32)
                    acc = t if acc is None else acc + t
            else:
                g = jnp.dot(xb, A, preferred_element_type=f32).astype(bf16)
                for k in range(4):
                    t = jnp.dot(T[k], g[:, k * co:(k + 1) * co],
                                preferred_element_type=f32)
                    acc = t if acc is None else acc + t
            acc = acc + bias
            x = jnp.maximum(acc, 0.0) if relu else acc
        tmp = (x * q_c).astype(bf16)
        kstack = jnp.dot(p_c, tmp, preferred_element_type=f32)
        kswap = jnp.concatenate([kstack[N:], -kstack[:N]], axis=0)
        kcat = jnp.concatenate([kstack, kswap], axis=1).astype(bf16)
        packed = lax.dot_general(kstack.astype(bf16), kcat,
                                 (((0,), (0,)), ((), ())),
                                 preferred_element_type=f32)
        outs.append(packed + eps_c)
    return jnp.stack(outs, axis=0)


# ----------------------------------------------------------------------------
# Parameters (PyTorch layouts) and a float64 numpy reference for verification
# ----------------------------------------------------------------------------
def init_params(key, tau):
    ks = jax.random.split(key, 12)

    def rnd(k, shape, scale):
        return scale * jax.random.normal(k, shape, jnp.float32)

    return {
        "w1": rnd(ks[0], (16, tau, 2, 2), 0.20), "b1": rnd(ks[1], (16,), 0.10),
        "w2": rnd(ks[2], (32, 32, 2, 2), 0.10), "b2": rnd(ks[3], (32,), 0.10),
        "w3": rnd(ks[4], (64, 64, 2, 2), 0.08), "b3": rnd(ks[5], (64,), 0.10),
        "wd2": rnd(ks[6], (128, 32, 2, 2), 0.06), "bd2": rnd(ks[7], (32,), 0.10),
        "wd3": rnd(ks[8], (64, 16, 2, 2), 0.08), "bd3": rnd(ks[9], (16,), 0.10),
        "wd4": rnd(ks[10], (32, 1, 2, 2), 0.10), "bd4": rnd(ks[11], (1,), 0.10),
    }


def _bf16_round64(a):
    """Round to bfloat16, return float64 (mirrors the kernel's bf16 operands)."""
    return np.asarray(
        jnp.asarray(np.asarray(a, np.float32), jnp.bfloat16).astype(jnp.float32),
        np.float64)


def _reference_Rz(Rx_tau, params):
    """Float64 numpy re-implementation of the PyTorch forward (up to Rz) with
    bf16-quantized weights / layer inputs (matching the kernel's deliberate
    bf16 matmul operands).  Used as the semantic correctness cross-check."""
    x = _bf16_round64(Rx_tau)
    p = {k: (_bf16_round64(v) if k.startswith("w") else np.asarray(v, np.float64))
         for k, v in params.items()}

    def conv(x, w, b):
        H, W = x.shape[2], x.shape[3]
        y = None
        for di in range(2):
            for dj in range(2):
                t = np.einsum("bchw,oc->bohw",
                              x[:, :, di:di + H - 1, dj:dj + W - 1],
                              w[:, :, di, dj])
                y = t if y is None else y + t
        return y + b[None, :, None, None]

    def deconv(x, w, b):
        Bb, C, H, W = x.shape
        Co = w.shape[1]
        y = np.zeros((Bb, Co, H + 1, W + 1))
        for di in range(2):
            for dj in range(2):
                y[:, :, di:di + H, dj:dj + W] += np.einsum(
                    "bchw,co->bohw", x, w[:, :, di, dj])
        return y + b[None, :, None, None]

    def anti(x):
        return np.concatenate([np.maximum(x, 0.0), np.maximum(-x, 0.0)], axis=1)

    q = _bf16_round64   # layer-input quantization, as done in the kernel
    x = anti(conv(x, p["w1"], p["b1"]))
    x = anti(conv(q(x), p["w2"], p["b2"]))
    x = anti(conv(q(x), p["w3"], p["b3"]))
    x = anti(deconv(q(x), p["wd2"], p["bd2"]))
    x = anti(deconv(q(x), p["wd3"], p["bd3"]))
    rx = deconv(q(x), p["wd4"], p["bd4"])[:, 0]          # (B, 2N, N)
    N = rx.shape[-1]
    K = rx[:, :N, :] + 1j * rx[:, N:, :]
    return np.einsum("bij,bik->bjk", np.conj(K), K) + np.eye(N)[None]


if __name__ == "__main__":
    B, tau, N, D = 2, 6, 8, 3
    key = jax.random.PRNGKey(0)
    k_in, k_par = jax.random.split(key)
    # Input follows the module's convention: (batch, tau, 2N, N).
    Rx_tau = jax.random.normal(k_in, (B, tau, 2 * N, N), jnp.float32)
    params = init_params(k_par, tau)
    prepared, meta = prepare_params(params, N)     # one-time weight/gather prep

    doa, Rz = subspacenet_forward(Rx_tau, prepared, meta, D)

    # Tight check: Pallas kernel vs plain-XLA replica of the same algorithm.
    packed_mirror = np.asarray(_mirror_forward_xla(Rx_tau, prepared, meta))
    Rz_mirror = packed_mirror[:, :, :N] + 1j * packed_mirror[:, :, N:]
    tight = np.max(np.abs(Rz - Rz_mirror)) / (np.max(np.abs(Rz_mirror)) + 1e-12)
    assert tight < 1e-3, f"kernel vs XLA mirror mismatch: rel_err={tight}"

    # Semantic check: float64 PyTorch-style reference (bf16-quantized
    # weights/inputs to account for the deliberate bf16 MXU operands).
    Rz_ref = _reference_Rz(Rx_tau, params)
    rel_err = np.max(np.abs(Rz - Rz_ref)) / (np.max(np.abs(Rz_ref)) + 1e-12)
    assert rel_err < 0.04, f"Rz mismatch vs reference: rel_err={rel_err}"

    assert doa.shape == (B, D)
    assert Rz.shape == (B, N, N)
    assert np.all(np.isfinite(doa))
    print("KERNEL_OK")
</pallas_src>

<mosaic_0001>
module attributes {stable_mosaic.version = 11 : i64} {
  func.func @_subspacenet_kernel(%arg0: i32, %arg1: memref<1x128x6xf32, #tpu.memory_space<vmem>>, %arg2: memref<448x128xbf16, #tpu.memory_space<vmem>>, %arg3: memref<4x6x32xbf16, #tpu.memory_space<vmem>>, %arg4: memref<1x32xf32, #tpu.memory_space<vmem>>, %arg5: memref<352x112xbf16, #tpu.memory_space<vmem>>, %arg6: memref<4x32x64xbf16, #tpu.memory_space<vmem>>, %arg7: memref<1x64xf32, #tpu.memory_space<vmem>>, %arg8: memref<288x88xbf16, #tpu.memory_space<vmem>>, %arg9: memref<4x64x128xbf16, #tpu.memory_space<vmem>>, %arg10: memref<1x128xf32, #tpu.memory_space<vmem>>, %arg11: memref<128x256xbf16, #tpu.memory_space<vmem>>, %arg12: memref<4x88x72xbf16, #tpu.memory_space<vmem>>, %arg13: memref<1x64xf32, #tpu.memory_space<vmem>>, %arg14: memref<64x128xbf16, #tpu.memory_space<vmem>>, %arg15: memref<4x112x88xbf16, #tpu.memory_space<vmem>>, %arg16: memref<1x32xf32, #tpu.memory_space<vmem>>, %arg17: memref<32x4xbf16, #tpu.memory_space<vmem>>, %arg18: memref<4x128x112xbf16, #tpu.memory_space<vmem>>, %arg19: memref<1x1xf32, #tpu.memory_space<vmem>>, %arg20: memref<16x128xbf16, #tpu.memory_space<vmem>>, %arg21: memref<128x8xbf16, #tpu.memory_space<vmem>>, %arg22: memref<8x16xf32, #tpu.memory_space<vmem>>, %arg23: memref<1x8x16xf32, #tpu.memory_space<vmem>>) attributes {dimension_semantics = [#tpu.dimension_semantics<parallel>], iteration_bounds = array<i64: 2>, scalar_prefetch = 0 : i64, scratch_operands = 0 : i64, tpu.core_type = #tpu.core_type<tc>, window_params = [{transform_indices = @transform_0, window_bounds = array<i64: 1, 128, 6>}, {pipeline_mode = #tpu.pipeline_mode<synchronous>, transform_indices = @transform_1, window_bounds = array<i64: 448, 128>}, {pipeline_mode = #tpu.pipeline_mode<synchronous>, transform_indices = @transform_2, window_bounds = array<i64: 4, 6, 32>}, {pipeline_mode = #tpu.pipeline_mode<synchronous>, transform_indices = @transform_3, window_bounds = array<i64: 1, 32>}, {pipeline_mode = #tpu.pipeline_mode<synchronous>, transform_indices = @transform_4, window_bounds = array<i64: 352, 112>}, {pipeline_mode = #tpu.pipeline_mode<synchronous>, transform_indices = @transform_5, window_bounds = array<i64: 4, 32, 64>}, {pipeline_mode = #tpu.pipeline_mode<synchronous>, transform_indices = @transform_6, window_bounds = array<i64: 1, 64>}, {pipeline_mode = #tpu.pipeline_mode<synchronous>, transform_indices = @transform_7, window_bounds = array<i64: 288, 88>}, {pipeline_mode = #tpu.pipeline_mode<synchronous>, transform_indices = @transform_8, window_bounds = array<i64: 4, 64, 128>}, {pipeline_mode = #tpu.pipeline_mode<synchronous>, transform_indices = @transform_9, window_bounds = array<i64: 1, 128>}, {pipeline_mode = #tpu.pipeline_mode<synchronous>, transform_indices = @transform_10, window_bounds = array<i64: 128, 256>}, {pipeline_mode = #tpu.pipeline_mode<synchronous>, transform_indices = @transform_11, window_bounds = array<i64: 4, 88, 72>}, {pipeline_mode = #tpu.pipeline_mode<synchronous>, transform_indices = @transform_12, window_bounds = array<i64: 1, 64>}, {pipeline_mode = #tpu.pipeline_mode<synchronous>, transform_indices = @transform_13, window_bounds = array<i64: 64, 128>}, {pipeline_mode = #tpu.pipeline_mode<synchronous>, transform_indices = @transform_14, window_bounds = array<i64: 4, 112, 88>}, {pipeline_mode = #tpu.pipeline_mode<synchronous>, transform_indices = @transform_15, window_bounds = array<i64: 1, 32>}, {pipeline_mode = #tpu.pipeline_mode<synchronous>, transform_indices = @transform_16, window_bounds = array<i64: 32, 4>}, {pipeline_mode = #tpu.pipeline_mode<synchronous>, transform_indices = @transform_17, window_bounds = array<i64: 4, 128, 112>}, {pipeline_mode = #tpu.pipeline_mode<synchronous>, transform_indices = @transform_18, window_bounds = array<i64: 1, 1>}, {pipeline_mode = #tpu.pipeline_mode<synchronous>, transform_indices = @transform_19, window_bounds = array<i64: 16, 128>}, {pipeline_mode = #tpu.pipeline_mode<synchronous>, transform_indices = @transform_20, window_bounds = array<i64: 128, 8>}, {pipeline_mode = #tpu.pipeline_mode<synchronous>, transform_indices = @transform_21, window_bounds = array<i64: 8, 16>}, {transform_indices = @transform_22, window_bounds = array<i64: 1, 8, 16>}]} {
    %c0 = arith.constant 0 : index
    %c0_0 = arith.constant 0 : index
    %c0_1 = arith.constant 0 : index
    %0 = vector.load %arg1[%c0, %c0_0, %c0_1] : memref<1x128x6xf32, #tpu.memory_space<vmem>>, vector<1x128x6xf32>
    %1 = vector.shape_cast %0 : vector<1x128x6xf32> to vector<128x6xf32>
    %2 = arith.truncf %1 : vector<128x6xf32> to vector<128x6xbf16>
    %c0_2 = arith.constant 0 : index
    %c0_3 = arith.constant 0 : index
    %3 = vector.load %arg2[%c0_2, %c0_3] : memref<448x128xbf16, #tpu.memory_space<vmem>>, vector<448x128xbf16>
    %cst = arith.constant dense<0.000000e+00> : vector<448x6xf32>
    %4 = tpu.matmul %3, %2, %cst {dimension_numbers = #tpu.dot_dimension_numbers<[1], [0], [0], [1], [0, 0, 1, 1], [], []>} : vector<448x128xbf16>, vector<128x6xbf16>, vector<448x6xf32> -> vector<448x6xf32>
    %5 = arith.truncf %4 : vector<448x6xf32> to vector<448x6xbf16>
    %6 = vector.extract_strided_slice %5 {offsets = [0, 0], sizes = [112, 6], strides = [1, 1]} : vector<448x6xbf16> to vector<112x6xbf16>
    %c0_4 = arith.constant 0 : index
    %c0_5 = arith.constant 0 : index
    %c0_6 = arith.constant 0 : index
    %7 = vector.load %arg3[%c0_4, %c0_5, %c0_6] : memref<4x6x32xbf16, #tpu.memory_space<vmem>>, vector<1x6x32xbf16>
    %8 = vector.shape_cast %7 : vector<1x6x32xbf16> to vector<6x32xbf16>
    %cst_7 = arith.constant dense<0.000000e+00> : vector<112x32xf32>
    %9 = tpu.matmul %6, %8, %cst_7 {dimension_numbers = #tpu.dot_dimension_numbers<[1], [0], [0], [1], [0, 0, 1, 1], [], []>} : vector<112x6xbf16>, vector<6x32xbf16>, vector<112x32xf32> -> vector<112x32xf32>
    %10 = vector.extract_strided_slice %5 {offsets = [112, 0], sizes = [112, 6], strides = [1, 1]} : vector<448x6xbf16> to vector<112x6xbf16>
    %c1 = arith.constant 1 : index
    %c0_8 = arith.constant 0 : index
    %c0_9 = arith.constant 0 : index
    %11 = vector.load %arg3[%c1, %c0_8, %c0_9] : memref<4x6x32xbf16, #tpu.memory_space<vmem>>, vector<1x6x32xbf16>
    %12 = vector.shape_cast %11 : vector<1x6x32xbf16> to vector<6x32xbf16>
    %cst_10 = arith.constant dense<0.000000e+00> : vector<112x32xf32>
    %13 = tpu.matmul %10, %12, %cst_10 {dimension_numbers = #tpu.dot_dimension_numbers<[1], [0], [0], [1], [0, 0, 1, 1], [], []>} : vector<112x6xbf16>, vector<6x32xbf16>, vector<112x32xf32> -> vector<112x32xf32>
    %14 = arith.addf %9, %13 : vector<112x32xf32>
    %15 = vector.extract_strided_slice %5 {offsets = [224, 0], sizes = [112, 6], strides = [1, 1]} : vector<448x6xbf16> to vector<112x6xbf16>
    %c2 = arith.constant 2 : index
    %c0_11 = arith.constant 0 : index
    %c0_12 = arith.constant 0 : index
    %16 = vector.load %arg3[%c2, %c0_11, %c0_12] : memref<4x6x32xbf16, #tpu.memory_space<vmem>>, vector<1x6x32xbf16>
    %17 = vector.shape_cast %16 : vector<1x6x32xbf16> to vector<6x32xbf16>
    %cst_13 = arith.constant dense<0.000000e+00> : vector<112x32xf32>
    %18 = tpu.matmul %15, %17, %cst_13 {dimension_numbers = #tpu.dot_dimension_numbers<[1], [0], [0], [1], [0, 0, 1, 1], [], []>} : vector<112x6xbf16>, vector<6x32xbf16>, vector<112x32xf32> -> vector<112x32xf32>
    %19 = arith.addf %14, %18 : vector<112x32xf32>
    %20 = vector.extract_strided_slice %5 {offsets = [336, 0], sizes = [112, 6], strides = [1, 1]} : vector<448x6xbf16> to vector<112x6xbf16>
    %c3 = arith.constant 3 : index
    %c0_14 = arith.constant 0 : index
    %c0_15 = arith.constant 0 : index
    %21 = vector.load %arg3[%c3, %c0_14, %c0_15] : memref<4x6x32xbf16, #tpu.memory_space<vmem>>, vector<1x6x32xbf16>
    %22 = vector.shape_cast %21 : vector<1x6x32xbf16> to vector<6x32xbf16>
    %cst_16 = arith.constant dense<0.000000e+00> : vector<112x32xf32>
    %23 = tpu.matmul %20, %22, %cst_16 {dimension_numbers = #tpu.dot_dimension_numbers<[1], [0], [0], [1], [0, 0, 1, 1], [], []>} : vector<112x6xbf16>, vector<6x32xbf16>, vector<112x32xf32> -> vector<112x32xf32>
    %24 = arith.addf %19, %23 : vector<112x32xf32>
    %c0_17 = arith.constant 0 : index
    %c0_18 = arith.constant 0 : index
    %25 = vector.load %arg4[%c0_17, %c0_18] : memref<1x32xf32, #tpu.memory_space<vmem>>, vector<1x32xf32>
    %26 = vector.broadcast %25 : vector<1x32xf32> to vector<112x32xf32>
    %27 = arith.addf %24, %26 : vector<112x32xf32>
    %cst_19 = arith.constant 0.000000e+00 : f32
    %28 = vector.broadcast %cst_19 : f32 to vector<112x32xf32>
    %29 = arith.maximumf %27, %28 : vector<112x32xf32>
    %30 = arith.truncf %29 : vector<112x32xf32> to vector<112x32xbf16>
    %c0_20 = arith.constant 0 : index
    %c0_21 = arith.constant 0 : index
    %31 = vector.load %arg5[%c0_20, %c0_21] : memref<352x112xbf16, #tpu.memory_space<vmem>>, vector<352x112xbf16>
    %cst_22 = arith.constant dense<0.000000e+00> : vector<352x32xf32>
    %32 = tpu.matmul %31, %30, %cst_22 {dimension_numbers = #tpu.dot_dimension_numbers<[1], [0], [0], [1], [0, 0, 1, 1], [], []>} : vector<352x112xbf16>, vector<112x32xbf16>, vector<352x32xf32> -> vector<352x32xf32>
    %33 = arith.truncf %32 : vector<352x32xf32> to vector<352x32xbf16>
    %34 = vector.extract_strided_slice %33 {offsets = [0, 0], sizes = [88, 32], strides = [1, 1]} : vector<352x32xbf16> to vector<88x32xbf16>
    %c0_23 = arith.constant 0 : index
    %c0_24 = arith.constant 0 : index
    %c0_25 = arith.constant 0 : index
    %35 = vector.load %arg6[%c0_23, %c0_24, %c0_25] : memref<4x32x64xbf16, #tpu.memory_space<vmem>>, vector<1x32x64xbf16>
    %36 = vector.shape_cast %35 : vector<1x32x64xbf16> to vector<32x64xbf16>
    %cst_26 = arith.constant dense<0.000000e+00> : vector<88x64xf32>
    %37 = tpu.matmul %34, %36, %cst_26 {dimension_numbers = #tpu.dot_dimension_numbers<[1], [0], [0], [1], [0, 0, 1, 1], [], []>} : vector<88x32xbf16>, vector<32x64xbf16>, vector<88x64xf32> -> vector<88x64xf32>
    %38 = vector.extract_strided_slice %33 {offsets = [88, 0], sizes = [88, 32], strides = [1, 1]} : vector<352x32xbf16> to vector<88x32xbf16>
    %c1_27 = arith.constant 1 : index
    %c0_28 = arith.constant 0 : index
    %c0_29 = arith.constant 0 : index
    %39 = vector.load %arg6[%c1_27, %c0_28, %c0_29] : memref<4x32x64xbf16, #tpu.memory_space<vmem>>, vector<1x32x64xbf16>
    %40 = vector.shape_cast %39 : vector<1x32x64xbf16> to vector<32x64xbf16>
    %cst_30 = arith.constant dense<0.000000e+00> : vector<88x64xf32>
    %41 = tpu.matmul %38, %40, %cst_30 {dimension_numbers = #tpu.dot_dimension_numbers<[1], [0], [0], [1], [0, 0, 1, 1], [], []>} : vector<88x32xbf16>, vector<32x64xbf16>, vector<88x64xf32> -> vector<88x64xf32>
    %42 = arith.addf %37, %41 : vector<88x64xf32>
    %43 = vector.extract_strided_slice %33 {offsets = [176, 0], sizes = [88, 32], strides = [1, 1]} : vector<352x32xbf16> to vector<88x32xbf16>
    %c2_31 = arith.constant 2 : index
    %c0_32 = arith.constant 0 : index
    %c0_33 = arith.constant 0 : index
    %44 = vector.load %arg6[%c2_31, %c0_32, %c0_33] : memref<4x32x64xbf16, #tpu.memory_space<vmem>>, vector<1x32x64xbf16>
    %45 = vector.shape_cast %44 : vector<1x32x64xbf16> to vector<32x64xbf16>
    %cst_34 = arith.constant dense<0.000000e+00> : vector<88x64xf32>
    %46 = tpu.matmul %43, %45, %cst_34 {dimension_numbers = #tpu.dot_dimension_numbers<[1], [0], [0], [1], [0, 0, 1, 1], [], []>} : vector<88x32xbf16>, vector<32x64xbf16>, vector<88x64xf32> -> vector<88x64xf32>
    %47 = arith.addf %42, %46 : vector<88x64xf32>
    %48 = vector.extract_strided_slice %33 {offsets = [264, 0], sizes = [88, 32], strides = [1, 1]} : vector<352x32xbf16> to vector<88x32xbf16>
    %c3_35 = arith.constant 3 : index
    %c0_36 = arith.constant 0 : index
    %c0_37 = arith.constant 0 : index
    %49 = vector.load %arg6[%c3_35, %c0_36, %c0_37] : memref<4x32x64xbf16, #tpu.memory_space<vmem>>, vector<1x32x64xbf16>
    %50 = vector.shape_cast %49 : vector<1x32x64xbf16> to vector<32x64xbf16>
    %cst_38 = arith.constant dense<0.000000e+00> : vector<88x64xf32>
    %51 = tpu.matmul %48, %50, %cst_38 {dimension_numbers = #tpu.dot_dimension_numbers<[1], [0], [0], [1], [0, 0, 1, 1], [], []>} : vector<88x32xbf16>, vector<32x64xbf16>, vector<88x64xf32> -> vector<88x64xf32>
    %52 = arith.addf %47, %51 : vector<88x64xf32>
    %c0_39 = arith.constant 0 : index
    %c0_40 = arith.constant 0 : index
    %53 = vector.load %arg7[%c0_39, %c0_40] : memref<1x64xf32, #tpu.memory_space<vmem>>, vector<1x64xf32>
    %54 = vector.broadcast %53 : vector<1x64xf32> to vector<88x64xf32>
    %55 = arith.addf %52, %54 : vector<88x64xf32>
    %cst_41 = arith.constant 0.000000e+00 : f32
    %56 = vector.broadcast %cst_41 : f32 to vector<88x64xf32>
    %57 = arith.maximumf %55, %56 : vector<88x64xf32>
    %58 = arith.truncf %57 : vector<88x64xf32> to vector<88x64xbf16>
    %c0_42 = arith.constant 0 : index
    %c0_43 = arith.constant 0 : index
    %59 = vector.load %arg8[%c0_42, %c0_43] : memref<288x88xbf16, #tpu.memory_space<vmem>>, vector<288x88xbf16>
    %cst_44 = arith.constant dense<0.000000e+00> : vector<288x64xf32>
    %60 = tpu.matmul %59, %58, %cst_44 {dimension_numbers = #tpu.dot_dimension_numbers<[1], [0], [0], [1], [0, 0, 1, 1], [], []>} : vector<288x88xbf16>, vector<88x64xbf16>, vector<288x64xf32> -> vector<288x64xf32>
    %61 = arith.truncf %60 : vector<288x64xf32> to vector<288x64xbf16>
    %62 = vector.extract_strided_slice %61 {offsets = [0, 0], sizes = [72, 64], strides = [1, 1]} : vector<288x64xbf16> to vector<72x64xbf16>
    %c0_45 = arith.constant 0 : index
    %c0_46 = arith.constant 0 : index
    %c0_47 = arith.constant 0 : index
    %63 = vector.load %arg9[%c0_45, %c0_46, %c0_47] : memref<4x64x128xbf16, #tpu.memory_space<vmem>>, vector<1x64x128xbf16>
    %64 = vector.shape_cast %63 : vector<1x64x128xbf16> to vector<64x128xbf16>
    %cst_48 = arith.constant dense<0.000000e+00> : vector<72x128xf32>
    %65 = tpu.matmul %62, %64, %cst_48 {dimension_numbers = #tpu.dot_dimension_numbers<[1], [0], [0], [1], [0, 0, 1, 1], [], []>} : vector<72x64xbf16>, vector<64x128xbf16>, vector<72x128xf32> -> vector<72x128xf32>
    %66 = vector.extract_strided_slice %61 {offsets = [72, 0], sizes = [72, 64], strides = [1, 1]} : vector<288x64xbf16> to vector<72x64xbf16>
    %c1_49 = arith.constant 1 : index
    %c0_50 = arith.constant 0 : index
    %c0_51 = arith.constant 0 : index
    %67 = vector.load %arg9[%c1_49, %c0_50, %c0_51] : memref<4x64x128xbf16, #tpu.memory_space<vmem>>, vector<1x64x128xbf16>
    %68 = vector.shape_cast %67 : vector<1x64x128xbf16> to vector<64x128xbf16>
    %cst_52 = arith.constant dense<0.000000e+00> : vector<72x128xf32>
    %69 = tpu.matmul %66, %68, %cst_52 {dimension_numbers = #tpu.dot_dimension_numbers<[1], [0], [0], [1], [0, 0, 1, 1], [], []>} : vector<72x64xbf16>, vector<64x128xbf16>, vector<72x128xf32> -> vector<72x128xf32>
    %70 = arith.addf %65, %69 : vector<72x128xf32>
    %71 = vector.extract_strided_slice %61 {offsets = [144, 0], sizes = [72, 64], strides = [1, 1]} : vector<288x64xbf16> to vector<72x64xbf16>
    %c2_53 = arith.constant 2 : index
    %c0_54 = arith.constant 0 : index
    %c0_55 = arith.constant 0 : index
    %72 = vector.load %arg9[%c2_53, %c0_54, %c0_55] : memref<4x64x128xbf16, #tpu.memory_space<vmem>>, vector<1x64x128xbf16>
    %73 = vector.shape_cast %72 : vector<1x64x128xbf16> to vector<64x128xbf16>
    %cst_56 = arith.constant dense<0.000000e+00> : vector<72x128xf32>
    %74 = tpu.matmul %71, %73, %cst_56 {dimension_numbers = #tpu.dot_dimension_numbers<[1], [0], [0], [1], [0, 0, 1, 1], [], []>} : vector<72x64xbf16>, vector<64x128xbf16>, vector<72x128xf32> -> vector<72x128xf32>
    %75 = arith.addf %70, %74 : vector<72x128xf32>
    %76 = vector.extract_strided_slice %61 {offsets = [216, 0], sizes = [72, 64], strides = [1, 1]} : vector<288x64xbf16> to vector<72x64xbf16>
    %c3_57 = arith.constant 3 : index
    %c0_58 = arith.constant 0 : index
    %c0_59 = arith.constant 0 : index
    %77 = vector.load %arg9[%c3_57, %c0_58, %c0_59] : memref<4x64x128xbf16, #tpu.memory_space<vmem>>, vector<1x64x128xbf16>
    %78 = vector.shape_cast %77 : vector<1x64x128xbf16> to vector<64x128xbf16>
    %cst_60 = arith.constant dense<0.000000e+00> : vector<72x128xf32>
    %79 = tpu.matmul %76, %78, %cst_60 {dimension_numbers = #tpu.dot_dimension_numbers<[1], [0], [0], [1], [0, 0, 1, 1], [], []>} : vector<72x64xbf16>, vector<64x128xbf16>, vector<72x128xf32> -> vector<72x128xf32>
    %80 = arith.addf %75, %79 : vector<72x128xf32>
    %c0_61 = arith.constant 0 : index
    %c0_62 = arith.constant 0 : index
    %81 = vector.load %arg10[%c0_61, %c0_62] : memref<1x128xf32, #tpu.memory_space<vmem>>, vector<1x128xf32>
    %82 = vector.broadcast %81 : vector<1x128xf32> to vector<72x128xf32>
    %83 = arith.addf %80, %82 : vector<72x128xf32>
    %cst_63 = arith.constant 0.000000e+00 : f32
    %84 = vector.broadcast %cst_63 : f32 to vector<72x128xf32>
    %85 = arith.maximumf %83, %84 : vector<72x128xf32>
    %86 = arith.truncf %85 : vector<72x128xf32> to vector<72x128xbf16>
    %c0_64 = arith.constant 0 : index
    %c0_65 = arith.constant 0 : index
    %87 = vector.load %arg11[%c0_64, %c0_65] : memref<128x256xbf16, #tpu.memory_space<vmem>>, vector<128x256xbf16>
    %cst_66 = arith.constant dense<0.000000e+00> : vector<72x256xf32>
    %88 = tpu.matmul %86, %87, %cst_66 {dimension_numbers = #tpu.dot_dimension_numbers<[1], [0], [0], [1], [0, 0, 1, 1], [], []>} : vector<72x128xbf16>, vector<128x256xbf16>, vector<72x256xf32> -> vector<72x256xf32>
    %89 = arith.truncf %88 : vector<72x256xf32> to vector<72x256xbf16>
    %c0_67 = arith.constant 0 : index
    %c0_68 = arith.constant 0 : index
    %c0_69 = arith.constant 0 : index
    %90 = vector.load %arg12[%c0_67, %c0_68, %c0_69] : memref<4x88x72xbf16, #tpu.memory_space<vmem>>, vector<1x88x72xbf16>
    %91 = vector.shape_cast %90 : vector<1x88x72xbf16> to vector<88x72xbf16>
    %92 = vector.extract_strided_slice %89 {offsets = [0, 0], sizes = [72, 64], strides = [1, 1]} : vector<72x256xbf16> to vector<72x64xbf16>
    %cst_70 = arith.constant dense<0.000000e+00> : vector<88x64xf32>
    %93 = tpu.matmul %91, %92, %cst_70 {dimension_numbers = #tpu.dot_dimension_numbers<[1], [0], [0], [1], [0, 0, 1, 1], [], []>} : vector<88x72xbf16>, vector<72x64xbf16>, vector<88x64xf32> -> vector<88x64xf32>
    %c1_71 = arith.constant 1 : index
    %c0_72 = arith.constant 0 : index
    %c0_73 = arith.constant 0 : index
    %94 = vector.load %arg12[%c1_71, %c0_72, %c0_73] : memref<4x88x72xbf16, #tpu.memory_space<vmem>>, vector<1x88x72xbf16>
    %95 = vector.shape_cast %94 : vector<1x88x72xbf16> to vector<88x72xbf16>
    %96 = vector.extract_strided_slice %89 {offsets = [0, 64], sizes = [72, 64], strides = [1, 1]} : vector<72x256xbf16> to vector<72x64xbf16>
    %cst_74 = arith.constant dense<0.000000e+00> : vector<88x64xf32>
    %97 = tpu.matmul %95, %96, %cst_74 {dimension_numbers = #tpu.dot_dimension_numbers<[1], [0], [0], [1], [0, 0, 1, 1], [], []>} : vector<88x72xbf16>, vector<72x64xbf16>, vector<88x64xf32> -> vector<88x64xf32>
    %98 = arith.addf %93, %97 : vector<88x64xf32>
    %c2_75 = arith.constant 2 : index
    %c0_76 = arith.constant 0 : index
    %c0_77 = arith.constant 0 : index
    %99 = vector.load %arg12[%c2_75, %c0_76, %c0_77] : memref<4x88x72xbf16, #tpu.memory_space<vmem>>, vector<1x88x72xbf16>
    %100 = vector.shape_cast %99 : vector<1x88x72xbf16> to vector<88x72xbf16>
    %101 = vector.extract_strided_slice %89 {offsets = [0, 128], sizes = [72, 64], strides = [1, 1]} : vector<72x256xbf16> to vector<72x64xbf16>
    %cst_78 = arith.constant dense<0.000000e+00> : vector<88x64xf32>
    %102 = tpu.matmul %100, %101, %cst_78 {dimension_numbers = #tpu.dot_dimension_numbers<[1], [0], [0], [1], [0, 0, 1, 1], [], []>} : vector<88x72xbf16>, vector<72x64xbf16>, vector<88x64xf32> -> vector<88x64xf32>
    %103 = arith.addf %98, %102 : vector<88x64xf32>
    %c3_79 = arith.constant 3 : index
    %c0_80 = arith.constant 0 : index
    %c0_81 = arith.constant 0 : index
    %104 = vector.load %arg12[%c3_79, %c0_80, %c0_81] : memref<4x88x72xbf16, #tpu.memory_space<vmem>>, vector<1x88x72xbf16>
    %105 = vector.shape_cast %104 : vector<1x88x72xbf16> to vector<88x72xbf16>
    %106 = vector.extract_strided_slice %89 {offsets = [0, 192], sizes = [72, 64], strides = [1, 1]} : vector<72x256xbf16> to vector<72x64xbf16>
    %cst_82 = arith.constant dense<0.000000e+00> : vector<88x64xf32>
    %107 = tpu.matmul %105, %106, %cst_82 {dimension_numbers = #tpu.dot_dimension_numbers<[1], [0], [0], [1], [0, 0, 1, 1], [], []>} : vector<88x72xbf16>, vector<72x64xbf16>, vector<88x64xf32> -> vector<88x64xf32>
    %108 = arith.addf %103, %107 : vector<88x64xf32>
    %c0_83 = arith.constant 0 : index
    %c0_84 = arith.constant 0 : index
    %109 = vector.load %arg13[%c0_83, %c0_84] : memref<1x64xf32, #tpu.memory_space<vmem>>, vector<1x64xf32>
    %110 = vector.broadcast %109 : vector<1x64xf32> to vector<88x64xf32>
    %111 = arith.addf %108, %110 : vector<88x64xf32>
    %cst_85 = arith.constant 0.000000e+00 : f32
    %112 = vector.broadcast %cst_85 : f32 to vector<88x64xf32>
    %113 = arith.maximumf %111, %112 : vector<88x64xf32>
    %114 = arith.truncf %113 : vector<88x64xf32> to vector<88x64xbf16>
    %c0_86 = arith.constant 0 : index
    %c0_87 = arith.constant 0 : index
    %115 = vector.load %arg14[%c0_86, %c0_87] : memref<64x128xbf16, #tpu.memory_space<vmem>>, vector<64x128xbf16>
    %cst_88 = arith.constant dense<0.000000e+00> : vector<88x128xf32>
    %116 = tpu.matmul %114, %115, %cst_88 {dimension_numbers = #tpu.dot_dimension_numbers<[1], [0], [0], [1], [0, 0, 1, 1], [], []>} : vector<88x64xbf16>, vector<64x128xbf16>, vector<88x128xf32> -> vector<88x128xf32>
    %117 = arith.truncf %116 : vector<88x128xf32> to vector<88x128xbf16>
    %c0_89 = arith.constant 0 : index
    %c0_90 = arith.constant 0 : index
    %c0_91 = arith.constant 0 : index
    %118 = vector.load %arg15[%c0_89, %c0_90, %c0_91] : memref<4x112x88xbf16, #tpu.memory_space<vmem>>, vector<1x112x88xbf16>
    %119 = vector.shape_cast %118 : vector<1x112x88xbf16> to vector<112x88xbf16>
    %120 = vector.extract_strided_slice %117 {offsets = [0, 0], sizes = [88, 32], strides = [1, 1]} : vector<88x128xbf16> to vector<88x32xbf16>
    %cst_92 = arith.constant dense<0.000000e+00> : vector<112x32xf32>
    %121 = tpu.matmul %119, %120, %cst_92 {dimension_numbers = #tpu.dot_dimension_numbers<[1], [0], [0], [1], [0, 0, 1, 1], [], []>} : vector<112x88xbf16>, vector<88x32xbf16>, vector<112x32xf32> -> vector<112x32xf32>
    %c1_93 = arith.constant 1 : index
    %c0_94 = arith.constant 0 : index
    %c0_95 = arith.constant 0 : index
    %122 = vector.load %arg15[%c1_93, %c0_94, %c0_95] : memref<4x112x88xbf16, #tpu.memory_space<vmem>>, vector<1x112x88xbf16>
    %123 = vector.shape_cast %122 : vector<1x112x88xbf16> to vector<112x88xbf16>
    %124 = vector.extract_strided_slice %117 {offsets = [0, 32], sizes = [88, 32], strides = [1, 1]} : vector<88x128xbf16> to vector<88x32xbf16>
    %cst_96 = arith.constant dense<0.000000e+00> : vector<112x32xf32>
    %125 = tpu.matmul %123, %124, %cst_96 {dimension_numbers = #tpu.dot_dimension_numbers<[1], [0], [0], [1], [0, 0, 1, 1], [], []>} : vector<112x88xbf16>, vector<88x32xbf16>, vector<112x32xf32> -> vector<112x32xf32>
    %126 = arith.addf %121, %125 : vector<112x32xf32>
    %c2_97 = arith.constant 2 : index
    %c0_98 = arith.constant 0 : index
    %c0_99 = arith.constant 0 : index
    %127 = vector.load %arg15[%c2_97, %c0_98, %c0_99] : memref<4x112x88xbf16, #tpu.memory_space<vmem>>, vector<1x112x88xbf16>
    %128 = vector.shape_cast %127 : vector<1x112x88xbf16> to vector<112x88xbf16>
    %129 = vector.extract_strided_slice %117 {offsets = [0, 64], sizes = [88, 32], strides = [1, 1]} : vector<88x128xbf16> to vector<88x32xbf16>
    %cst_100 = arith.constant dense<0.000000e+00> : vector<112x32xf32>
    %130 = tpu.matmul %128, %129, %cst_100 {dimension_numbers = #tpu.dot_dimension_numbers<[1], [0], [0], [1], [0, 0, 1, 1], [], []>} : vector<112x88xbf16>, vector<88x32xbf16>, vector<112x32xf32> -> vector<112x32xf32>
    %131 = arith.addf %126, %130 : vector<112x32xf32>
    %c3_101 = arith.constant 3 : index
    %c0_102 = arith.constant 0 : index
    %c0_103 = arith.constant 0 : index
    %132 = vector.load %arg15[%c3_101, %c0_102, %c0_103] : memref<4x112x88xbf16, #tpu.memory_space<vmem>>, vector<1x112x88xbf16>
    %133 = vector.shape_cast %132 : vector<1x112x88xbf16> to vector<112x88xbf16>
    %134 = vector.extract_strided_slice %117 {offsets = [0, 96], sizes = [88, 32], strides = [1, 1]} : vector<88x128xbf16> to vector<88x32xbf16>
    %cst_104 = arith.constant dense<0.000000e+00> : vector<112x32xf32>
    %135 = tpu.matmul %133, %134, %cst_104 {dimension_numbers = #tpu.dot_dimension_numbers<[1], [0], [0], [1], [0, 0, 1, 1], [], []>} : vector<112x88xbf16>, vector<88x32xbf16>, vector<112x32xf32> -> vector<112x32xf32>
    %136 = arith.addf %131, %135 : vector<112x32xf32>
    %c0_105 = arith.constant 0 : index
    %c0_106 = arith.constant 0 : index
    %137 = vector.load %arg16[%c0_105, %c0_106] : memref<1x32xf32, #tpu.memory_space<vmem>>, vector<1x32xf32>
    %138 = vector.broadcast %137 : vector<1x32xf32> to vector<112x32xf32>
    %139 = arith.addf %136, %138 : vector<112x32xf32>
    %cst_107 = arith.constant 0.000000e+00 : f32
    %140 = vector.broadcast %cst_107 : f32 to vector<112x32xf32>
    %141 = arith.maximumf %139, %140 : vector<112x32xf32>
    %142 = arith.truncf %141 : vector<112x32xf32> to vector<112x32xbf16>
    %c0_108 = arith.constant 0 : index
    %c0_109 = arith.constant 0 : index
    %143 = vector.load %arg17[%c0_108, %c0_109] : memref<32x4xbf16, #tpu.memory_space<vmem>>, vector<32x4xbf16>
    %cst_110 = arith.constant dense<0.000000e+00> : vector<112x4xf32>
    %144 = tpu.matmul %142, %143, %cst_110 {dimension_numbers = #tpu.dot_dimension_numbers<[1], [0], [0], [1], [0, 0, 1, 1], [], []>} : vector<112x32xbf16>, vector<32x4xbf16>, vector<112x4xf32> -> vector<112x4xf32>
    %145 = arith.truncf %144 : vector<112x4xf32> to vector<112x4xbf16>
    %c0_111 = arith.constant 0 : index
    %c0_112 = arith.constant 0 : index
    %c0_113 = arith.constant 0 : index
    %146 = vector.load %arg18[%c0_111, %c0_112, %c0_113] : memref<4x128x112xbf16, #tpu.memory_space<vmem>>, vector<1x128x112xbf16>
    %147 = vector.shape_cast %146 : vector<1x128x112xbf16> to vector<128x112xbf16>
    %148 = vector.extract_strided_slice %145 {offsets = [0, 0], sizes = [112, 1], strides = [1, 1]} : vector<112x4xbf16> to vector<112x1xbf16>
    %cst_114 = arith.constant dense<0.000000e+00> : vector<128x1xf32>
    %149 = tpu.matmul %147, %148, %cst_114 {dimension_numbers = #tpu.dot_dimension_numbers<[1], [0], [0], [1], [0, 0, 1, 1], [], []>} : vector<128x112xbf16>, vector<112x1xbf16>, vector<128x1xf32> -> vector<128x1xf32>
    %c1_115 = arith.constant 1 : index
    %c0_116 = arith.constant 0 : index
    %c0_117 = arith.constant 0 : index
    %150 = vector.load %arg18[%c1_115, %c0_116, %c0_117] : memref<4x128x112xbf16, #tpu.memory_space<vmem>>, vector<1x128x112xbf16>
    %151 = vector.shape_cast %150 : vector<1x128x112xbf16> to vector<128x112xbf16>
    %152 = vector.extract_strided_slice %145 {offsets = [0, 1], sizes = [112, 1], strides = [1, 1]} : vector<112x4xbf16> to vector<112x1xbf16>
    %cst_118 = arith.constant dense<0.000000e+00> : vector<128x1xf32>
    %153 = tpu.matmul %151, %152, %cst_118 {dimension_numbers = #tpu.dot_dimension_numbers<[1], [0], [0], [1], [0, 0, 1, 1], [], []>} : vector<128x112xbf16>, vector<112x1xbf16>, vector<128x1xf32> -> vector<128x1xf32>
    %154 = arith.addf %149, %153 : vector<128x1xf32>
    %c2_119 = arith.constant 2 : index
    %c0_120 = arith.constant 0 : index
    %c0_121 = arith.constant 0 : index
    %155 = vector.load %arg18[%c2_119, %c0_120, %c0_121] : memref<4x128x112xbf16, #tpu.memory_space<vmem>>, vector<1x128x112xbf16>
    %156 = vector.shape_cast %155 : vector<1x128x112xbf16> to vector<128x112xbf16>
    %157 = vector.extract_strided_slice %145 {offsets = [0, 2], sizes = [112, 1], strides = [1, 1]} : vector<112x4xbf16> to vector<112x1xbf16>
    %cst_122 = arith.constant dense<0.000000e+00> : vector<128x1xf32>
    %158 = tpu.matmul %156, %157, %cst_122 {dimension_numbers = #tpu.dot_dimension_numbers<[1], [0], [0], [1], [0, 0, 1, 1], [], []>} : vector<128x112xbf16>, vector<112x1xbf16>, vector<128x1xf32> -> vector<128x1xf32>
    %159 = arith.addf %154, %158 : vector<128x1xf32>
    %c3_123 = arith.constant 3 : index
    %c0_124 = arith.constant 0 : index
    %c0_125 = arith.constant 0 : index
    %160 = vector.load %arg18[%c3_123, %c0_124, %c0_125] : memref<4x128x112xbf16, #tpu.memory_space<vmem>>, vector<1x128x112xbf16>
    %161 = vector.shape_cast %160 : vector<1x128x112xbf16> to vector<128x112xbf16>
    %162 = vector.extract_strided_slice %145 {offsets = [0, 3], sizes = [112, 1], strides = [1, 1]} : vector<112x4xbf16> to vector<112x1xbf16>
    %cst_126 = arith.constant dense<0.000000e+00> : vector<128x1xf32>
    %163 = tpu.matmul %161, %162, %cst_126 {dimension_numbers = #tpu.dot_dimension_numbers<[1], [0], [0], [1], [0, 0, 1, 1], [], []>} : vector<128x112xbf16>, vector<112x1xbf16>, vector<128x1xf32> -> vector<128x1xf32>
    %164 = arith.addf %159, %163 : vector<128x1xf32>
    %c0_127 = arith.constant 0 : index
    %c0_128 = arith.constant 0 : index
    %165 = vector.load %arg19[%c0_127, %c0_128] : memref<1x1xf32, #tpu.memory_space<vmem>>, vector<1x1xf32>
    %166 = vector.broadcast %165 : vector<1x1xf32> to vector<128x1xf32>
    %167 = arith.addf %164, %166 : vector<128x1xf32>
    %c0_129 = arith.constant 0 : index
    %c0_130 = arith.constant 0 : index
    %168 = vector.load %arg21[%c0_129, %c0_130] : memref<128x8xbf16, #tpu.memory_space<vmem>>, vector<128x8xbf16>
    %169 = arith.extf %168 : vector<128x8xbf16> to vector<128x8xf32>
    %170 = vector.broadcast %167 : vector<128x1xf32> to vector<128x8xf32>
    %171 = arith.mulf %170, %169 : vector<128x8xf32>
    %172 = arith.truncf %171 : vector<128x8xf32> to vector<128x8xbf16>
    %c0_131 = arith.constant 0 : index
    %c0_132 = arith.constant 0 : index
    %173 = vector.load %arg20[%c0_131, %c0_132] : memref<16x128xbf16, #tpu.memory_space<vmem>>, vector<16x128xbf16>
    %cst_133 = arith.constant dense<0.000000e+00> : vector<16x8xf32>
    %174 = tpu.matmul %173, %172, %cst_133 {dimension_numbers = #tpu.dot_dimension_numbers<[1], [0], [0], [1], [0, 0, 1, 1], [], []>} : vector<16x128xbf16>, vector<128x8xbf16>, vector<16x8xf32> -> vector<16x8xf32>
    %175 = vector.extract_strided_slice %174 {offsets = [8, 0], sizes = [8, 8], strides = [1, 1]} : vector<16x8xf32> to vector<8x8xf32>
    %176 = vector.extract_strided_slice %174 {offsets = [0, 0], sizes = [8, 8], strides = [1, 1]} : vector<16x8xf32> to vector<8x8xf32>
    %cst_134 = arith.constant 0.000000e+00 : f32
    %177 = vector.broadcast %cst_134 : f32 to vector<8x8xf32>
    %178 = arith.subf %177, %176 : vector<8x8xf32>
    %179 = tpu.concatenate %175, %178 in 0 : vector<8x8xf32>, vector<8x8xf32> -> vector<16x8xf32>
    %180 = tpu.concatenate %174, %179 in 1 : vector<16x8xf32>, vector<16x8xf32> -> vector<16x16xf32>
    %181 = arith.truncf %180 : vector<16x16xf32> to vector<16x16xbf16>
    %182 = arith.truncf %174 : vector<16x8xf32> to vector<16x8xbf16>
    %cst_135 = arith.constant dense<0.000000e+00> : vector<8x16xf32>
    %183 = tpu.matmul %182, %181, %cst_135 {dimension_numbers = #tpu.dot_dimension_numbers<[0], [0], [1], [1], [0, 1, 1, 1], [], []>} : vector<16x8xbf16>, vector<16x16xbf16>, vector<8x16xf32> -> vector<8x16xf32>
    %c0_136 = arith.constant 0 : index
    %c0_137 = arith.constant 0 : index
    %184 = vector.load %arg22[%c0_136, %c0_137] : memref<8x16xf32, #tpu.memory_space<vmem>>, vector<8x16xf32>
    %185 = arith.addf %183, %184 : vector<8x16xf32>
    %c0_138 = arith.constant 0 : index
    %c0_139 = arith.constant 0 : index
    %c0_140 = arith.constant 0 : index
    %186 = vector.load %arg23[%c0_138, %c0_139, %c0_140] : memref<1x8x16xf32, #tpu.memory_space<vmem>>, vector<1x8x16xf32>
    %187 = vector.shape_cast %186 : vector<1x8x16xf32> to vector<8x16xf32>
    %188 = vector.shape_cast %185 : vector<8x16xf32> to vector<1x8x16xf32>
    tpu.vector_store %arg23[%c0_138, %c0_139, %c0_140], %188 {strides = array<i32>} : memref<1x8x16xf32, #tpu.memory_space<vmem>>, vector<1x8x16xf32>,
    return
  }
  func.func @transform_0(%arg0: i32) -> (i32, i32, i32) {
    %c0_i32 = arith.constant 0 : i32
    %c0_i32_0 = arith.constant 0 : i32
    %c0_i32_1 = arith.constant 0 : i32
    return %arg0, %c0_i32, %c0_i32_0 : i32, i32, i32
  }
  func.func @transform_1(%arg0: i32) -> (i32, i32) {
    %c0_i32 = arith.constant 0 : i32
    %c0_i32_0 = arith.constant 0 : i32
    %c0_i32_1 = arith.constant 0 : i32
    return %c0_i32, %c0_i32_0 : i32, i32
  }
  func.func @transform_2(%arg0: i32) -> (i32, i32, i32) {
    %c0_i32 = arith.constant 0 : i32
    %c0_i32_0 = arith.constant 0 : i32
    %c0_i32_1 = arith.constant 0 : i32
    %c0_i32_2 = arith.constant 0 : i32
    return %c0_i32, %c0_i32_0, %c0_i32_1 : i32, i32, i32
  }
  func.func @transform_3(%arg0: i32) -> (i32, i32) {
    %c0_i32 = arith.constant 0 : i32
    %c0_i32_0 = arith.constant 0 : i32
    %c0_i32_1 = arith.constant 0 : i32
    return %c0_i32, %c0_i32_0 : i32, i32
  }
  func.func @transform_4(%arg0: i32) -> (i32, i32) {
    %c0_i32 = arith.constant 0 : i32
    %c0_i32_0 = arith.constant 0 : i32
    %c0_i32_1 = arith.constant 0 : i32
    return %c0_i32, %c0_i32_0 : i32, i32
  }
  func.func @transform_5(%arg0: i32) -> (i32, i32, i32) {
    %c0_i32 = arith.constant 0 : i32
    %c0_i32_0 = arith.constant 0 : i32
    %c0_i32_1 = arith.constant 0 : i32
    %c0_i32_2 = arith.constant 0 : i32
    return %c0_i32, %c0_i32_0, %c0_i32_1 : i32, i32, i32
  }
  func.func @transform_6(%arg0: i32) -> (i32, i32) {
    %c0_i32 = arith.constant 0 : i32
    %c0_i32_0 = arith.constant 0 : i32
    %c0_i32_1 = arith.constant 0 : i32
    return %c0_i32, %c0_i32_0 : i32, i32
  }
  func.func @transform_7(%arg0: i32) -> (i32, i32) {
    %c0_i32 = arith.constant 0 : i32
    %c0_i32_0 = arith.constant 0 : i32
    %c0_i32_1 = arith.constant 0 : i32
    return %c0_i32, %c0_i32_0 : i32, i32
  }
  func.func @transform_8(%arg0: i32) -> (i32, i32, i32) {
    %c0_i32 = arith.constant 0 : i32
    %c0_i32_0 = arith.constant 0 : i32
    %c0_i32_1 = arith.constant 0 : i32
    %c0_i32_2 = arith.constant 0 : i32
    return %c0_i32, %c0_i32_0, %c0_i32_1 : i32, i32, i32
  }
  func.func @transform_9(%arg0: i32) -> (i32, i32) {
    %c0_i32 = arith.constant 0 : i32
    %c0_i32_0 = arith.constant 0 : i32
    %c0_i32_1 = arith.constant 0 : i32
    return %c0_i32, %c0_i32_0 : i32, i32
  }
  func.func @transform_10(%arg0: i32) -> (i32, i32) {
    %c0_i32 = arith.constant 0 : i32
    %c0_i32_0 = arith.constant 0 : i32
    %c0_i32_1 = arith.constant 0 : i32
    return %c0_i32, %c0_i32_0 : i32, i32
  }
  func.func @transform_11(%arg0: i32) -> (i32, i32, i32) {
    %c0_i32 = arith.constant 0 : i32
    %c0_i32_0 = arith.constant 0 : i32
    %c0_i32_1 = arith.constant 0 : i32
    %c0_i32_2 = arith.constant 0 : i32
    return %c0_i32, %c0_i32_0, %c0_i32_1 : i32, i32, i32
  }
  func.func @transform_12(%arg0: i32) -> (i32, i32) {
    %c0_i32 = arith.constant 0 : i32
    %c0_i32_0 = arith.constant 0 : i32
    %c0_i32_1 = arith.constant 0 : i32
    return %c0_i32, %c0_i32_0 : i32, i32
  }
  func.func @transform_13(%arg0: i32) -> (i32, i32) {
    %c0_i32 = arith.constant 0 : i32
    %c0_i32_0 = arith.constant 0 : i32
    %c0_i32_1 = arith.constant 0 : i32
    return %c0_i32, %c0_i32_0 : i32, i32
  }
  func.func @transform_14(%arg0: i32) -> (i32, i32, i32) {
    %c0_i32 = arith.constant 0 : i32
    %c0_i32_0 = arith.constant 0 : i32
    %c0_i32_1 = arith.constant 0 : i32
    %c0_i32_2 = arith.constant 0 : i32
    return %c0_i32, %c0_i32_0, %c0_i32_1 : i32, i32, i32
  }
  func.func @transform_15(%arg0: i32) -> (i32, i32) {
    %c0_i32 = arith.constant 0 : i32
    %c0_i32_0 = arith.constant 0 : i32
    %c0_i32_1 = arith.constant 0 : i32
    return %c0_i32, %c0_i32_0 : i32, i32
  }
  func.func @transform_16(%arg0: i32) -> (i32, i32) {
    %c0_i32 = arith.constant 0 : i32
    %c0_i32_0 = arith.constant 0 : i32
    %c0_i32_1 = arith.constant 0 : i32
    return %c0_i32, %c0_i32_0 : i32, i32
  }
  func.func @transform_17(%arg0: i32) -> (i32, i32, i32) {
    %c0_i32 = arith.constant 0 : i32
    %c0_i32_0 = arith.constant 0 : i32
    %c0_i32_1 = arith.constant 0 : i32
    %c0_i32_2 = arith.constant 0 : i32
    return %c0_i32, %c0_i32_0, %c0_i32_1 : i32, i32, i32
  }
  func.func @transform_18(%arg0: i32) -> (i32, i32) {
    %c0_i32 = arith.constant 0 : i32
    %c0_i32_0 = arith.constant 0 : i32
    %c0_i32_1 = arith.constant 0 : i32
    return %c0_i32, %c0_i32_0 : i32, i32
  }
  func.func @transform_19(%arg0: i32) -> (i32, i32) {
    %c0_i32 = arith.constant 0 : i32
    %c0_i32_0 = arith.constant 0 : i32
    %c0_i32_1 = arith.constant 0 : i32
    return %c0_i32, %c0_i32_0 : i32, i32
  }
  func.func @transform_20(%arg0: i32) -> (i32, i32) {
    %c0_i32 = arith.constant 0 : i32
    %c0_i32_0 = arith.constant 0 : i32
    %c0_i32_1 = arith.constant 0 : i32
    return %c0_i32, %c0_i32_0 : i32, i32
  }
  func.func @transform_21(%arg0: i32) -> (i32, i32) {
    %c0_i32 = arith.constant 0 : i32
    %c0_i32_0 = arith.constant 0 : i32
    %c0_i32_1 = arith.constant 0 : i32
    return %c0_i32, %c0_i32_0 : i32, i32
  }
  func.func @transform_22(%arg0: i32) -> (i32, i32, i32) {
    %c0_i32 = arith.constant 0 : i32
    %c0_i32_0 = arith.constant 0 : i32
    %c0_i32_1 = arith.constant 0 : i32
    return %arg0, %c0_i32, %c0_i32_0 : i32, i32, i32
  }
}

</mosaic_0001>

<bundles_post_ra>
// kernel: _subspacenet_tpu.1
= control target key start
LH: loop header
LB: loop body
LE: loop exit
PB: predicated region body
PF: predicated region fallthrough
CT: control target
= control target key end

     0   :  { %s9125_s29 = smov 0   ;;  %s10672_s0 = inlined_call_operand.vmem [shape: f32[2,128,6], index: 0, kind: input, shape index: {}]   ;;  %s10673_s1 = inlined_call_operand.vmem [shape: bf16[448,128], index: 1, kind: input, shape index: {}]   ;;  %s10674_s2 = inlined_call_operand.vmem [shape: bf16[4,6,32], index: 2, kind: input, shape index: {}]   ;;  %s10675_s3 = inlined_call_operand.vmem [shape: f32[1,32], index: 3, kind: input, shape index: {}]   ;;  %s10676_s4 = inlined_call_operand.vmem [shape: bf16[352,112], index: 4, kind: input, shape index: {}]   ;;  %s10677_s5 = inlined_call_operand.vmem [shape: bf16[4,32,64], index: 5, kind: input, shape index: {}]   ;;  %s10678_s6 = inlined_call_operand.vmem [shape: f32[1,64], index: 6, kind: input, shape index: {}]   ;;  %s10679_s7 = inlined_call_operand.vmem [shape: bf16[288,88], index: 7, kind: input, shape index: {}]   ;;  %s10680_s8 = inlined_call_operand.vmem [shape: bf16[4,64,128], index: 8, kind: input, shape index: {}]   ;;  %s10681_s9 = inlined_call_operand.vmem [shape: f32[1,128], index: 9, kind: input, shape index: {}]   ;;  %s10682_s10 = inlined_call_operand.vmem [shape: bf16[128,256], index: 10, kind: input, shape index: {}]   ;;  %s10683_s11 = inlined_call_operand.vmem [shape: bf16[4,88,72], index: 11, kind: input, shape index: {}]   ;;  %s10684_s12 = inlined_call_operand.vmem [shape: f32[1,64], index: 12, kind: input, shape index: {}]   ;;  %s10685_s13 = inlined_call_operand.vmem [shape: bf16[64,128], index: 13, kind: input, shape index: {}]   ;;  %s10686_s14 = inlined_call_operand.vmem [shape: bf16[4,112,88], index: 14, kind: input, shape index: {}]   ;;  %s10687_s15 = inlined_call_operand.vmem [shape: f32[1,32], index: 15, kind: input, shape index: {}]   ;;  %s10688_s16 = inlined_call_operand.vmem [shape: bf16[32,4], index: 16, kind: input, shape index: {}]   ;;  %s10689_s17 = inlined_call_operand.vmem [shape: bf16[4,128,112], index: 17, kind: input, shape index: {}]   ;;  %s10690_s18 = inlined_call_operand.<no memory space> [shape: f32[1,1], index: 18, kind: input, shape index: {}]   ;;  %s10691_s19 = inlined_call_operand.vmem [shape: bf16[16,128], index: 19, kind: input, shape index: {}]   ;;  %s10692_s20 = inlined_call_operand.vmem [shape: bf16[128,8], index: 20, kind: input, shape index: {}]   ;;  %s10693_s21 = inlined_call_operand.vmem [shape: f32[8,16], index: 21, kind: input, shape index: {}]   ;;  %s10694_s22 = inlined_call_operand.vmem [shape: f32[2,8,16], index: 22, kind: output, shape index: {}]  }
   0x1   :  { %10699 = sst [smem:[#allocation3_spill]] %s10672_s0  ;;  %v27_v0 = vstv %s10690_s18 }
   0x2   :  { %10700 = sst [smem:[#allocation4_spill]] %s10673_s1  ;;  %28 = vst [vmem:[#allocation2] sm:$0x1] %v27_v0 }
   0x3   :  { %10701 = sst [smem:[#allocation5_spill]] %s10674_s2 }
   0x4   :  { %10702 = sst [smem:[#allocation6_spill]] %s10675_s3 }
   0x5   :  { %10703 = sst [smem:[#allocation7_spill]] %s10676_s4 }
   0x6   :  { %10704 = sst [smem:[#allocation8_spill]] %s10677_s5 }
   0x7   :  { %10705 = sst [smem:[#allocation9_spill]] %s10678_s6 }
   0x8 LB: > { %s6732_s30 = sadd.s32 4294967295, %s8995_s29   ;;  %p6736_p0 = scmp.ge.s32.totalorder %s8995_s29, 1  ;;  %s8995_s29 = sphi %s9125_s29, %s34_s29  }
   0x9   : > { %p614_p1 = scmp.lt.s32.totalorder %s8995_s29, 3 }
   0xb   : > { %p615_p2 = pnand %p6736_p0, %p614_p1 }
   0xc   : > { %p675_p3 = scmp.lt.s32.totalorder (!%p615_p2), %s6732_s30, 1  ;;  %s10706_s18 = sld [smem:[#allocation4_spill]] (!%p615_p2)  ;;  %vm1243_vm0 = vcmask (!%p615_p2), 1042432   ;;  %v8997_v54 = vmov (!%p615_p2), 0.0   ;;  %vm8998_vm1 = vmmov (!%p615_p2), 0   ;;  %vm1221_vm2 = vcmask (!%p615_p2), 48128  }
   0xd   : > { %618 = sbr.rel (%p615_p2) target bundleno = 4562 (0x11d2), region = 108  ;;  %s10707_s24 = sld [smem:[#allocation3_spill]] (!%p615_p2)  ;;  %7806 = vmatprep.subr.bf16.mxu1 (!%p615_p2), %v8997_v54  ;;  %7808 = vmatprep.mubr.msk.bf16.mxu1 (!%p615_p2), %vm8998_vm1, %v8997_v54  ;;  %vm1903_vm3 = vcmask (!%p615_p2), 916480   ;;  %vm2216_vm4 = vcmask (!%p615_p2), 1043456   ;;  %vm2240_vm5 = vcmask (!%p615_p2), 261120   ;;  %vm2879_vm6 = vcmask (!%p615_p2), 719872  }
   0xe   : > { %s10708_s3 = sld [smem:[#allocation5_spill]] (!%p615_p2)  ;;  %s10709_s25 = sld [smem:[#allocation7_spill]] (!%p615_p2)  ;;  %vm3188_vm7 = vcmask (!%p615_p2), 523264   ;;  %vm3946_vm8 = vcmask (!%p615_p2), 588800   ;;  %vm6612_vm9 = vcmask (!%p615_p2), 64512   ;;  %vm6634_vm10 = vcmask (!%p615_p2), 130048  }
   0xf   : > { %s10710_s27 = sld [smem:[#allocation6_spill]] (!%p615_p2)  ;;  %s10711_s28 = sld [smem:[#allocation8_spill]] (!%p615_p2) }
  0x10   : > { %s10712_s2 = sld [smem:[#allocation9_spill]] (!%p615_p2)  ;;  %s9001_s5 = smov (!%p615_p2), 96  }
  0x11   : > { %s9003_s26 = smov (!%p615_p2), 127   ;;  %s9004_s0 = smov (!%p615_p2), 126  }
  0x12   : > { %v8782_v1 = vld [vmem:[%s10706_s18] sm:$0xff] (!%p615_p2)   ;;  %v8783_v26 = vld [vmem:[%s10706_s18 + $0x8] sm:$0xff] (!%p615_p2)   ;;  %v8784_v27 = vld [vmem:[%s10706_s18 + $0x10] sm:$0xff] (!%p615_p2)   ;;  %s9006_s1 = smov (!%p615_p2), 8  }
  0x13   : > { %7750 = vmatprep.mubr.bf16.mxu0 (!%p615_p2), %v8782_v1  ;;  %v8785_v28 = vld [vmem:[%s10706_s18 + $0x18] sm:$0xff] (!%p615_p2)   ;;  %v8786_v29 = vld [vmem:[%s10706_s18 + $0x20] sm:$0xff] (!%p615_p2)   ;;  %v8787_v30 = vld [vmem:[%s10706_s18 + $0x28] sm:$0xff] (!%p615_p2)  }
  0x14   : > { %s10714_s30 = smov (!%p675_p3, %s6732_s30), 1  ;;  %v8788_v31 = vld [vmem:[%s10706_s18 + $0x30] sm:$0xff]   ;;  %v8789_v32 = vld [vmem:[%s10706_s18 + $0x38] sm:$0xff]   ;;  %v8790_v33 = vld [vmem:[%s10706_s18 + $0x40] sm:$0xff]  }
  0x15   : > { %s7319_s23 = sshll.u32 %s10714_s30, 7  ;;  %v8791_v34 = vld [vmem:[%s10706_s18 + $0x48] sm:$0xff]   ;;  %v8792_v35 = vld [vmem:[%s10706_s18 + $0x50] sm:$0xff]   ;;  %v8793_v36 = vld [vmem:[%s10706_s18 + $0x58] sm:$0xff]  }
  0x16   : > { %s9142_s6 = scalar_lea.vmem %s10707_s24, %s7319_s23  ;;  %v8794_v37 = vld [vmem:[%s10706_s18 + $0x60] sm:$0xff]   ;;  %v8795_v38 = vld [vmem:[%s10706_s18 + $0x68] sm:$0xff]   ;;  %v8796_v39 = vld [vmem:[%s10706_s18 + $0x70] sm:$0xff]   ;;  %s9002_s24 = smov 32  }
  0x17   : > { %v685_v2 = vld [vmem:[%s9142_s6] sm:$0xff]  ;;  %v686_v3 = vld [vmem:[%s9142_s6 + $0x8] sm:$0xff]  ;;  %v687_v4 = vld [vmem:[%s9142_s6 + $0x10] sm:$0xff]  ;;  %s9005_s23 = smov 125  }
  0x18   : > { %v701_v5 = vpack.c.bf16 %v686_v3, %v685_v2  ;;  %v688_v6 = vld [vmem:[%s9142_s6 + $0x18] sm:$0xff]  ;;  %v689_v8 = vld [vmem:[%s9142_s6 + $0x20] sm:$0xff]  ;;  %v690_v9 = vld [vmem:[%s9142_s6 + $0x28] sm:$0xff] }
  0x19   : > { %v702_v7 = vpack.c.bf16 %v688_v6, %v687_v4  ;;  %v703_v10 = vpack.c.bf16 %v690_v9, %v689_v8  ;;  %v691_v11 = vld [vmem:[%s9142_s6 + $0x30] sm:$0xff]  ;;  %v692_v12 = vld [vmem:[%s9142_s6 + $0x38] sm:$0xff]  ;;  %v693_v14 = vld [vmem:[%s9142_s6 + $0x40] sm:$0xff] }
  0x1a   : > { %7734 = vmatprep.subr.bf16.mxu0 %v701_v5  ;;  %v704_v13 = vpack.c.bf16 %v692_v12, %v691_v11  ;;  %v694_v15 = vld [vmem:[%s9142_s6 + $0x48] sm:$0xff]  ;;  %v695_v17 = vld [vmem:[%s9142_s6 + $0x50] sm:$0xff]  ;;  %v696_v18 = vld [vmem:[%s9142_s6 + $0x58] sm:$0xff] }
  0x1b   : > { %7735 = vmatpush3.bf16.msra.mxu0 %v701_v5  ;;  %v705_v16 = vpack.c.bf16 %v694_v15, %v693_v14  ;;  %v706_v19 = vpack.c.bf16 %v696_v18, %v695_v17  ;;  %v697_v20 = vld [vmem:[%s9142_s6 + $0x60] sm:$0xff]  ;;  %v698_v21 = vld [vmem:[%s9142_s6 + $0x68] sm:$0xff]  ;;  %v699_v23 = vld [vmem:[%s9142_s6 + $0x70] sm:$0xff] }
  0x1c   : > { %7736 = vmatprep.subr.bf16.mxu0 %v702_v7  ;;  %v707_v22 = vpack.c.bf16 %v698_v21, %v697_v20  ;;  %v700_v24 = vld [vmem:[%s9142_s6 + $0x78] sm:$0xff]  ;;  %v8798_v41 = vld [vmem:[%s10706_s18 + $0x80] sm:$0xff]   ;;  %v8799_v42 = vld [vmem:[%s10706_s18 + $0x88] sm:$0xff]  }
  0x1d   : > { %v708_v25 = vpack.c.bf16 %v700_v24, %v699_v23  ;;  %v8797_v40 = vld [vmem:[%s10706_s18 + $0x78] sm:$0xff]   ;;  %v8800_v43 = vld [vmem:[%s10706_s18 + $0x90] sm:$0xff]   ;;  %v8802_v45 = vld [vmem:[%s10706_s18 + $0xa0] sm:$0xff]  }
  0x1e   : > { %v8801_v44 = vld [vmem:[%s10706_s18 + $0x98] sm:$0xff]   ;;  %v8803_v46 = vld [vmem:[%s10706_s18 + $0xa8] sm:$0xff]   ;;  %v8804_v47 = vld [vmem:[%s10706_s18 + $0xb0] sm:$0xff]  }
  0x1f   : > { %7737 = vmatpush3.bf16.msra.mxu0 %v702_v7  ;;  %v8805_v48 = vld [vmem:[%s10706_s18 + $0xb8] sm:$0xff]   ;;  %v8806_v49 = vld [vmem:[%s10706_s18 + $0xc0] sm:$0xff]   ;;  %v8807_v50 = vld [vmem:[%s10706_s18 + $0xc8] sm:$0xff]  }
  0x20   : > { %7738 = vmatprep.subr.bf16.mxu0 %v703_v10  ;;  %v8808_v51 = vld [vmem:[%s10706_s18 + $0xd0] sm:$0xff]   ;;  %v8809_v52 = vld [vmem:[%s10706_s18 + $0xd8] sm:$0xff]   ;;  %v6768_v53 = vld [vmem:[%s10708_s3 + $0x4] sm:$0x7] }
  0x21   : > { %v1245_v55 = vsel %vm1243_vm0, %v6768_v53, 0  ;;  %v6791_v62 = vld [vmem:[%s10708_s3 + $0xc] sm:$0x7] }
  0x22   : > { %7807 = vmatpush3.bf16.msra.mxu1 %v1245_v55  ;;  %v9270_v0 = vsel %vm1243_vm0, %v6791_v62, 0 }
  0x23   : > { %7739 = vmatpush3.bf16.msra.mxu0 %v703_v10  ;;  %7836 = vmatprep.subr.bf16.mxu1 %v8997_v54 }
  0x24   : > { %7740 = vmatprep.subr.bf16.mxu0 %v704_v13 }
  0x27   : > { %7741 = vmatpush3.bf16.msra.mxu0 %v704_v13  ;;  %v1218_v13 = vld [vmem:[%s10708_s3] sm:$0x7] }
  0x28   : > { %7742 = vmatprep.subr.bf16.mxu0 %v705_v16  ;;  %v1358_v18 = vsel %vm1243_vm0, %v1218_v13, 0  ;;  %v6783_v13 = vld [vmem:[%s10708_s3 + $0x8] sm:$0x7] }
  0x2b   : > { %7743 = vmatpush3.bf16.msra.mxu0 %v705_v16 }
  0x2c   : > { %7744 = vmatprep.subr.bf16.mxu0 %v706_v19 }
  0x2f   : > { %7745 = vmatpush3.bf16.msra.mxu0 %v706_v19 }
  0x30   : > { %7746 = vmatprep.subr.bf16.mxu0 %v707_v22 }
  0x33   : > { %7747 = vmatpush3.bf16.msra.mxu0 %v707_v22 }
  0x34   : > { %7748 = vmatprep.subr.bf16.mxu0 %v708_v25 }
  0x37   : > { %7749 = vmatpush3.bf16.msra.mxu0 %v708_v25 }
  0x38   : > { %7896 = vmatprep.subr.bf16.mxu0 %v8997_v54 }
  0x3a   : > { %7751 = vmatmul.mubr.bf16.vlgmr.msra.gmra.mrb[0].mxu0 %v8783_v26 }
  0x3b   : > { %7754 = vmatprep.mubr.bf16.mxu0 %v8784_v27  ;;  %7897 = vmatpush3.bf16.msra.mxu0 %v9270_v0 }
  0x42   : > { %7755 = vmatmul.mubr.bf16.gmra.mrb[4].mxu0 %v8785_v28 }
  0x43   : > { %7758 = vmatprep.mubr.bf16.mxu0 %v8786_v29 }
  0x4a   : > { %7759 = vmatmul.mubr.bf16.gmra.mrb[8].mxu0 %v8787_v30 }
  0x4b   : > { %7762 = vmatprep.mubr.bf16.mxu0 %v8788_v31 }
  0x52   : > { %7763 = vmatmul.mubr.bf16.gmra.mrb[12].mxu0 %v8789_v32 }
  0x53   : > { %7766 = vmatprep.mubr.bf16.mxu0 %v8790_v33 }
  0x5a   : > { %7767 = vmatmul.mubr.bf16.gmra.mrb[16].mxu0 %v8791_v34 }
  0x5b   : > { %7770 = vmatprep.mubr.bf16.mxu0 %v8792_v35 }
  0x62   : > { %7771 = vmatmul.mubr.bf16.gmra.mrb[20].mxu0 %v8793_v36 }
  0x63   : > { %7774 = vmatprep.mubr.bf16.mxu0 %v8794_v37 }
  0x6a   : > { %7775 = vmatmul.mubr.bf16.gmra.mrb[24].mxu0 %v8795_v38 }
  0x6b   : > { %7778 = vmatprep.mubr.bf16.mxu0 %v8796_v39 }
  0x72   : > { %7779 = vmatmul.mubr.bf16.gmra.mrb[28].mxu0 %v8797_v40 }
  0x73   : > { %7782 = vmatprep.mubr.bf16.mxu0 %v8798_v41 }
  0x7a   : > { %7783 = vmatmul.mubr.bf16.gmra.mrb[32].mxu0 %v8799_v42 }
  0x7b   : > { %7786 = vmatprep.mubr.bf16.mxu0 %v8800_v43 }
  0x82   : > { %7787 = vmatmul.mubr.bf16.gmra.mrb[36].mxu0 %v8801_v44 }
  0x83   : > { %7790 = vmatprep.mubr.bf16.mxu0 %v8802_v45 }
  0x8a   : > { %7791 = vmatmul.mubr.bf16.gmra.mrb[40].mxu0 %v8803_v46 }
  0x8b   : > { %7794 = vmatprep.mubr.bf16.mxu0 %v8804_v47 }
  0x92   : > { %7795 = vmatmul.mubr.bf16.gmra.mrb[44].mxu0 %v8805_v48 }
  0x93   : > { %7798 = vmatprep.mubr.bf16.mxu0 %v8806_v49 }
  0x9a   : > { %7799 = vmatmul.mubr.bf16.gmra.mrb[48].mxu0 %v8807_v50 }
  0x9b   : > { %7802 = vmatprep.mubr.bf16.mxu0 %v8808_v51 }
  0xa2   : > { %7803 = vmatmul.mubr.bf16.gmra.mrb[52].mxu0 %v8809_v52 }
  0xa3   : > { %7898 = vmatprep.mubr.msk.bf16.mxu0 %vm8998_vm1, %v8997_v54 }
 0x10d   : > { %v9252_v56 = vpop.f32.mrb[0].mxu0 }
 0x10e   : > { %v9254_v57 = vpop.f32.mrb[1].mxu0 }
 0x10f   : > { %v9256_v58 = vpop.f32.mrb[2].mxu0 }
 0x110   : > { %v1191_v59 = vpack.c.bf16 %v9256_v58, %v9252_v56  ;;  %v9260_v60 = vpop.f32.mrb[3].mxu0 }
 0x111   : > { %v1190_v61 = vpack.c.bf16 %v9260_v60, %v9254_v57 }
 0x115   : > { %v9267_v63 = vpop.f32.mrb[4].mxu0 }
 0x116   : > { %v9272_v1 = vpop.f32.mrb[5].mxu0 }
 0x117   : > { %v9275_v2 = vpop.f32.mrb[6].mxu0 }
 0x118   : > { %v1193_v3 = vpack.c.bf16 %v9275_v2, %v9267_v63  ;;  %v9279_v4 = vpop.f32.mrb[7].mxu0 }
 0x119   : > { %v1192_v5 = vpack.c.bf16 %v9279_v4, %v9272_v1 }
 0x11d   : > { %v9283_v6 = vpop.f32.mrb[8].mxu0 }
 0x11e   : > { %v9285_v7 = vpop.f32.mrb[9].mxu0 }
 0x11f   : > { %v9287_v8 = vpop.f32.mrb[10].mxu0 }
 0x120   : > { %v1195_v9 = vpack.c.bf16 %v9287_v8, %v9283_v6  ;;  %v9291_v10 = vpop.f32.mrb[11].mxu0 }
 0x121   : > { %v1194_v11 = vpack.c.bf16 %v9291_v10, %v9285_v7 }
 0x125   : > { %v7764_v12 = vpop.f32.mrb[12].mxu0 }
 0x126   : > { %v9298_v14 = vpop.f32.mrb[13].mxu0 }
 0x127   : > { %v7765_v15 = vpop.f32.mrb[14].mxu0 }
 0x128   : > { %v1197_v16 = vpack.c.bf16 %v7765_v15, %v7764_v12  ;;  %v9300_v17 = vpop.f32.mrb[15].mxu0 }
 0x129   : > { %v1196_v19 = vpack.c.bf16 %v9300_v17, %v9298_v14 }
 0x12a   : > { %7809 = vmatmul.mubr.msk.bf16.vlgmr.msra.gmra.mrb[0].mxu1 %vm1221_vm2, %v1197_v16 }
 0x12b   : > { %7812 = vmatprep.mubr.msk.bf16.mxu1 %vm8998_vm1, %v8997_v54  ;;  %7837 = vmatpush3.bf16.msra.mxu1 %v1358_v18 }
 0x12c   : > { %7866 = vmatprep.subr.bf16.mxu1 %v8997_v54 }
 0x12d   : > { %v7768_v20 = vpop.f32.mrb[16].mxu0 }
 0x12e   : > { %v1031_v21 = vpop.f32.mrb[17].mxu0 }
 0x12f   : > { %v7769_v22 = vpop.f32.mrb[18].mxu0 }
 0x130   : > { %v1199_v23 = vpack.c.bf16 %v7769_v22, %v7768_v20  ;;  %v1034_v24 = vpop.f32.mrb[19].mxu0 }
 0x131   : > { %v1198_v25 = vpack.c.bf16 %v1034_v24, %v1031_v21  ;;  %v1473_v21 = vsel %vm1243_vm0, %v6783_v13, 0 }
 0x133   : > { %7813 = vmatmul.mubr.msk.bf16.gmra.mrb[4].mxu1 %vm1221_vm2, %v1198_v25 }
 0x134   : > { %7816 = vmatprep.mubr.msk.bf16.mxu1 %vm8998_vm1, %v8997_v54 }
 0x135   : > { %v7772_v26 = vpop.f32.mrb[20].mxu0 }
 0x136   : > { %v1047_v27 = vpop.f32.mrb[21].mxu0 }
 0x137   : > { %v7773_v28 = vpop.f32.mrb[22].mxu0 }
 0x138   : > { %v1201_v29 = vpack.c.bf16 %v7773_v28, %v7772_v26  ;;  %v1050_v30 = vpop.f32.mrb[23].mxu0 }
 0x139   : > { %v1200_v31 = vpack.c.bf16 %v1050_v30, %v1047_v27 }
 0x13b   : > { %7817 = vmatmul.mubr.msk.bf16.gmra.mrb[8].mxu1 %vm1221_vm2, %v1199_v23 }
 0x13c   : > { %7820 = vmatprep.mubr.msk.bf16.mxu1 %vm8998_vm1, %v8997_v54 }
 0x13d   : > { %v7776_v32 = vpop.f32.mrb[24].mxu0 }
 0x13e   : > { %v1063_v33 = vpop.f32.mrb[25].mxu0 }
 0x13f   : > { %v7777_v34 = vpop.f32.mrb[26].mxu0 }
 0x140   : > { %v1203_v35 = vpack.c.bf16 %v7777_v34, %v7776_v32  ;;  %v1066_v36 = vpop.f32.mrb[27].mxu0 }
 0x141   : > { %v1202_v37 = vpack.c.bf16 %v1066_v36, %v1063_v33 }
 0x143   : > { %7821 = vmatmul.mubr.msk.bf16.gmra.mrb[12].mxu1 %vm1221_vm2, %v1200_v31 }
 0x144   : > { %7824 = vmatprep.mubr.msk.bf16.mxu1 %vm8998_vm1, %v8997_v54 }
 0x145   : > { %v9318_v38 = vpop.f32.mrb[28].mxu0 }
 0x146   : > { %v9320_v39 = vpop.f32.mrb[29].mxu0 }
 0x147   : > { %v9322_v40 = vpop.f32.mrb[30].mxu0 }
 0x148   : > { %v1205_v41 = vpack.c.bf16 %v9322_v40, %v9318_v38  ;;  %v9326_v42 = vpop.f32.mrb[31].mxu0 }
 0x149   : > { %v1204_v43 = vpack.c.bf16 %v9326_v42, %v9320_v39 }
 0x14b   : > { %7825 = vmatmul.mubr.msk.bf16.gmra.mrb[16].mxu1 %vm1221_vm2, %v1201_v29 }
 0x14c   : > { %7828 = vmatprep.mubr.msk.bf16.mxu1 %vm8998_vm1, %v8997_v54 }
 0x14d   : > { %v9333_v44 = vpop.f32.mrb[32].mxu0 }
 0x14e   : > { %v9335_v45 = vpop.f32.mrb[33].mxu0 }
 0x14f   : > { %v9337_v46 = vpop.f32.mrb[34].mxu0 }
 0x150   : > { %v1207_v47 = vpack.c.bf16 %v9337_v46, %v9333_v44  ;;  %v1098_v48 = vpop.f32.mrb[35].mxu0 }
 0x151   : > { %v1206_v49 = vpack.c.bf16 %v1098_v48, %v9335_v45 }
 0x153   : > { %7829 = vmatmul.mubr.msk.bf16.gmra.mrb[20].mxu1 %vm1221_vm2, %v1202_v37 }
 0x154   : > { %7832 = vmatprep.mubr.msk.bf16.mxu1 %vm8998_vm1, %v8997_v54 }
 0x155   : > { %v9345_v50 = vpop.f32.mrb[36].mxu0 }
 0x156   : > { %v1111_v51 = vpop.f32.mrb[37].mxu0 }
 0x157   : > { %v7789_v52 = vpop.f32.mrb[38].mxu0 }
 0x158   : > { %v1209_v53 = vpack.c.bf16 %v7789_v52, %v9345_v50  ;;  %v1114_v55 = vpop.f32.mrb[39].mxu0 }
 0x159   : > { %v1208_v62 = vpack.c.bf16 %v1114_v55, %v1111_v51 }
 0x15b   : > { %7833 = vmatmul.mubr.msk.bf16.gmra.mrb[24].mxu1 %vm1221_vm2, %v1203_v35 }
 0x15c   : > { %7838 = vmatprep.mubr.msk.bf16.mxu1 %vm8998_vm1, %v8997_v54 }
 0x15d   : > { %v7792_v12 = vpop.f32.mrb[40].mxu0 }
 0x15e   : > { %v1127_v15 = vpop.f32.mrb[41].mxu0 }
 0x15f   : > { %v7793_v16 = vpop.f32.mrb[42].mxu0 }
 0x160   : > { %v1211_v18 = vpack.c.bf16 %v7793_v16, %v7792_v12  ;;  %v1130_v20 = vpop.f32.mrb[43].mxu0 }
 0x161   : > { %v1210_v22 = vpack.c.bf16 %v1130_v20, %v1127_v15 }
 0x162   : > { %7899 = vmatmul.mubr.msk.bf16.vlgmr.msra.gmra.mrb[56].mxu0 %vm1221_vm2, %v1211_v18 }
 0x163   : > { %7839 = vmatmul.mubr.msk.bf16.vlgmr.msra.gmra.mrb[28].mxu1 %vm1221_vm2, %v1190_v61 }
 0x164   : > { %7842 = vmatprep.mubr.msk.bf16.mxu1 %vm8998_vm1, %v8997_v54  ;;  %7867 = vmatpush3.bf16.msra.mxu1 %v1473_v21 }
 0x165   : > { %v7796_v23 = vpop.f32.mrb[44].mxu0  ;;  %8654 = vmatprep.subr.bf16.mxu1 %v8997_v54 }
 0x166   : > { %v1143_v24 = vpop.f32.mrb[45].mxu0 }
 0x167   : > { %v7797_v25 = vpop.f32.mrb[46].mxu0 }
 0x168   : > { %v1213_v26 = vpack.c.bf16 %v7797_v25, %v7796_v23  ;;  %v1146_v27 = vpop.f32.mrb[47].mxu0 }
 0x169   : > { %v1212_v28 = vpack.c.bf16 %v1146_v27, %v1143_v24 }
 0x16b   : > { %7843 = vmatmul.mubr.msk.bf16.gmra.mrb[32].mxu1 %vm1221_vm2, %v1191_v59 }
 0x16c   : > { %7846 = vmatprep.mubr.msk.bf16.mxu1 %vm8998_vm1, %v8997_v54 }
 0x16d   : > { %v7800_v57 = vpop.f32.mrb[48].mxu0 }
 0x16e   : > { %v1159_v60 = vpop.f32.mrb[49].mxu0 }
 0x16f   : > { %v7801_v61 = vpop.f32.mrb[50].mxu0 }
 0x170   : > { %v1215_v29 = vpack.c.bf16 %v7801_v61, %v7800_v57  ;;  %v1162_v30 = vpop.f32.mrb[51].mxu0 }
 0x171   : > { %v1214_v31 = vpack.c.bf16 %v1162_v30, %v1159_v60 }
 0x173   : > { %7847 = vmatmul.mubr.msk.bf16.gmra.mrb[36].mxu1 %vm1221_vm2, %v1192_v5 }
 0x174   : > { %7850 = vmatprep.mubr.msk.bf16.mxu1 %vm8998_vm1, %v8997_v54 }
 0x175   : > { %v7804_v56 = vpop.f32.mrb[52].mxu0 }
 0x176   : > { %v1175_v58 = vpop.f32.mrb[53].mxu0 }
 0x177   : > { %v7805_v59 = vpop.f32.mrb[54].mxu0 }
 0x178   : > { %v1217_v32 = vpack.c.bf16 %v7805_v59, %v7804_v56  ;;  %v1178_v33 = vpop.f32.mrb[55].mxu0 }
 0x179   : > { %v1216_v34 = vpack.c.bf16 %v1178_v33, %v1175_v58 }
 0x17b   : > { %7851 = vmatmul.mubr.msk.bf16.gmra.mrb[40].mxu1 %vm1221_vm2, %v1193_v3 }
 0x17c   : > { %7854 = vmatprep.mubr.msk.bf16.mxu1 %vm8998_vm1, %v8997_v54 }
 0x183   : > { %7855 = vmatmul.mubr.msk.bf16.gmra.mrb[44].mxu1 %vm1221_vm2, %v1194_v11 }
 0x184   : > { %7858 = vmatprep.mubr.msk.bf16.mxu1 %vm8998_vm1, %v8997_v54 }
 0x18b   : > { %7859 = vmatmul.mubr.msk.bf16.gmra.mrb[48].mxu1 %vm1221_vm2, %v1195_v9 }
 0x18c   : > { %7862 = vmatprep.mubr.msk.bf16.mxu1 %vm8998_vm1, %v8997_v54 }
 0x193   : > { %7863 = vmatmul.mubr.msk.bf16.gmra.mrb[52].mxu1 %vm1221_vm2, %v1196_v19 }
 0x194   : > { %7868 = vmatprep.mubr.msk.bf16.mxu1 %vm8998_vm1, %v8997_v54 }
 0x19b   : > { %7869 = vmatmul.mubr.msk.bf16.vlgmr.msra.gmra.mrb[56].mxu1 %vm1221_vm2, %v1204_v43 }
 0x19c   : > { %7872 = vmatprep.mubr.msk.bf16.mxu1 %vm8998_vm1, %v8997_v54  ;;  %8655 = vmatpush3.bf16.msra.mxu1 %v9270_v0 }
 0x1a3   : > { %7873 = vmatmul.mubr.msk.bf16.gmra.mrb[60].mxu1 %vm1221_vm2, %v1205_v41 }
 0x1a4   : > { %7876 = vmatprep.mubr.msk.bf16.mxu1 %vm8998_vm1, %v8997_v54 }
 0x1ab   : > { %7877 = vmatmul.mubr.msk.bf16.gmra.mrb[64].mxu1 %vm1221_vm2, %v1206_v49 }
 0x1ac   : > { %7880 = vmatprep.mubr.msk.bf16.mxu1 %vm8998_vm1, %v8997_v54 }
 0x1b3   : > { %7881 = vmatmul.mubr.msk.bf16.gmra.mrb[68].mxu1 %vm1221_vm2, %v1207_v47 }
 0x1b4   : > { %7884 = vmatprep.mubr.msk.bf16.mxu1 %vm8998_vm1, %v8997_v54 }
 0x1bb   : > { %7885 = vmatmul.mubr.msk.bf16.gmra.mrb[72].mxu1 %vm1221_vm2, %v1208_v62 }
 0x1bc   : > { %7888 = vmatprep.mubr.msk.bf16.mxu1 %vm8998_vm1, %v8997_v54 }
 0x1c3   : > { %7889 = vmatmul.mubr.msk.bf16.gmra.mrb[76].mxu1 %vm1221_vm2, %v1209_v53 }
 0x1c4   : > { %7892 = vmatprep.mubr.msk.bf16.mxu1 %vm8998_vm1, %v8997_v54 }
 0x1cb   : > { %7893 = vmatmul.mubr.msk.bf16.gmra.mrb[80].mxu1 %vm1221_vm2, %v1210_v22 }
 0x1cc   : > { %7902 = vmatprep.mubr.msk.bf16.mxu1 %vm8998_vm1, %v8997_v54 }
 0x1d3   : > { %7903 = vmatmul.mubr.msk.bf16.vlgmr.msra.gmra.mrb[84].mxu1 %vm1221_vm2, %v1212_v28 }
 0x1d4   : > { %7906 = vmatprep.mubr.msk.bf16.mxu1 %vm8998_vm1, %v8997_v54 }
 0x1db   : > { %7907 = vmatmul.mubr.msk.bf16.gmra.mrb[88].mxu1 %vm1221_vm2, %v1213_v26 }
 0x1dc   : > { %7910 = vmatprep.mubr.msk.bf16.mxu1 %vm8998_vm1, %v8997_v54 }
 0x1e3   : > { %7911 = vmatmul.mubr.msk.bf16.gmra.mrb[92].mxu1 %vm1221_vm2, %v1214_v31 }
 0x1e4   : > { %7914 = vmatprep.mubr.msk.bf16.mxu1 %vm8998_vm1, %v8997_v54 }
 0x1eb   : > { %7915 = vmatmul.mubr.msk.bf16.gmra.mrb[96].mxu1 %vm1221_vm2, %v1215_v29 }
 0x1ec   : > { %7918 = vmatprep.mubr.msk.bf16.mxu1 %vm8998_vm1, %v8997_v54 }
 0x1f3   : > { %7919 = vmatmul.mubr.msk.bf16.gmra.mrb[100].mxu1 %vm1221_vm2, %v1216_v34  ;;  %v8810_v34 = vld [vmem:[%s10709_s25] sm:$0xff]  }
 0x1f4   : > { %7922 = vmatprep.mubr.msk.bf16.mxu1 %vm8998_vm1, %v8997_v54 }
 0x1fb   : > { %7923 = vmatmul.mubr.msk.bf16.gmra.mrb[104].mxu1 %vm1221_vm2, %v1217_v32 }
 0x1fc   : > { %7940 = vmatprep.mubr.msk.bf16.mxu1 %vm1903_vm3, %v8810_v34 }
 0x1fd   : > { %v1281_v63 = vpop.f32.mrb[0].mxu1 }
 0x1fe   : > { %v7810_v0 = vpop.f32.mrb[1].mxu1 }
 0x1ff   : > { %v1284_v1 = vpop.f32.mrb[2].mxu1 }
 0x200   : > { %v7811_v2 = vpop.f32.mrb[3].mxu1 }
 0x206   : > { %v1289_v3 = vpop.f32.mrb[4].mxu1 }
 0x207   : > { %v7814_v4 = vpop.f32.mrb[5].mxu1 }
 0x208   : > { %v1292_v5 = vpop.f32.mrb[6].mxu1 }
 0x209   : > { %v7815_v6 = vpop.f32.mrb[7].mxu1 }
 0x20e   : > { %v1297_v7 = vpop.f32.mrb[8].mxu1 }
 0x20f   : > { %v7818_v8 = vpop.f32.mrb[9].mxu1 }
 0x210   : > { %v1300_v9 = vpop.f32.mrb[10].mxu1 }
 0x211   : > { %v7819_v10 = vpop.f32.mrb[11].mxu1 }
 0x216   : > { %v1305_v11 = vpop.f32.mrb[12].mxu1 }
 0x217   : > { %v7822_v14 = vpop.f32.mrb[13].mxu1 }
 0x218   : > { %v1308_v17 = vpop.f32.mrb[14].mxu1 }
 0x219   : > { %v7823_v19 = vpop.f32.mrb[15].mxu1 }
 0x21e   : > { %v1313_v35 = vpop.f32.mrb[16].mxu1 }
 0x21f   : > { %v7826_v36 = vpop.f32.mrb[17].mxu1 }
 0x220   : > { %v1316_v37 = vpop.f32.mrb[18].mxu1 }
 0x221   : > { %v7827_v38 = vpop.f32.mrb[19].mxu1 }
 0x226   : > { %v1321_v39 = vpop.f32.mrb[20].mxu1 }
 0x227   : > { %v7830_v40 = vpop.f32.mrb[21].mxu1 }
 0x228   : > { %v1324_v41 = vpop.f32.mrb[22].mxu1 }
 0x229   : > { %v7831_v42 = vpop.f32.mrb[23].mxu1 }
 0x22e   : > { %v1329_v43 = vpop.f32.mrb[24].mxu1 }
 0x22f   : > { %v7834_v44 = vpop.f32.mrb[25].mxu1 }
 0x230   : > { %v1332_v45 = vpop.f32.mrb[26].mxu1 }
 0x231   : > { %v7835_v46 = vpop.f32.mrb[27].mxu1 }
 0x235   : > { %v1638_v47 = vpop.f32.mrb[56].mxu0 }
 0x236   : > { %v1394_v48 = vpop.f32.mrb[28].mxu1  ;;  %v7900_v49 = vpop.f32.mrb[57].mxu0 }
 0x237   : > { %v1395_v50 = vadd.f32 %v1394_v48, %v1281_v63  ;;  %v7840_v51 = vpop.f32.mrb[29].mxu1  ;;  %v1641_v52 = vpop.f32.mrb[58].mxu0 }
 0x238   : > { %v1397_v53 = vpop.f32.mrb[30].mxu1  ;;  %v7901_v55 = vpop.f32.mrb[59].mxu0 }
 0x239   : > { %v1398_v62 = vadd.f32 %v1397_v53, %v1284_v1  ;;  %v7841_v12 = vpop.f32.mrb[31].mxu1 }
 0x23e   : > { %v1402_v13 = vpop.f32.mrb[32].mxu1 }
 0x23f   : > { %v7844_v15 = vpop.f32.mrb[33].mxu1  ;;  %v1403_v16 = vadd.f32 %v1402_v13, %v1289_v3 }
 0x240   : > { %v1405_v18 = vpop.f32.mrb[34].mxu1 }
 0x241   : > { %v7845_v20 = vpop.f32.mrb[35].mxu1  ;;  %v1406_v21 = vadd.f32 %v1405_v18, %v1292_v5 }
 0x246   : > { %v1410_v22 = vpop.f32.mrb[36].mxu1 }
 0x247   : > { %v7848_v23 = vpop.f32.mrb[37].mxu1  ;;  %v1411_v24 = vadd.f32 %v1410_v22, %v1297_v7 }
 0x248   : > { %v1413_v25 = vpop.f32.mrb[38].mxu1 }
 0x249   : > { %v7849_v26 = vpop.f32.mrb[39].mxu1  ;;  %v1414_v27 = vadd.f32 %v1413_v25, %v1300_v9 }
 0x24e   : > { %v1418_v28 = vpop.f32.mrb[40].mxu1 }
 0x24f   : > { %v7852_v57 = vpop.f32.mrb[41].mxu1  ;;  %v1419_v60 = vadd.f32 %v1418_v28, %v1305_v11 }
 0x250   : > { %v1421_v61 = vpop.f32.mrb[42].mxu1 }
 0x251   : > { %v7853_v29 = vpop.f32.mrb[43].mxu1  ;;  %v1422_v30 = vadd.f32 %v1421_v61, %v1308_v17 }
 0x256   : > { %v1426_v31 = vpop.f32.mrb[44].mxu1 }
 0x257   : > { %v7856_v56 = vpop.f32.mrb[45].mxu1  ;;  %v1427_v58 = vadd.f32 %v1426_v31, %v1313_v35  ;;  %v9450_v35 = vld [vmem:[%s10710_s27] ss:$0 sm:$0xff]  ;;  %s9000_s27 = smov 64  }
 0x258   : > { %v1429_v59 = vpop.f32.mrb[46].mxu1 }
 0x259   : > { %v7857_v32 = vpop.f32.mrb[47].mxu1  ;;  %v1430_v33 = vadd.f32 %v1429_v59, %v1316_v37 }
 0x25e   : > { %v1434_v63 = vpop.f32.mrb[48].mxu1 }
 0x25f   : > { %v7860_v0 = vpop.f32.mrb[49].mxu1  ;;  %v1435_v1 = vadd.f32 %v1434_v63, %v1321_v39 }
 0x260   : > { %v1437_v2 = vpop.f32.mrb[50].mxu1 }
 0x261   : > { %v7861_v3 = vpop.f32.mrb[51].mxu1  ;;  %v1438_v4 = vadd.f32 %v1437_v2, %v1324_v41 }
 0x266   : > { %v1442_v5 = vpop.f32.mrb[52].mxu1 }
 0x267   : > { %v7864_v6 = vpop.f32.mrb[53].mxu1  ;;  %v1443_v7 = vadd.f32 %v1442_v5, %v1329_v43 }
 0x268   : > { %v1445_v8 = vpop.f32.mrb[54].mxu1 }
 0x269   : > { %v7865_v9 = vpop.f32.mrb[55].mxu1  ;;  %v1446_v10 = vadd.f32 %v1445_v8, %v1332_v45 }
 0x26e   : > { %v1509_v11 = vpop.f32.mrb[56].mxu1 }
 0x26f   : > { %v7870_v14 = vpop.f32.mrb[57].mxu1  ;;  %v1564_v17 = vadd.f32 %v1509_v11, %v1395_v50 }
 0x270   : > { %v1512_v19 = vpop.f32.mrb[58].mxu1 }
 0x271   : > { %v1693_v36 = vadd.f32 %v1638_v47, %v1564_v17  ;;  %v7871_v37 = vpop.f32.mrb[59].mxu1  ;;  %v1565_v38 = vadd.f32 %v1512_v19, %v1398_v62 }
 0x273   : > { %v1714_v39 = vadd.f32 %v9450_v35, %v1693_v36  ;;  %v1694_v40 = vadd.f32 %v1641_v52, %v1565_v38 }
 0x275   : > { %v1715_v41 = vadd.f32 %v9450_v35, %v1694_v40  ;;  %v1728_v43 = vmax.f32 %v1714_v39, 0.0 }
 0x276   : > { %v1517_v42 = vpop.f32.mrb[60].mxu1 }
 0x277   : > { %v1729_v44 = vmax.f32 %v1715_v41, 0.0  ;;  %v1566_v45 = vadd.f32 %v1517_v42, %v1403_v16  ;;  %v7874_v46 = vpop.f32.mrb[61].mxu1 }
 0x278   : > { %v1520_v48 = vpop.f32.mrb[62].mxu1 }
 0x279   : > { %v1567_v49 = vadd.f32 %v1520_v48, %v1406_v21  ;;  %v7875_v50 = vpop.f32.mrb[63].mxu1  ;;  %v1742_v51 = vpack.c.bf16 %v1729_v44, %v1728_v43 }
 0x27b   : > { %7926 = vmatprep.subr.bf16.mxu1 %v1742_v51 }
 0x27c   : > { %7927 = vmatpush3.bf16.msra.mxu1 %v1742_v51 }
 0x27e   : > { %v1525_v53 = vpop.f32.mrb[64].mxu1 }
 0x27f   : > { %v1568_v47 = vadd.f32 %v1525_v53, %v1411_v24  ;;  %v7878_v55 = vpop.f32.mrb[65].mxu1 }
 0x280   : > { %v1528_v62 = vpop.f32.mrb[66].mxu1 }
 0x281   : > { %v1569_v12 = vadd.f32 %v1528_v62, %v1414_v27  ;;  %v7879_v13 = vpop.f32.mrb[67].mxu1 }
 0x286   : > { %v1533_v52 = vpop.f32.mrb[68].mxu1 }
 0x287   : > { %v1570_v15 = vadd.f32 %v1533_v52, %v1419_v60  ;;  %v7882_v18 = vpop.f32.mrb[69].mxu1 }
 0x288   : > { %v1536_v20 = vpop.f32.mrb[70].mxu1 }
 0x289   : > { %v1571_v22 = vadd.f32 %v1536_v20, %v1422_v30  ;;  %v7883_v23 = vpop.f32.mrb[71].mxu1 }
 0x28e   : > { %v1541_v16 = vpop.f32.mrb[72].mxu1 }
 0x28f   : > { %v1572_v25 = vadd.f32 %v1541_v16, %v1427_v58  ;;  %v7886_v26 = vpop.f32.mrb[73].mxu1 }
 0x290   : > { %v1544_v21 = vpop.f32.mrb[74].mxu1 }
 0x291   : > { %v1573_v28 = vadd.f32 %v1544_v21, %v1430_v33  ;;  %v7887_v57 = vpop.f32.mrb[75].mxu1 }
 0x296   : > { %v1549_v61 = vpop.f32.mrb[76].mxu1 }
 0x297   : > { %v1574_v29 = vadd.f32 %v1549_v61, %v1435_v1  ;;  %v7890_v31 = vpop.f32.mrb[77].mxu1 }
 0x298   : > { %v1552_v24 = vpop.f32.mrb[78].mxu1 }
 0x299   : > { %v9454_v56 = vadd.f32 %v1552_v24, %v1438_v4  ;;  %v7891_v27 = vpop.f32.mrb[79].mxu1 }
 0x29e   : > { %v1557_v59 = vpop.f32.mrb[80].mxu1 }
 0x29f   : > { %v9456_v32 = vadd.f32 %v1557_v59, %v1443_v7  ;;  %v7894_v60 = vpop.f32.mrb[81].mxu1 }
 0x2a0   : > { %v1560_v34 = vpop.f32.mrb[82].mxu1 }
 0x2a1   : > { %v9458_v30 = vadd.f32 %v1560_v34, %v1446_v10  ;;  %v7895_v63 = vpop.f32.mrb[83].mxu1 }
 0x2a6   : > { %v1646_v58 = vpop.f32.mrb[84].mxu1 }
 0x2a7   : > { %v1695_v0 = vadd.f32 %v1646_v58, %v1566_v45  ;;  %v7904_v2 = vpop.f32.mrb[85].mxu1 }
 0x2a8   : > { %v1649_v33 = vpop.f32.mrb[86].mxu1 }
 0x2a9   : > { %v1716_v3 = vadd.f32 %v9450_v35, %v1695_v0  ;;  %v1696_v1 = vadd.f32 %v1649_v33, %v1567_v49  ;;  %v7905_v5 = vpop.f32.mrb[87].mxu1 }
 0x2aa   : > { %v8812_v5 = vld [vmem:[%s10709_s25 + $0x10] sm:$0xff]  }
 0x2ab   : > { %v1717_v4 = vadd.f32 %v9450_v35, %v1696_v1  ;;  %v1730_v6 = vmax.f32 %v1716_v3, 0.0 }
 0x2ad   : > { %v1731_v8 = vmax.f32 %v1717_v4, 0.0  ;;  %v8815_v4 = vld [vmem:[%s10709_s25 + $0x28] sm:$0xff]  }
 0x2ae   : > { %v1654_v9 = vpop.f32.mrb[88].mxu1 }
 0x2af   : > { %v1697_v7 = vadd.f32 %v1654_v9, %v1568_v47  ;;  %v7908_v11 = vpop.f32.mrb[89].mxu1  ;;  %v1743_v14 = vpack.c.bf16 %v1731_v8, %v1730_v6  ;;  %v8816_v6 = vld [vmem:[%s10709_s25 + $0x30] sm:$0xff]   ;;  %v8817_v8 = vld [vmem:[%s10709_s25 + $0x38] sm:$0xff]   ;;  %v8818_v9 = vld [vmem:[%s10709_s25 + $0x40] sm:$0xff]  }
 0x2b0   : > { %v1657_v17 = vpop.f32.mrb[90].mxu1  ;;  %v8820_v11 = vld [vmem:[%s10709_s25 + $0x50] sm:$0xff]  }
 0x2b1   : > { %v1718_v10 = vadd.f32 %v9450_v35, %v1697_v7  ;;  %v1698_v19 = vadd.f32 %v1657_v17, %v1569_v12  ;;  %v7909_v36 = vpop.f32.mrb[91].mxu1  ;;  %7928 = vmatprep.subr.bf16.mxu1 %v1743_v14  ;;  %v8819_v7 = vld [vmem:[%s10709_s25 + $0x48] sm:$0xff]   ;;  %v8822_v17 = vld [vmem:[%s10709_s25 + $0x60] sm:$0xff]  }
 0x2b2   : > { %7929 = vmatpush3.bf16.msra.mxu1 %v1743_v14  ;;  %v8821_v14 = vld [vmem:[%s10709_s25 + $0x58] sm:$0xff]  }
 0x2b3   : > { %v1719_v37 = vadd.f32 %v9450_v35, %v1698_v19  ;;  %v1732_v38 = vmax.f32 %v1718_v10, 0.0  ;;  %v8823_v10 = vld [vmem:[%s10709_s25 + $0x68] sm:$0xff]   ;;  %v8824_v19 = vld [vmem:[%s10709_s25 + $0x70] sm:$0xff]   ;;  %v8825_v36 = vld [vmem:[%s10709_s25 + $0x78] sm:$0xff]  }
 0x2b5   : > { %v1733_v39 = vmax.f32 %v1719_v37, 0.0  ;;  %v8826_v37 = vld [vmem:[%s10709_s25 + $0x80] sm:$0xff]  }
 0x2b6   : > { %v1662_v40 = vpop.f32.mrb[92].mxu1 }
 0x2b7   : > { %v1699_v41 = vadd.f32 %v1662_v40, %v1570_v15  ;;  %v7912_v42 = vpop.f32.mrb[93].mxu1  ;;  %v1744_v43 = vpack.c.bf16 %v1733_v39, %v1732_v38  ;;  %v8827_v38 = vld [vmem:[%s10709_s25 + $0x88] sm:$0xff]   ;;  %v8828_v39 = vld [vmem:[%s10709_s25 + $0x90] sm:$0xff]   ;;  %v8829_v40 = vld [vmem:[%s10709_s25 + $0x98] sm:$0xff]  }
 0x2b8   : > { %v1665_v44 = vpop.f32.mrb[94].mxu1  ;;  %v8831_v42 = vld [vmem:[%s10709_s25 + $0xa8] sm:$0xff]  }
 0x2b9   : > { %v1720_v45 = vadd.f32 %v9450_v35, %v1699_v41  ;;  %v1700_v46 = vadd.f32 %v1665_v44, %v1571_v22  ;;  %v7913_v48 = vpop.f32.mrb[95].mxu1  ;;  %7930 = vmatprep.subr.bf16.mxu1 %v1744_v43  ;;  %v8830_v41 = vld [vmem:[%s10709_s25 + $0xa0] sm:$0xff]   ;;  %v8833_v44 = vld [vmem:[%s10711_s28 + $0x18] sm:$0xff]  }
 0x2ba   : > { %7931 = vmatpush3.bf16.msra.mxu1 %v1744_v43  ;;  %v8832_v43 = vld [vmem:[%s10711_s28 + $0x10] sm:$0xff]  }
 0x2bb   : > { %v1721_v49 = vadd.f32 %v9450_v35, %v1700_v46  ;;  %v1734_v50 = vmax.f32 %v1720_v45, 0.0  ;;  %7984 = vmatprep.subr.bf16.mxu0 %v8832_v43  ;;  %v8834_v45 = vld [vmem:[%s10711_s28] sm:$0xff]  }
 0x2bc   : > { %7985 = vmatpush3.bf16.msra.mxu0 %v8832_v43 }
 0x2bd   : > { %v1735_v51 = vmax.f32 %v1721_v49, 0.0  ;;  %7986 = vmatprep.subr.bf16.mxu0 %v8833_v44 }
 0x2be   : > { %v1670_v53 = vpop.f32.mrb[96].mxu1 }
 0x2bf   : > { %v1701_v47 = vadd.f32 %v1670_v53, %v1572_v25  ;;  %v7916_v55 = vpop.f32.mrb[97].mxu1  ;;  %v1745_v62 = vpack.c.bf16 %v1735_v51, %v1734_v50 }
 0x2c0   : > { %v1673_v12 = vpop.f32.mrb[98].mxu1  ;;  %7987 = vmatpush3.bf16.msra.mxu0 %v8833_v44 }
 0x2c1   : > { %v1722_v13 = vadd.f32 %v9450_v35, %v1701_v47  ;;  %v1702_v52 = vadd.f32 %v1673_v12, %v1573_v28  ;;  %v7917_v15 = vpop.f32.mrb[99].mxu1  ;;  %7932 = vmatprep.subr.bf16.mxu1 %v1745_v62  ;;  %8000 = vmatprep.subr.bf16.mxu0 %v8834_v45 }
 0x2c2   : > { %7933 = vmatpush3.bf16.msra.mxu1 %v1745_v62 }
 0x2c3   : > { %v1723_v18 = vadd.f32 %v9450_v35, %v1702_v52  ;;  %v1736_v20 = vmax.f32 %v1722_v13, 0.0 }
 0x2c5   : > { %v1737_v22 = vmax.f32 %v1723_v18, 0.0 }
 0x2c6   : > { %v1678_v23 = vpop.f32.mrb[100].mxu1 }
 0x2c7   : > { %v1703_v16 = vadd.f32 %v1678_v23, %v1574_v29  ;;  %v7920_v26 = vpop.f32.mrb[101].mxu1  ;;  %v1746_v21 = vpack.c.bf16 %v1737_v22, %v1736_v20 }
 0x2c8   : > { %v1681_v57 = vpop.f32.mrb[102].mxu1 }
 0x2c9   : > { %v1724_v25 = vadd.f32 %v9450_v35, %v1703_v16  ;;  %v1704_v61 = vadd.f32 %v1681_v57, %v9454_v56  ;;  %v7921_v31 = vpop.f32.mrb[103].mxu1  ;;  %7934 = vmatprep.subr.bf16.mxu1 %v1746_v21 }
 0x2ca   : > { %7935 = vmatpush3.bf16.msra.mxu1 %v1746_v21 }
 0x2cb   : > { %v1725_v28 = vadd.f32 %v9450_v35, %v1704_v61  ;;  %v1738_v24 = vmax.f32 %v1724_v25, 0.0 }
 0x2cd   : > { %v1739_v27 = vmax.f32 %v1725_v28, 0.0 }
 0x2ce   : > { %v1686_v59 = vpop.f32.mrb[104].mxu1 }
 0x2cf   : > { %v1705_v60 = vadd.f32 %v1686_v59, %v9456_v32  ;;  %v7924_v34 = vpop.f32.mrb[105].mxu1  ;;  %v1747_v63 = vpack.c.bf16 %v1739_v27, %v1738_v24  ;;  %v8811_v32 = vld [vmem:[%s10709_s25 + $0x8] sm:$0xff]  }
 0x2d0   : > { %v1689_v29 = vpop.f32.mrb[106].mxu1 }
 0x2d1   : > { %v1726_v58 = vadd.f32 %v9450_v35, %v1705_v60  ;;  %v1706_v0 = vadd.f32 %v1689_v29, %v9458_v30  ;;  %v7925_v2 = vpop.f32.mrb[107].mxu1  ;;  %7936 = vmatprep.subr.bf16.mxu1 %v1747_v63  ;;  %v8814_v30 = vld [vmem:[%s10709_s25 + $0x20] sm:$0xff]  }
 0x2d2   : > { %7937 = vmatpush3.bf16.msra.mxu1 %v1747_v63  ;;  %v8835_v63 = vld [vmem:[%s10711_s28 + $0x8] sm:$0xff]  }
 0x2d3   : > { %v1727_v56 = vadd.f32 %v9450_v35, %v1706_v0  ;;  %v1740_v33 = vmax.f32 %v1726_v58, 0.0  ;;  %v8813_v35 = vld [vmem:[%s10709_s25 + $0x18] sm:$0xff]  }
 0x2d5   : > { %v1741_v3 = vmax.f32 %v1727_v56, 0.0 }
 0x2d7   : > { %v1748_v1 = vpack.c.bf16 %v1741_v3, %v1740_v33  ;;  %v8836_v33 = vld [vmem:[%s10711_s28 + $0x20] sm:$0xff]  }
 0x2d9   : > { %7938 = vmatprep.subr.bf16.mxu1 %v1748_v1 }
 0x2da   : > { %7939 = vmatpush3.bf16.msra.mxu1 %v1748_v1 }
 0x2dd   : > { %7941 = vmatmul.mubr.msk.bf16.vlgmr.msra.gmra.mrb[108].mxu1 %vm1903_vm3, %v8811_v32 }
 0x2de   : > { %7944 = vmatprep.mubr.msk.bf16.mxu1 %vm1903_vm3, %v8812_v5 }
 0x2e5   : > { %7945 = vmatmul.mubr.msk.bf16.gmra.mrb[112].mxu1 %vm1903_vm3, %v8813_v35 }
 0x2e6   : > { %7948 = vmatprep.mubr.msk.bf16.mxu1 %vm1903_vm3, %v8814_v30 }
 0x2ed   : > { %7949 = vmatmul.mubr.msk.bf16.gmra.mrb[116].mxu1 %vm1903_vm3, %v8815_v4 }
 0x2ee   : > { %7952 = vmatprep.mubr.msk.bf16.mxu1 %vm1903_vm3, %v8816_v6 }
 0x2f5   : > { %7953 = vmatmul.mubr.msk.bf16.gmra.mrb[120].mxu1 %vm1903_vm3, %v8817_v8 }
 0x2f6   : > { %7956 = vmatprep.mubr.msk.bf16.mxu1 %vm1903_vm3, %v8818_v9 }
 0x2fd   : > { %7957 = vmatmul.mubr.msk.bf16.gmra.mrb[124].mxu1 %vm1903_vm3, %v8819_v7 }
 0x2fe   : > { %7960 = vmatprep.mubr.msk.bf16.mxu1 %vm1903_vm3, %v8820_v11 }
 0x305   : > { %7961 = vmatmul.mubr.msk.bf16.gmra.mrb[128].mxu1 %vm1903_vm3, %v8821_v14 }
 0x306   : > { %7964 = vmatprep.mubr.msk.bf16.mxu1 %vm1903_vm3, %v8822_v17 }
 0x30d   : > { %7965 = vmatmul.mubr.msk.bf16.gmra.mrb[132].mxu1 %vm1903_vm3, %v8823_v10 }
 0x30e   : > { %7968 = vmatprep.mubr.msk.bf16.mxu1 %vm1903_vm3, %v8824_v19 }
 0x315   : > { %7969 = vmatmul.mubr.msk.bf16.gmra.mrb[136].mxu1 %vm1903_vm3, %v8825_v36 }
 0x316   : > { %7972 = vmatprep.mubr.msk.bf16.mxu1 %vm1903_vm3, %v8826_v37 }
 0x31d   : > { %7973 = vmatmul.mubr.msk.bf16.gmra.mrb[140].mxu1 %vm1903_vm3, %v8827_v38 }
 0x31e   : > { %7976 = vmatprep.mubr.msk.bf16.mxu1 %vm1903_vm3, %v8828_v39  ;;  %v8837_v39 = vld [vmem:[%s10711_s28 + $0x28] sm:$0xff]  }
 0x325   : > { %7977 = vmatmul.mubr.msk.bf16.gmra.mrb[144].mxu1 %vm1903_vm3, %v8829_v40 }
 0x326   : > { %7980 = vmatprep.mubr.msk.bf16.mxu1 %vm1903_vm3, %v8830_v41 }
 0x32d   : > { %7981 = vmatmul.mubr.msk.bf16.gmra.mrb[148].mxu1 %vm1903_vm3, %v8831_v42 }
 0x3b0   : > { %v9568_v46 = vpop.f32.mrb[108].mxu1 }
 0x3b1   : > { %v9570_v48 = vpop.f32.mrb[109].mxu1 }
 0x3b2   : > { %v9572_v49 = vpop.f32.mrb[110].mxu1 }
 0x3b3   : > { %v2180_v50 = vpack.c.bf16 %v9572_v49, %v9568_v46  ;;  %v2007_v51 = vpop.f32.mrb[111].mxu1 }
 0x3b4   : > { %v2179_v53 = vpack.c.bf16 %v2007_v51, %v9570_v48 }
 0x3b8   : > { %v9577_v47 = vpop.f32.mrb[112].mxu1 }
 0x3b9   : > { %v9579_v55 = vpop.f32.mrb[113].mxu1 }
 0x3ba   : > { %v9581_v62 = vpop.f32.mrb[114].mxu1 }
 0x3bb   : > { %v2182_v12 = vpack.c.bf16 %v9581_v62, %v9577_v47  ;;  %v9585_v13 = vpop.f32.mrb[115].mxu1 }
 0x3bc   : > { %v2181_v52 = vpack.c.bf16 %v9585_v13, %v9579_v55 }
 0x3c0   : > { %v7950_v15 = vpop.f32.mrb[116].mxu1 }
 0x3c1   : > { %v9589_v18 = vpop.f32.mrb[117].mxu1 }
 0x3c2   : > { %v7951_v20 = vpop.f32.mrb[118].mxu1 }
 0x3c3   : > { %v9591_v22 = vpack.c.bf16 %v7951_v20, %v7950_v15  ;;  %v9593_v23 = vpop.f32.mrb[119].mxu1 }
 0x3c4   : > { %v2183_v16 = vpack.c.bf16 %v9593_v23, %v9589_v18 }
 0x3c5   : > { %v2217_v24 = vrot.slane %v9591_v22, 4 }
 0x3c8   : > { %v7954_v26 = vpop.f32.mrb[120].mxu1 }
 0x3c9   : > { %v2052_v21 = vpop.f32.mrb[121].mxu1 }
 0x3ca   : > { %v7955_v57 = vpop.f32.mrb[122].mxu1 }
 0x3cb   : > { %v2186_v25 = vpack.c.bf16 %v7955_v57, %v7954_v26  ;;  %v2055_v61 = vpop.f32.mrb[123].mxu1  ;;  %v8839_v57 = vld [vmem:[%s10711_s28 + $0x38] sm:$0xff]  }
 0x3cc   : > { %v2185_v31 = vpack.c.bf16 %v2055_v61, %v2052_v21 }
 0x3cd   : > { %v2220_v28 = vrot.slane %v2186_v25, 4 }
 0x3ce   : > { %v2218_v27 = vrot.slane %v2185_v31, 4 }
 0x3d0   : > { %v2221_v59 = vsel %vm2216_vm4, %v2218_v27, %v2220_v28  ;;  %v7958_v60 = vpop.f32.mrb[124].mxu1  ;;  %v2219_v34 = vsel %vm2216_vm4, %v2217_v24, %v2218_v27 }
 0x3d1   : > { %v2068_v29 = vpop.f32.mrb[125].mxu1  ;;  %7988 = vmatprep.mubr.msk.bf16.mxu0 %vm2240_vm5, %v2219_v34 }
 0x3d2   : > { %v7959_v58 = vpop.f32.mrb[126].mxu1  ;;  %7989 = vmatmul.mubr.msk.bf16.vlgmr.msra.gmra.mrb[60].mxu0 %vm2240_vm5, %v2221_v59 }
 0x3d3   : > { %v2188_v0 = vpack.c.bf16 %v7959_v58, %v7958_v60  ;;  %v2071_v2 = vpop.f32.mrb[127].mxu1  ;;  %8001 = vmatpush3.bf16.msra.mxu0 %v8834_v45  ;;  %v8838_v45 = vld [vmem:[%s10711_s28 + $0x30] sm:$0xff]  }
 0x3d4   : > { %v2187_v56 = vpack.c.bf16 %v2071_v2, %v2068_v29  ;;  %8002 = vmatprep.subr.bf16.mxu0 %v8835_v63 }
 0x3d5   : > { %v2224_v3 = vrot.slane %v2188_v0, 4 }
 0x3d6   : > { %v2222_v1 = vrot.slane %v2187_v56, 4 }
 0x3d7   : > { %8003 = vmatpush3.bf16.msra.mxu0 %v8835_v63  ;;  %v8840_v63 = vld [vmem:[%s10679_s7] sm:$0xff]  }
 0x3d8   : > { %v7962_v32 = vpop.f32.mrb[128].mxu1  ;;  %v2223_v5 = vsel %vm2216_vm4, %v2220_v28, %v2222_v1  ;;  %v2225_v35 = vsel %vm2216_vm4, %v2222_v1, %v2224_v3  ;;  %8016 = vmatprep.subr.bf16.mxu0 %v8836_v33  ;;  %8060 = vmatprep.mubr.msk.bf16.mxu1 %vm2879_vm6, %v8840_v63 }
 0x3d9   : > { %v2084_v30 = vpop.f32.mrb[129].mxu1  ;;  %7992 = vmatprep.mubr.msk.bf16.mxu0 %vm2240_vm5, %v2223_v5 }
 0x3da   : > { %v7963_v4 = vpop.f32.mrb[130].mxu1  ;;  %7993 = vmatmul.mubr.msk.bf16.gmra.mrb[64].mxu0 %vm2240_vm5, %v2225_v35 }
 0x3db   : > { %v2190_v6 = vpack.c.bf16 %v7963_v4, %v7962_v32  ;;  %v2087_v8 = vpop.f32.mrb[131].mxu1 }
 0x3dc   : > { %v2189_v9 = vpack.c.bf16 %v2087_v8, %v2084_v30 }
 0x3de   : > { %v2226_v7 = vrot.slane %v2189_v9, 4 }
 0x3e0   : > { %v2227_v11 = vsel %vm2216_vm4, %v2224_v3, %v2226_v7  ;;  %v7966_v14 = vpop.f32.mrb[132].mxu1 }
 0x3e1   : > { %7996 = vmatprep.mubr.msk.bf16.mxu0 %vm2240_vm5, %v2227_v11  ;;  %v2100_v17 = vpop.f32.mrb[133].mxu1 }
 0x3e2   : > { %7997 = vmatmul.mubr.msk.bf16.gmra.mrb[68].mxu0 %vm2240_vm5, %v2226_v7  ;;  %v7967_v10 = vpop.f32.mrb[134].mxu1 }
 0x3e3   : > { %8004 = vmatprep.mubr.msk.bf16.mxu0 %vm2240_vm5, %v2179_v53  ;;  %v2192_v19 = vpack.c.bf16 %v7967_v10, %v7966_v14  ;;  %v2103_v36 = vpop.f32.mrb[135].mxu1  ;;  %v6888_v14 = vld [vmem:[%s10712_s2] ss:$0 sm:$0xff] }
 0x3e4   : > { %v2191_v37 = vpack.c.bf16 %v2103_v36, %v2100_v17 }
 0x3e8   : > { %v7970_v38 = vpop.f32.mrb[136].mxu1 }
 0x3e9   : > { %v2116_v40 = vpop.f32.mrb[137].mxu1 }
 0x3ea   : > { %8005 = vmatmul.mubr.msk.bf16.vlgmr.msra.gmra.mrb[60].mxu0 %vm2240_vm5, %v2180_v50  ;;  %v7971_v41 = vpop.f32.mrb[138].mxu1 }
 0x3eb   : > { %8008 = vmatprep.mubr.msk.bf16.mxu0 %vm2240_vm5, %v2181_v52  ;;  %8017 = vmatpush3.bf16.msra.mxu0 %v8836_v33  ;;  %v2194_v42 = vpack.c.bf16 %v7971_v41, %v7970_v38  ;;  %v2119_v43 = vpop.f32.mrb[139].mxu1 }
 0x3ec   : > { %8018 = vmatprep.subr.bf16.mxu0 %v8837_v39  ;;  %v2193_v44 = vpack.c.bf16 %v2119_v43, %v2116_v40 }
 0x3ef   : > { %8019 = vmatpush3.bf16.msra.mxu0 %v8837_v39 }
 0x3f0   : > { %v7974_v48 = vpop.f32.mrb[140].mxu1  ;;  %8032 = vmatprep.subr.bf16.mxu0 %v8838_v45 }
 0x3f1   : > { %v2132_v51 = vpop.f32.mrb[141].mxu1 }
 0x3f2   : > { %8009 = vmatmul.mubr.msk.bf16.gmra.mrb[64].mxu0 %vm2240_vm5, %v2182_v12  ;;  %v7975_v46 = vpop.f32.mrb[142].mxu1 }
 0x3f3   : > { %8012 = vmatprep.mubr.msk.bf16.mxu0 %vm2240_vm5, %v2183_v16  ;;  %v2196_v49 = vpack.c.bf16 %v7975_v46, %v7974_v48  ;;  %v2135_v50 = vpop.f32.mrb[143].mxu1 }
 0x3f4   : > { %v2195_v53 = vpack.c.bf16 %v2135_v50, %v2132_v51 }
 0x3f5   : > { %v2587_v55 = vrot.slane %v2196_v49, 4 }
 0x3f6   : > { %v2586_v13 = vrot.slane %v2195_v53, 4 }
 0x3f8   : > { %v7978_v52 = vpop.f32.mrb[144].mxu1  ;;  %v2588_v15 = vsel %vm2216_vm4, %v2586_v13, %v2587_v55 }
 0x3f9   : > { %v2148_v20 = vpop.f32.mrb[145].mxu1 }
 0x3fa   : > { %8013 = vmatmul.mubr.msk.bf16.gmra.mrb[72].mxu0 %vm2240_vm5, %v9591_v22  ;;  %v7979_v47 = vpop.f32.mrb[146].mxu1 }
 0x3fb   : > { %8020 = vmatprep.mubr.msk.bf16.mxu0 %vm2240_vm5, %v2190_v6  ;;  %v2198_v62 = vpack.c.bf16 %v7979_v47, %v7978_v52  ;;  %v2151_v12 = vpop.f32.mrb[147].mxu1 }
 0x3fc   : > { %v2197_v18 = vpack.c.bf16 %v2151_v12, %v2148_v20 }
 0x3fd   : > { %v2591_v23 = vrot.slane %v2198_v62, 4 }
 0x3fe   : > { %v2589_v16 = vrot.slane %v2197_v18, 4 }
 0x400   : > { %v2590_v26 = vsel %vm2216_vm4, %v2587_v55, %v2589_v16  ;;  %v7982_v21 = vpop.f32.mrb[148].mxu1  ;;  %v2592_v25 = vsel %vm2216_vm4, %v2589_v16, %v2591_v23 }
 0x401   : > { %v2164_v61 = vpop.f32.mrb[149].mxu1 }
 0x402   : > { %8021 = vmatmul.mubr.msk.bf16.vlgmr.msra.gmra.mrb[60].mxu0 %vm2240_vm5, %v2191_v37  ;;  %v7983_v22 = vpop.f32.mrb[150].mxu1 }
 0x403   : > { %8024 = vmatprep.mubr.msk.bf16.mxu0 %vm2240_vm5, %v2192_v19  ;;  %v2200_v31 = vpack.c.bf16 %v7983_v22, %v7982_v21  ;;  %v2167_v28 = vpop.f32.mrb[151].mxu1  ;;  %8033 = vmatpush3.bf16.msra.mxu0 %v8838_v45 }
 0x404   : > { %v2199_v24 = vpack.c.bf16 %v2167_v28, %v2164_v61  ;;  %8034 = vmatprep.subr.bf16.mxu0 %v8839_v57 }
 0x405   : > { %v2595_v27 = vrot.slane %v2200_v31, 4 }
 0x406   : > { %v2593_v59 = vrot.slane %v2199_v24, 4 }
 0x407   : > { %8035 = vmatpush3.bf16.msra.mxu0 %v8839_v57 }
 0x408   : > { %v2594_v60 = vsel %vm2216_vm4, %v2591_v23, %v2593_v59  ;;  %v2596_v34 = vsel %vm2216_vm4, %v2593_v59, %v2595_v27  ;;  %8096 = vmatprep.subr.bf16.mxu0 %v8997_v54 }
 0x40a   : > { %8025 = vmatmul.mubr.msk.bf16.gmra.mrb[64].mxu0 %vm2240_vm5, %v2193_v44 }
 0x40b   : > { %8028 = vmatprep.mubr.msk.bf16.mxu0 %vm2240_vm5, %v2194_v42 }
 0x412   : > { %8029 = vmatmul.mubr.msk.bf16.gmra.mrb[76].mxu0 %vm2240_vm5, %v2195_v53 }
 0x413   : > { %8036 = vmatprep.mubr.msk.bf16.mxu0 %vm2240_vm5, %v2588_v15 }
 0x41a   : > { %8037 = vmatmul.mubr.msk.bf16.vlgmr.msra.gmra.mrb[60].mxu0 %vm2240_vm5, %v2590_v26 }
 0x41b   : > { %8040 = vmatprep.mubr.msk.bf16.mxu0 %vm2240_vm5, %v2592_v25 }
 0x422   : > { %8041 = vmatmul.mubr.msk.bf16.gmra.mrb[64].mxu0 %vm2240_vm5, %v2594_v60 }
 0x423   : > { %8044 = vmatprep.mubr.msk.bf16.mxu0 %vm2240_vm5, %v2596_v34 }
 0x42a   : > { %8045 = vmatmul.mubr.msk.bf16.gmra.mrb[80].mxu0 %vm2240_vm5, %v2595_v27 }
 0x42b   : > { %8104 = vmatprep.mubr.msk.bf16.mxu0 %vm8998_vm1, %v8997_v54 }
 0x4b5   : > { %v7998_v29 = vpop.f32.mrb[68].mxu0 }
 0x4b6   : > { %v2325_v58 = vpop.f32.mrb[69].mxu0 }
 0x4b7   : > { %v7999_v0 = vpop.f32.mrb[70].mxu0 }
 0x4b8   : > { %v2328_v2 = vpop.f32.mrb[71].mxu0  ;;  %v8843_v0 = vld [vmem:[%s10679_s7 + $0x18] sm:$0xff]  }
 0x4cd   : > { %v8014_v56 = vpop.f32.mrb[72].mxu0 }
 0x4ce   : > { %v2444_v33 = vadd.f32 %v8014_v56, %v7998_v29  ;;  %v2435_v3 = vpop.f32.mrb[73].mxu0  ;;  %v8841_v29 = vld [vmem:[%s10679_s7 + $0x8] sm:$0xff]  }
 0x4cf   : > { %v2436_v1 = vadd.f32 %v2435_v3, %v2325_v58  ;;  %v8015_v32 = vpop.f32.mrb[74].mxu0  ;;  %v8842_v58 = vld [vmem:[%s10679_s7 + $0x10] sm:$0xff]   ;;  %v8845_v56 = vld [vmem:[%s10679_s7 + $0x28] sm:$0xff]   ;;  %v8847_v3 = vld [vmem:[%s10679_s7 + $0x38] sm:$0xff]  }
 0x4d0   : > { %v2438_v5 = vpop.f32.mrb[75].mxu0  ;;  %v8849_v32 = vld [vmem:[%s10679_s7 + $0x48] sm:$0xff]  }
 0x4d1   : > { %v2439_v35 = vadd.f32 %v2438_v5, %v2328_v2  ;;  %v8844_v2 = vld [vmem:[%s10679_s7 + $0x20] sm:$0xff]   ;;  %v8850_v5 = vld [vmem:[%s10679_s7 + $0x50] sm:$0xff]  }
 0x4e5   : > { %v8030_v30 = vpop.f32.mrb[76].mxu0 }
 0x4e6   : > { %v2574_v4 = vadd.f32 %v8030_v30, %v2444_v33  ;;  %v2550_v6 = vpop.f32.mrb[77].mxu0  ;;  %v8846_v33 = vld [vmem:[%s10679_s7 + $0x30] sm:$0xff]   ;;  %v8852_v30 = vld [vmem:[%s10679_s7 + $0x60] sm:$0xff]  }
 0x4e7   : > { %v2572_v8 = vadd.f32 %v2550_v6, %v2436_v1  ;;  %v8031_v9 = vpop.f32.mrb[78].mxu0  ;;  %v8848_v1 = vld [vmem:[%s10679_s7 + $0x40] sm:$0xff]   ;;  %v8854_v6 = vld [vmem:[%s10679_s7 + $0x70] sm:$0xff]  }
 0x4e8   : > { %v2553_v7 = vpop.f32.mrb[79].mxu0  ;;  %v8856_v9 = vld [vmem:[%s10679_s7 + $0x80] sm:$0xff]  }
 0x4e9   : > { %v2573_v11 = vadd.f32 %v2553_v7, %v2439_v35  ;;  %v8851_v35 = vld [vmem:[%s10679_s7 + $0x58] sm:$0xff]   ;;  %v8857_v7 = vld [vmem:[%s10679_s7 + $0x88] sm:$0xff]  }
 0x4ed   : > { %v8038_v17 = vpop.f32.mrb[60].mxu0 }
 0x4ee   : > { %v2727_v10 = vadd.f32 %v8038_v17, %v6888_v14  ;;  %v2661_v19 = vpop.f32.mrb[61].mxu0  ;;  %v8862_v17 = vld [vmem:[%s10680_s8 + $0x10] sm:$0xff]  }
 0x4ef   : > { %v2725_v36 = vadd.f32 %v6888_v14, %v2661_v19  ;;  %v8039_v37 = vpop.f32.mrb[62].mxu0  ;;  %v8859_v19 = vld [vmem:[%s10680_s8 + $0x20] sm:$0xff]  }
 0x4f0   : > { %v2728_v38 = vadd.f32 %v8039_v37, %v6888_v14  ;;  %v2664_v39 = vpop.f32.mrb[63].mxu0  ;;  %v2738_v41 = vmax.f32 %v2727_v10, 0.0  ;;  %v8864_v10 = vld [vmem:[%s10680_s8 + $0x18] sm:$0xff]   ;;  %8097 = vmatpush3.bf16.msra.mxu0 %v8859_v19  ;;  %v8863_v37 = vld [vmem:[%s10680_s8 + $0x30] sm:$0xff]  }
 0x4f1   : > { %v2726_v40 = vadd.f32 %v6888_v14, %v2664_v39  ;;  %v2736_v43 = vmax.f32 %v2725_v36, 0.0  ;;  %8098 = vmatprep.subr.bf16.mxu0 %v8997_v54  ;;  %v8861_v36 = vld [vmem:[%s10680_s8 + $0x28] sm:$0xff]  }
 0x4f2   : > { %v2739_v42 = vmax.f32 %v2728_v38, 0.0  ;;  %v8865_v38 = vld [vmem:[%s10680_s8 + $0x38] sm:$0xff]  }
 0x4f3   : > { %v2737_v44 = vmax.f32 %v2726_v40, 0.0 }
 0x4f4   : > { %v2748_v45 = vpack.c.bf16 %v2739_v42, %v2738_v41  ;;  %8099 = vmatpush3.bf16.msra.mxu0 %v8861_v36 }
 0x4f5   : > { %v2747_v48 = vpack.c.bf16 %v2737_v44, %v2736_v43  ;;  %v8042_v51 = vpop.f32.mrb[64].mxu0  ;;  %8100 = vmatprep.subr.bf16.mxu0 %v8997_v54  ;;  %v8867_v44 = vld [vmem:[%s10680_s8 + $0x60] sm:$0xff]  }
 0x4f6   : > { %v2731_v46 = vadd.f32 %v8042_v51, %v6888_v14  ;;  %v2677_v49 = vpop.f32.mrb[65].mxu0 }
 0x4f7   : > { %v2729_v50 = vadd.f32 %v6888_v14, %v2677_v49  ;;  %v8043_v53 = vpop.f32.mrb[66].mxu0  ;;  %8048 = vmatprep.subr.bf16.mxu1 %v2747_v48 }
 0x4f8   : > { %v2732_v55 = vadd.f32 %v8043_v53, %v6888_v14  ;;  %v2680_v13 = vpop.f32.mrb[67].mxu0  ;;  %8049 = vmatpush3.bf16.msra.mxu1 %v2747_v48  ;;  %v2742_v15 = vmax.f32 %v2731_v46, 0.0  ;;  %8101 = vmatpush3.bf16.msra.mxu0 %v8863_v37  ;;  %v8869_v48 = vld [vmem:[%s10680_s8 + $0x68] sm:$0xff]  }
 0x4f9   : > { %v2730_v52 = vadd.f32 %v6888_v14, %v2680_v13  ;;  %8050 = vmatprep.subr.bf16.mxu1 %v2748_v45  ;;  %v2740_v47 = vmax.f32 %v2729_v50, 0.0  ;;  %8102 = vmatprep.subr.bf16.mxu0 %v8997_v54 }
 0x4fa   : > { %v2743_v20 = vmax.f32 %v2732_v55, 0.0  ;;  %v8871_v55 = vld [vmem:[%s10680_s8 + $0x70] sm:$0xff]  }
 0x4fb   : > { %v2741_v62 = vmax.f32 %v2730_v52, 0.0  ;;  %v8873_v52 = vld [vmem:[%s10680_s8 + $0x78] sm:$0xff]  }
 0x4fc   : > { %v2750_v12 = vpack.c.bf16 %v2743_v20, %v2742_v15  ;;  %8051 = vmatpush3.bf16.msra.mxu1 %v2748_v45  ;;  %8103 = vmatpush3.bf16.msra.mxu0 %v8865_v38 }
 0x4fd   : > { %v2749_v18 = vpack.c.bf16 %v2741_v62, %v2740_v47  ;;  %v8046_v23 = vpop.f32.mrb[80].mxu0  ;;  %8152 = vmatprep.subr.bf16.mxu0 %v8997_v54 }
 0x4fe   : > { %v2717_v16 = vadd.f32 %v8046_v23, %v2574_v4  ;;  %v2693_v26 = vpop.f32.mrb[81].mxu0  ;;  %v8853_v4 = vld [vmem:[%s10679_s7 + $0x68] sm:$0xff]  }
 0x4ff   : > { %v2715_v21 = vadd.f32 %v2693_v26, %v2572_v8  ;;  %v8047_v57 = vpop.f32.mrb[82].mxu0  ;;  %8052 = vmatprep.subr.bf16.mxu1 %v2749_v18  ;;  %v8855_v8 = vld [vmem:[%s10679_s7 + $0x78] sm:$0xff]   ;;  %v8866_v26 = vld [vmem:[%s10680_s8 + $0x40] sm:$0xff]  }
 0x500   : > { %v2696_v25 = vpop.f32.mrb[83].mxu0  ;;  %8053 = vmatpush3.bf16.msra.mxu1 %v2749_v18  ;;  %v2735_v61 = vadd.f32 %v6888_v14, %v2717_v16 }
 0x501   : > { %v2733_v22 = vadd.f32 %v6888_v14, %v2715_v21  ;;  %v2716_v31 = vadd.f32 %v2696_v25, %v2573_v11  ;;  %8054 = vmatprep.subr.bf16.mxu1 %v2750_v12  ;;  %v8858_v11 = vld [vmem:[%s10680_s8] sm:$0xff]  }
 0x502   : > { %v2746_v24 = vmax.f32 %v2735_v61, 0.0 }
 0x503   : > { %v2734_v28 = vadd.f32 %v6888_v14, %v2716_v31  ;;  %v2744_v27 = vmax.f32 %v2733_v22, 0.0  ;;  %v8860_v14 = vld [vmem:[%s10680_s8 + $0x8] sm:$0xff]  }
 0x504   : > { %8055 = vmatpush3.bf16.msra.mxu1 %v2750_v12  ;;  %v2752_v34 = vpack.c.bf16 %v2746_v24, %v2746_v24  ;;  %v8868_v22 = vld [vmem:[%s10680_s8 + $0x48] sm:$0xff]  }
 0x505   : > { %v2745_v59 = vmax.f32 %v2734_v28, 0.0 }
 0x506   : > { %v2936_v63 = vsel %vm2216_vm4, %v2752_v34, 0 }
 0x507   : > { %v2751_v60 = vpack.c.bf16 %v2745_v59, %v2744_v27 }
 0x509   : > { %8056 = vmatprep.subr.bf16.mxu1 %v2751_v60 }
 0x50a   : > { %8057 = vmatpush3.bf16.msra.mxu1 %v2751_v60  ;;  %v8870_v60 = vld [vmem:[%s10680_s8 + $0x50] sm:$0xff]  }
 0x50b   : > { %8752 = vmatprep.subr.msk.bf16.mxu1 %vm2216_vm4, %v2752_v34 }
 0x50e   : > { %8059 = vmatpush3.bf16.msra.mxu1 %v2936_v63 }
 0x50f   : > { %8124 = vmatprep.subr.bf16.mxu1 %v8997_v54 }
 0x511   : > { %8061 = vmatmul.mubr.msk.bf16.vlgmr.msra.gmra.mrb[152].mxu1 %vm2879_vm6, %v8841_v29 }
 0x512   : > { %8064 = vmatprep.mubr.msk.bf16.mxu1 %vm2879_vm6, %v8842_v58  ;;  %8125 = vmatpush3.bf16.msra.mxu1 %v8858_v11 }
 0x513   : > { %8126 = vmatprep.subr.bf16.mxu1 %v8997_v54 }
 0x516   : > { %8127 = vmatpush3.bf16.msra.mxu1 %v8860_v14 }
 0x517   : > { %8128 = vmatprep.subr.bf16.mxu1 %v8997_v54 }
 0x519   : > { %8065 = vmatmul.mubr.msk.bf16.gmra.mrb[156].mxu1 %vm2879_vm6, %v8843_v0 }
 0x51a   : > { %8068 = vmatprep.mubr.msk.bf16.mxu1 %vm2879_vm6, %v8844_v2  ;;  %8129 = vmatpush3.bf16.msra.mxu1 %v8862_v17  ;;  %v8872_v2 = vld [vmem:[%s10680_s8 + $0x58] sm:$0xff]  }
 0x51b   : > { %8130 = vmatprep.subr.bf16.mxu1 %v8997_v54 }
 0x51e   : > { %8131 = vmatpush3.bf16.msra.mxu1 %v8864_v10 }
 0x51f   : > { %8180 = vmatprep.subr.bf16.mxu1 %v8997_v54 }
 0x521   : > { %8069 = vmatmul.mubr.msk.bf16.gmra.mrb[160].mxu1 %vm2879_vm6, %v8845_v56 }
 0x522   : > { %8072 = vmatprep.mubr.msk.bf16.mxu1 %vm2879_vm6, %v8846_v33 }
 0x529   : > { %8073 = vmatmul.mubr.msk.bf16.gmra.mrb[164].mxu1 %vm2879_vm6, %v8847_v3 }
 0x52a   : > { %8076 = vmatprep.mubr.msk.bf16.mxu1 %vm2879_vm6, %v8848_v1 }
 0x531   : > { %8077 = vmatmul.mubr.msk.bf16.gmra.mrb[168].mxu1 %vm2879_vm6, %v8849_v32 }
 0x532   : > { %8080 = vmatprep.mubr.msk.bf16.mxu1 %vm2879_vm6, %v8850_v5 }
 0x539   : > { %8081 = vmatmul.mubr.msk.bf16.gmra.mrb[172].mxu1 %vm2879_vm6, %v8851_v35 }
 0x53a   : > { %8084 = vmatprep.mubr.msk.bf16.mxu1 %vm2879_vm6, %v8852_v30 }
 0x541   : > { %8085 = vmatmul.mubr.msk.bf16.gmra.mrb[176].mxu1 %vm2879_vm6, %v8853_v4 }
 0x542   : > { %8088 = vmatprep.mubr.msk.bf16.mxu1 %vm2879_vm6, %v8854_v6 }
 0x549   : > { %8089 = vmatmul.mubr.msk.bf16.gmra.mrb[180].mxu1 %vm2879_vm6, %v8855_v8 }
 0x54a   : > { %8092 = vmatprep.mubr.msk.bf16.mxu1 %vm2879_vm6, %v8856_v9 }
 0x551   : > { %8093 = vmatmul.mubr.msk.bf16.gmra.mrb[184].mxu1 %vm2879_vm6, %v8857_v7 }
 0x552   : > { %8132 = vmatprep.mubr.msk.bf16.mxu1 %vm8998_vm1, %v8997_v54 }
 0x5e4   : > { %v8062_v39 = vpop.f32.mrb[152].mxu1 }
 0x5e5   : > { %v2972_v40 = vpop.f32.mrb[153].mxu1 }
 0x5e6   : > { %v8063_v41 = vpop.f32.mrb[154].mxu1 }
 0x5e7   : > { %v3116_v42 = vpack.c.bf16 %v8063_v41, %v8062_v39  ;;  %v2975_v43 = vpop.f32.mrb[155].mxu1 }
 0x5e8   : > { %v3115_v45 = vpack.c.bf16 %v2975_v43, %v2972_v40 }
 0x5ea   : > { %8133 = vmatmul.mubr.msk.bf16.vlgmr.msra.gmra.mrb[188].mxu1 %vm3188_vm7, %v3115_v45 }
 0x5eb   : > { %8136 = vmatprep.mubr.msk.bf16.mxu1 %vm8998_vm1, %v8997_v54  ;;  %8181 = vmatpush3.bf16.msra.mxu1 %v8867_v44 }
 0x5ec   : > { %v8066_v51 = vpop.f32.mrb[156].mxu1  ;;  %8182 = vmatprep.subr.bf16.mxu1 %v8997_v54 }
 0x5ed   : > { %v2988_v46 = vpop.f32.mrb[157].mxu1 }
 0x5ee   : > { %v8067_v49 = vpop.f32.mrb[158].mxu1 }
 0x5ef   : > { %v3118_v50 = vpack.c.bf16 %v8067_v49, %v8066_v51  ;;  %v2991_v53 = vpop.f32.mrb[159].mxu1  ;;  %8183 = vmatpush3.bf16.msra.mxu1 %v8869_v48 }
 0x5f0   : > { %v3117_v13 = vpack.c.bf16 %v2991_v53, %v2988_v46  ;;  %8184 = vmatprep.subr.bf16.mxu1 %v8997_v54 }
 0x5f2   : > { %8137 = vmatmul.mubr.msk.bf16.gmra.mrb[192].mxu1 %vm3188_vm7, %v3116_v42 }
 0x5f3   : > { %8140 = vmatprep.mubr.msk.bf16.mxu1 %vm8998_vm1, %v8997_v54  ;;  %8185 = vmatpush3.bf16.msra.mxu1 %v8871_v55 }
 0x5f4   : > { %v8070_v15 = vpop.f32.mrb[160].mxu1  ;;  %8186 = vmatprep.subr.bf16.mxu1 %v8997_v54 }
 0x5f5   : > { %v3004_v20 = vpop.f32.mrb[161].mxu1 }
 0x5f6   : > { %v8071_v47 = vpop.f32.mrb[162].mxu1 }
 0x5f7   : > { %v3120_v62 = vpack.c.bf16 %v8071_v47, %v8070_v15  ;;  %v3007_v12 = vpop.f32.mrb[163].mxu1  ;;  %8187 = vmatpush3.bf16.msra.mxu1 %v8873_v52  ;;  %v8876_v47 = vld [vmem:[%s10682_s10 + $0x4] ss:$8 sps:$4 sm:$0xff]  }
 0x5f8   : > { %v3119_v18 = vpack.c.bf16 %v3007_v12, %v3004_v20  ;;  %v8874_v20 = vld [vmem:[%s10682_s10] ss:$8 sps:$4 sm:$0xff]   ;;  %v8877_v12 = vld [vmem:[%s10682_s10 + $0x10] ss:$8 sps:$4 sm:$0xff]  }
 0x5f9   : > { %v3156_v23 = vrot.slane %v3120_v62, 4  ;;  %v8879_v62 = vld [vmem:[%s10682_s10 + $0x14] ss:$8 sps:$4 sm:$0xff]  }
 0x5fa   : > { %v3155_v16 = vrot.slane %v3119_v18, 4  ;;  %8141 = vmatmul.mubr.msk.bf16.gmra.mrb[196].mxu1 %vm3188_vm7, %v3117_v13 }
 0x5fb   : > { %8144 = vmatprep.mubr.msk.bf16.mxu1 %vm8998_vm1, %v8997_v54 }
 0x5fc   : > { %v3157_v21 = vsel %vm2216_vm4, %v3155_v16, %v3156_v23  ;;  %v8074_v57 = vpop.f32.mrb[164].mxu1  ;;  %v8885_v16 = vld [vmem:[%s10682_s10 + $0x34] ss:$8 sps:$4 sm:$0xff]  }
 0x5fd   : > { %v3020_v25 = vpop.f32.mrb[165].mxu1  ;;  %8105 = vmatmul.mubr.msk.bf16.vlgmr.msra.gmra.mrb[84].mxu0 %vm3188_vm7, %v3157_v21  ;;  %v8888_v21 = vld [vmem:[%s10682_s10 + $0x44] ss:$8 sps:$4 sm:$0xff]  }
 0x5fe   : > { %v8075_v61 = vpop.f32.mrb[166].mxu1  ;;  %8108 = vmatprep.mubr.msk.bf16.mxu0 %vm8998_vm1, %v8997_v54  ;;  %8153 = vmatpush3.bf16.msra.mxu0 %v8866_v26  ;;  %v8883_v26 = vld [vmem:[%s10682_s10 + $0x30] ss:$8 sps:$4 sm:$0xff]  }
 0x5ff   : > { %v3122_v31 = vpack.c.bf16 %v8075_v61, %v8074_v57  ;;  %v3023_v28 = vpop.f32.mrb[167].mxu1  ;;  %8154 = vmatprep.subr.bf16.mxu0 %v8997_v54  ;;  %v8886_v57 = vld [vmem:[%s10682_s10 + $0x40] ss:$8 sps:$4 sm:$0xff]   ;;  %v8889_v61 = vld [vmem:[%s10682_s10 + $0x50] ss:$8 sps:$4 sm:$0xff]  }
 0x600   : > { %v3121_v24 = vpack.c.bf16 %v3023_v28, %v3020_v25  ;;  %v8891_v25 = vld [vmem:[%s10682_s10 + $0x54] ss:$8 sps:$4 sm:$0xff]  }
 0x601   : > { %v3160_v27 = vrot.slane %v3122_v31, 4  ;;  %v8892_v31 = vld [vmem:[%s10682_s10 + $0x60] ss:$8 sps:$4 sm:$0xff]   ;;  %v8897_v28 = vld [vmem:[%s10682_s10 + $0x74] ss:$8 sps:$4 sm:$0xff]  }
 0x602   : > { %v3158_v59 = vrot.slane %v3121_v24, 4  ;;  %8145 = vmatmul.mubr.msk.bf16.gmra.mrb[200].mxu1 %vm3188_vm7, %v3118_v50  ;;  %8155 = vmatpush3.bf16.msra.mxu0 %v8868_v22  ;;  %v8894_v22 = vld [vmem:[%s10682_s10 + $0x64] ss:$8 sps:$4 sm:$0xff]   ;;  %v8895_v24 = vld [vmem:[%s10682_s10 + $0x70] ss:$8 sps:$4 sm:$0xff]  }
 0x603   : > { %8148 = vmatprep.mubr.msk.bf16.mxu1 %vm8998_vm1, %v8997_v54  ;;  %8156 = vmatprep.subr.bf16.mxu0 %v8997_v54 }
 0x604   : > { %v3159_v34 = vsel %vm2216_vm4, %v3156_v23, %v3158_v59  ;;  %v8078_v63 = vpop.f32.mrb[168].mxu1  ;;  %v3161_v29 = vsel %vm2216_vm4, %v3158_v59, %v3160_v27  ;;  %v8882_v23 = vld [vmem:[%s10682_s10 + $0x24] ss:$8 sps:$4 sm:$0xff]  }
 0x605   : > { %8109 = vmatmul.mubr.msk.bf16.gmra.mrb[88].mxu0 %vm3188_vm7, %v3159_v34  ;;  %v3036_v58 = vpop.f32.mrb[169].mxu1 }
 0x606   : > { %8112 = vmatprep.mubr.msk.bf16.mxu0 %vm8998_vm1, %v8997_v54  ;;  %v8079_v0 = vpop.f32.mrb[170].mxu1  ;;  %8157 = vmatpush3.bf16.msra.mxu0 %v8870_v60 }
 0x607   : > { %v3124_v56 = vpack.c.bf16 %v8079_v0, %v8078_v63  ;;  %v3039_v33 = vpop.f32.mrb[171].mxu1  ;;  %8158 = vmatprep.subr.bf16.mxu0 %v8997_v54 }
 0x608   : > { %v3123_v3 = vpack.c.bf16 %v3039_v33, %v3036_v58 }
 0x60a   : > { %v3162_v1 = vrot.slane %v3123_v3, 4  ;;  %8149 = vmatmul.mubr.msk.bf16.gmra.mrb[204].mxu1 %vm3188_vm7, %v3119_v18  ;;  %8159 = vmatpush3.bf16.msra.mxu0 %v8872_v2  ;;  %v8880_v18 = vld [vmem:[%s10682_s10 + $0x20] ss:$8 sps:$4 sm:$0xff]  }
 0x60b   : > { %8188 = vmatprep.mubr.msk.bf16.mxu1 %vm8998_vm1, %v8997_v54  ;;  %3785 = vmatprep.subr.bf16.mxu0 %v8876_v47 }
 0x60c   : > { %v3163_v32 = vsel %vm2216_vm4, %v3160_v27, %v3162_v1  ;;  %v8082_v5 = vpop.f32.mrb[172].mxu1  ;;  %v8999_v27 = vmov 0  }
 0x60d   : > { %8113 = vmatmul.mubr.msk.bf16.gmra.mrb[92].mxu0 %vm3188_vm7, %v3161_v29  ;;  %v3052_v35 = vpop.f32.mrb[173].mxu1  ;;  %8775 = vset.pattern.permute.xlu1 %v8999_v27 }
 0x60e   : > { %8116 = vmatprep.mubr.msk.bf16.mxu0 %vm8998_vm1, %v8997_v54  ;;  %v8083_v30 = vpop.f32.mrb[174].mxu1  ;;  %8776 = vset.pattern.permute.xlu0 %v8999_v27 }
 0x60f   : > { %v3126_v4 = vpack.c.bf16 %v8083_v30, %v8082_v5  ;;  %v3055_v6 = vpop.f32.mrb[175].mxu1 }
 0x610   : > { %v3125_v8 = vpack.c.bf16 %v3055_v6, %v3052_v35 }
 0x614   : > { %v8086_v9 = vpop.f32.mrb[176].mxu1 }
 0x615   : > { %8117 = vmatmul.mubr.msk.bf16.gmra.mrb[96].mxu0 %vm3188_vm7, %v3163_v32  ;;  %v3068_v7 = vpop.f32.mrb[177].mxu1 }
 0x616   : > { %v8087_v11 = vpop.f32.mrb[178].mxu1  ;;  %8120 = vmatprep.mubr.msk.bf16.mxu0 %vm8998_vm1, %v8997_v54 }
 0x617   : > { %v3128_v14 = vpack.c.bf16 %v8087_v11, %v8086_v9  ;;  %v3071_v17 = vpop.f32.mrb[179].mxu1 }
 0x618   : > { %v3127_v10 = vpack.c.bf16 %v3071_v17, %v3068_v7 }
 0x619   : > { %v3530_v42 = vrot.slane %v3128_v14, 4 }
 0x61c   : > { %v8090_v19 = vpop.f32.mrb[180].mxu1 }
 0x61d   : > { %8121 = vmatmul.mubr.msk.bf16.gmra.mrb[100].mxu0 %vm3188_vm7, %v3162_v1  ;;  %v3084_v36 = vpop.f32.mrb[181].mxu1 }
 0x61e   : > { %v8091_v37 = vpop.f32.mrb[182].mxu1  ;;  %8160 = vmatprep.mubr.msk.bf16.mxu0 %vm8998_vm1, %v8997_v54 }
 0x61f   : > { %v3130_v38 = vpack.c.bf16 %v8091_v37, %v8090_v19  ;;  %v3087_v39 = vpop.f32.mrb[183].mxu1 }
 0x620   : > { %v3129_v40 = vpack.c.bf16 %v3087_v39, %v3084_v36 }
 0x621   : > { %v3533_v41 = vrot.slane %v3130_v38, 4 }
 0x622   : > { %v3531_v43 = vrot.slane %v3129_v40, 4 }
 0x624   : > { %v3532_v44 = vsel %vm2216_vm4, %v3530_v42, %v3531_v43  ;;  %v8094_v45 = vpop.f32.mrb[184].mxu1  ;;  %v3534_v48 = vsel %vm2216_vm4, %v3531_v43, %v3533_v41 }
 0x625   : > { %8161 = vmatmul.mubr.msk.bf16.vlgmr.msra.gmra.mrb[104].mxu0 %vm3188_vm7, %v3124_v56  ;;  %8189 = vmatmul.mubr.msk.bf16.vlgmr.msra.gmra.mrb[208].mxu1 %vm3188_vm7, %v3532_v44  ;;  %v3100_v51 = vpop.f32.mrb[185].mxu1 }
 0x626   : > { %8164 = vmatprep.mubr.msk.bf16.mxu0 %vm8998_vm1, %v8997_v54  ;;  %8192 = vmatprep.mubr.msk.bf16.mxu1 %vm8998_vm1, %v8997_v54  ;;  %v8095_v46 = vpop.f32.mrb[186].mxu1 }
 0x627   : > { %v3132_v49 = vpack.c.bf16 %v8095_v46, %v8094_v45  ;;  %v3103_v50 = vpop.f32.mrb[187].mxu1  ;;  %3786 = vmatpush1.bf16.msra.mxu0 %v8874_v20 }
 0x628   : > { %v3131_v53 = vpack.c.bf16 %v3103_v50, %v3100_v51  ;;  %3787 = vmatprep.subr.bf16.mxu0 %v8879_v62 }
 0x629   : > { %v3537_v55 = vrot.slane %v3132_v49, 4 }
 0x62a   : > { %v3535_v13 = vrot.slane %v3131_v53, 4 }
 0x62b   : > { %3788 = vmatpush1.bf16.msra.mxu0 %v8877_v12 }
 0x62c   : > { %v3536_v52 = vsel %vm2216_vm4, %v3533_v41, %v3535_v13  ;;  %v3538_v15 = vsel %vm2216_vm4, %v3535_v13, %v3537_v55  ;;  %3789 = vmatprep.subr.bf16.mxu0 %v8882_v23 }
 0x62d   : > { %8165 = vmatmul.mubr.msk.bf16.gmra.mrb[108].mxu0 %vm3188_vm7, %v3125_v8  ;;  %8193 = vmatmul.mubr.msk.bf16.gmra.mrb[212].mxu1 %vm3188_vm7, %v3534_v48 }
 0x62e   : > { %8168 = vmatprep.mubr.msk.bf16.mxu0 %vm8998_vm1, %v8997_v54  ;;  %8196 = vmatprep.mubr.msk.bf16.mxu1 %vm8998_vm1, %v8997_v54 }
 0x62f   : > { %3790 = vmatpush1.bf16.msra.mxu0 %v8880_v18 }
 0x630   : > { %3791 = vmatprep.subr.bf16.mxu0 %v8885_v16 }
 0x633   : > { %3792 = vmatpush1.bf16.msra.mxu0 %v8883_v26 }
 0x634   : > { %3793 = vmatprep.subr.bf16.mxu0 %v8888_v21 }
 0x635   : > { %8169 = vmatmul.mubr.msk.bf16.gmra.mrb[112].mxu0 %vm3188_vm7, %v3126_v4  ;;  %8197 = vmatmul.mubr.msk.bf16.gmra.mrb[216].mxu1 %vm3188_vm7, %v3536_v52 }
 0x636   : > { %8172 = vmatprep.mubr.msk.bf16.mxu0 %vm8998_vm1, %v8997_v54  ;;  %8200 = vmatprep.mubr.msk.bf16.mxu1 %vm8998_vm1, %v8997_v54 }
 0x637   : > { %3794 = vmatpush1.bf16.msra.mxu0 %v8886_v57  ;;  %v9926_v57 = vld [vmem:[%s10681_s9] ss:$0 sm:$0xff] }
 0x638   : > { %3795 = vmatprep.subr.bf16.mxu0 %v8891_v25 }
 0x63b   : > { %3796 = vmatpush1.bf16.msra.mxu0 %v8889_v61 }
 0x63c   : > { %3797 = vmatprep.subr.bf16.mxu0 %v8894_v22 }
 0x63d   : > { %8173 = vmatmul.mubr.msk.bf16.gmra.mrb[116].mxu0 %vm3188_vm7, %v3127_v10  ;;  %8201 = vmatmul.mubr.msk.bf16.gmra.mrb[220].mxu1 %vm3188_vm7, %v3538_v15 }
 0x63e   : > { %8176 = vmatprep.mubr.msk.bf16.mxu0 %vm8998_vm1, %v8997_v54  ;;  %8204 = vmatprep.mubr.msk.bf16.mxu1 %vm8998_vm1, %v8997_v54 }
 0x63f   : > { %3798 = vmatpush1.bf16.msra.mxu0 %v8892_v31 }
 0x640   : > { %3799 = vmatprep.subr.bf16.mxu0 %v8897_v28 }
 0x643   : > { %3800 = vmatpush1.bf16.msra.mxu0 %v8895_v24 }
 0x645   : > { %8177 = vmatmul.mubr.msk.bf16.gmra.mrb[120].mxu0 %vm3188_vm7, %v3128_v14  ;;  %8205 = vmatmul.mubr.msk.bf16.gmra.mrb[224].mxu1 %vm3188_vm7, %v3537_v55 }
 0x646   : > { %3817 = vmatprep.mubr.bf16.mxu0 %v8999_v27 }
 0x6bd   : > { %v3349_v59 = vpop.f32.mrb[188].mxu1 }
 0x6be   : > { %v8134_v60 = vpop.f32.mrb[189].mxu1 }
 0x6bf   : > { %v3352_v34 = vpop.f32.mrb[190].mxu1 }
 0x6c0   : > { %v8135_v63 = vpop.f32.mrb[191].mxu1 }
 0x6c5   : > { %v3357_v29 = vpop.f32.mrb[192].mxu1 }
 0x6c6   : > { %v8138_v58 = vpop.f32.mrb[193].mxu1 }
 0x6c7   : > { %v3360_v0 = vpop.f32.mrb[194].mxu1 }
 0x6c8   : > { %v8139_v2 = vpop.f32.mrb[195].mxu1 }
 0x6cd   : > { %v3365_v56 = vpop.f32.mrb[196].mxu1 }
 0x6ce   : > { %v8142_v33 = vpop.f32.mrb[197].mxu1 }
 0x6cf   : > { %v3368_v3 = vpop.f32.mrb[198].mxu1 }
 0x6d0   : > { %v3238_v1 = vpop.f32.mrb[84].mxu0  ;;  %v8143_v32 = vpop.f32.mrb[199].mxu1 }
 0x6d1   : > { %v3350_v5 = vadd.f32 %v3349_v59, %v3238_v1  ;;  %v8106_v35 = vpop.f32.mrb[85].mxu0 }
 0x6d2   : > { %v3241_v30 = vpop.f32.mrb[86].mxu0 }
 0x6d3   : > { %v3353_v4 = vadd.f32 %v3352_v34, %v3241_v30  ;;  %v8107_v6 = vpop.f32.mrb[87].mxu0 }
 0x6d5   : > { %v3373_v8 = vpop.f32.mrb[200].mxu1 }
 0x6d6   : > { %v8146_v9 = vpop.f32.mrb[201].mxu1 }
 0x6d7   : > { %v3376_v7 = vpop.f32.mrb[202].mxu1 }
 0x6d8   : > { %v3246_v11 = vpop.f32.mrb[88].mxu0  ;;  %v8147_v14 = vpop.f32.mrb[203].mxu1 }
 0x6d9   : > { %v3358_v17 = vadd.f32 %v3357_v29, %v3246_v11  ;;  %v8110_v10 = vpop.f32.mrb[89].mxu0 }
 0x6da   : > { %v3249_v19 = vpop.f32.mrb[90].mxu0 }
 0x6db   : > { %v3361_v36 = vadd.f32 %v3360_v0, %v3249_v19  ;;  %v8111_v37 = vpop.f32.mrb[91].mxu0 }
 0x6dd   : > { %v3381_v38 = vpop.f32.mrb[204].mxu1 }
 0x6de   : > { %v8150_v39 = vpop.f32.mrb[205].mxu1 }
 0x6df   : > { %v3384_v40 = vpop.f32.mrb[206].mxu1 }
 0x6e0   : > { %v3254_v41 = vpop.f32.mrb[92].mxu0  ;;  %v8151_v42 = vpop.f32.mrb[207].mxu1 }
 0x6e1   : > { %v3366_v43 = vadd.f32 %v3365_v56, %v3254_v41  ;;  %v8114_v44 = vpop.f32.mrb[93].mxu0 }
 0x6e2   : > { %v3257_v45 = vpop.f32.mrb[94].mxu0 }
 0x6e3   : > { %v3369_v48 = vadd.f32 %v3368_v3, %v3257_v45  ;;  %v8115_v51 = vpop.f32.mrb[95].mxu0 }
 0x6e8   : > { %v3262_v46 = vpop.f32.mrb[96].mxu0 }
 0x6e9   : > { %v9917_v49 = vadd.f32 %v3373_v8, %v3262_v46  ;;  %v8118_v50 = vpop.f32.mrb[97].mxu0 }
 0x6ea   : > { %v3265_v53 = vpop.f32.mrb[98].mxu0 }
 0x6eb   : > { %v9919_v55 = vadd.f32 %v3376_v7, %v3265_v53  ;;  %v8119_v13 = vpop.f32.mrb[99].mxu0 }
 0x6f0   : > { %v3270_v52 = vpop.f32.mrb[100].mxu0 }
 0x6f1   : > { %v9921_v15 = vadd.f32 %v3381_v38, %v3270_v52  ;;  %v8122_v20 = vpop.f32.mrb[101].mxu0 }
 0x6f2   : > { %v3273_v47 = vpop.f32.mrb[102].mxu0 }
 0x6f3   : > { %v8123_v62 = vpop.f32.mrb[103].mxu0 }
 0x6f8   : > { %v3469_v12 = vpop.f32.mrb[104].mxu0  ;;  %v3612_v18 = vpop.f32.mrb[208].mxu1 }
 0x6f9   : > { %v3507_v23 = vadd.f32 %v3469_v12, %v3350_v5  ;;  %v8162_v16 = vpop.f32.mrb[105].mxu0  ;;  %v8190_v26 = vpop.f32.mrb[209].mxu1 }
 0x6fa   : > { %v3472_v21 = vpop.f32.mrb[106].mxu0  ;;  %v3615_v25 = vpop.f32.mrb[210].mxu1 }
 0x6fb   : > { %v3508_v61 = vadd.f32 %v3472_v21, %v3353_v4  ;;  %v3650_v22 = vadd.f32 %v3612_v18, %v3507_v23  ;;  %v8163_v31 = vpop.f32.mrb[107].mxu0  ;;  %v8191_v28 = vpop.f32.mrb[211].mxu1 }
 0x6fd   : > { %v3666_v24 = vadd.f32 %v9926_v57, %v3650_v22  ;;  %v3651_v59 = vadd.f32 %v3615_v25, %v3508_v61 }
 0x6ff   : > { %v3667_v60 = vadd.f32 %v9926_v57, %v3651_v59  ;;  %v3675_v29 = vmax.f32 %v3666_v24, 0.0 }
 0x700   : > { %v3477_v34 = vpop.f32.mrb[108].mxu0  ;;  %v3620_v63 = vpop.f32.mrb[212].mxu1 }
 0x701   : > { %v3676_v58 = vmax.f32 %v3667_v60, 0.0  ;;  %v3509_v0 = vadd.f32 %v3477_v34, %v3358_v17  ;;  %v8166_v2 = vpop.f32.mrb[109].mxu0  ;;  %v8194_v56 = vpop.f32.mrb[213].mxu1 }
 0x702   : > { %v3480_v33 = vpop.f32.mrb[110].mxu0  ;;  %v3623_v3 = vpop.f32.mrb[214].mxu1 }
 0x703   : > { %v3684_v1 = vpack.c.bf16 %v3676_v58, %v3675_v29  ;;  %v3510_v32 = vadd.f32 %v3480_v33, %v3361_v36  ;;  %v3652_v5 = vadd.f32 %v3620_v63, %v3509_v0  ;;  %v8167_v35 = vpop.f32.mrb[111].mxu0  ;;  %v8195_v30 = vpop.f32.mrb[215].mxu1 }
 0x705   : > { %v3668_v4 = vadd.f32 %v9926_v57, %v3652_v5  ;;  %v3653_v6 = vadd.f32 %v3623_v3, %v3510_v32  ;;  %3818 = vmatmul.mubr.bf16.vlgmr.msra.gmra.mrb[124].mxu0 %v3684_v1 }
 0x706   : > { %3827 = vmatprep.mubr.bf16.mxu0 %v8999_v27 }
 0x707   : > { %v3669_v8 = vadd.f32 %v9926_v57, %v3653_v6  ;;  %v3677_v11 = vmax.f32 %v3668_v4, 0.0 }
 0x708   : > { %v3485_v9 = vpop.f32.mrb[112].mxu0  ;;  %v3628_v7 = vpop.f32.mrb[216].mxu1 }
 0x709   : > { %v3678_v14 = vmax.f32 %v3669_v8, 0.0  ;;  %v3511_v17 = vadd.f32 %v3485_v9, %v3366_v43  ;;  %v8170_v10 = vpop.f32.mrb[113].mxu0  ;;  %v8198_v19 = vpop.f32.mrb[217].mxu1 }
 0x70a   : > { %v3488_v37 = vpop.f32.mrb[114].mxu0  ;;  %v3631_v36 = vpop.f32.mrb[218].mxu1  ;;  %v8898_v10 = vld [vmem:[%s10683_s11 + $0x2c] sm:$0xff]  }
 0x70b   : > { %v3512_v38 = vadd.f32 %v3488_v37, %v3369_v48  ;;  %v3654_v39 = vadd.f32 %v3628_v7, %v3511_v17  ;;  %v8171_v40 = vpop.f32.mrb[115].mxu0  ;;  %v3685_v41 = vpack.c.bf16 %v3678_v14, %v3677_v11  ;;  %v8199_v42 = vpop.f32.mrb[219].mxu1  ;;  %8218 = vmatprep.mubr.msk.bf16.mxu1 %vm3946_vm8, %v8898_v10 }
 0x70d   : > { %v3670_v44 = vadd.f32 %v9926_v57, %v3654_v39  ;;  %v3655_v45 = vadd.f32 %v3631_v36, %v3512_v38  ;;  %3828 = vmatmul.mubr.bf16.gmra.mrb[128].mxu0 %v3685_v41 }
 0x70e   : > { %3837 = vmatprep.mubr.bf16.mxu0 %v8999_v27 }
 0x70f   : > { %v3671_v51 = vadd.f32 %v9926_v57, %v3655_v45  ;;  %v3679_v43 = vmax.f32 %v3670_v44, 0.0 }
 0x710   : > { %v3493_v46 = vpop.f32.mrb[116].mxu0  ;;  %v3636_v50 = vpop.f32.mrb[220].mxu1 }
 0x711   : > { %v3680_v53 = vmax.f32 %v3671_v51, 0.0  ;;  %v3513_v13 = vadd.f32 %v3493_v46, %v9917_v49  ;;  %v8174_v52 = vpop.f32.mrb[117].mxu0  ;;  %v8202_v48 = vpop.f32.mrb[221].mxu1 }
 0x712   : > { %v3496_v20 = vpop.f32.mrb[118].mxu0  ;;  %v3639_v47 = vpop.f32.mrb[222].mxu1 }
 0x713   : > { %v3514_v62 = vadd.f32 %v3496_v20, %v9919_v55  ;;  %v3656_v12 = vadd.f32 %v3636_v50, %v3513_v13  ;;  %v8175_v18 = vpop.f32.mrb[119].mxu0  ;;  %v3686_v23 = vpack.c.bf16 %v3680_v53, %v3679_v43  ;;  %v8203_v16 = vpop.f32.mrb[223].mxu1  ;;  %v8899_v20 = vld [vmem:[%s10683_s11 + $0x34] sm:$0xff]  }
 0x714   : > { %v8903_v18 = vld [vmem:[%s10683_s11 + $0x54] ss:$0 sps:$4 sm:$0xff]  }
 0x715   : > { %v3672_v26 = vadd.f32 %v9926_v57, %v3656_v12  ;;  %v3657_v21 = vadd.f32 %v3639_v47, %v3514_v62  ;;  %3838 = vmatmul.mubr.bf16.gmra.mrb[132].mxu0 %v3686_v23  ;;  %v8900_v47 = vld [vmem:[%s10683_s11 + $0x3c] sm:$0xff]   ;;  %v8901_v62 = vld [vmem:[%s10683_s11 + $0x44] sm:$0xff]   ;;  %v8902_v12 = vld [vmem:[%s10683_s11 + $0x4c] sm:$0xff]  }
 0x716   : > { %3847 = vmatprep.mubr.bf16.mxu0 %v8999_v27  ;;  %v8904_v23 = vld [vmem:[%s10683_s11] sm:$0xff]  }
 0x717   : > { %v3673_v25 = vadd.f32 %v9926_v57, %v3657_v21  ;;  %v3681_v22 = vmax.f32 %v3672_v26, 0.0  ;;  %v8905_v26 = vld [vmem:[%s10683_s11 + $0x8] sm:$0xff]   ;;  %v8906_v21 = vld [vmem:[%s10683_s11 + $0x10] sm:$0xff]  }
 0x718   : > { %v3501_v61 = vpop.f32.mrb[120].mxu0  ;;  %v3644_v49 = vpop.f32.mrb[224].mxu1 }
 0x719   : > { %v3682_v31 = vmax.f32 %v3673_v25, 0.0  ;;  %v3515_v28 = vadd.f32 %v3501_v61, %v9921_v15  ;;  %v8178_v24 = vpop.f32.mrb[121].mxu0  ;;  %v8206_v55 = vpop.f32.mrb[225].mxu1  ;;  %v8907_v25 = vld [vmem:[%s10683_s11 + $0x18] sm:$0xff]   ;;  %v8908_v61 = vld [vmem:[%s10683_s11 + $0x20] sm:$0xff]  }
 0x71a   : > { %v3504_v59 = vpop.f32.mrb[122].mxu0  ;;  %v3647_v60 = vpop.f32.mrb[226].mxu1  ;;  %v8911_v24 = vld [vmem:[%s10683_s11 + $0x60] sm:$0xff]   ;;  %v8912_v55 = vld [vmem:[%s10683_s11 + $0x68] sm:$0xff]  }
 0x71b   : > { %v3658_v34 = vadd.f32 %v3644_v49, %v3515_v28  ;;  %v8179_v63 = vpop.f32.mrb[123].mxu0  ;;  %v3687_v29 = vpack.c.bf16 %v3682_v31, %v3681_v22  ;;  %v8207_v58 = vpop.f32.mrb[227].mxu1  ;;  %v8909_v49 = vld [vmem:[%s10683_s11 + $0x28] ss:$0 sps:$4 sm:$0xff]   ;;  %v8910_v22 = vld [vmem:[%s10683_s11 + $0x58] sm:$0xff]   ;;  %v8913_v60 = vld [vmem:[%s10683_s11 + $0x70] sm:$0xff]  }
 0x71c   : > { %v8914_v63 = vld [vmem:[%s10683_s11 + $0x78] sm:$0xff]   ;;  %v8915_v58 = vld [vmem:[%s10683_s11 + $0x80] ss:$0 sps:$4 sm:$0xff]  }
 0x71d   : > { %v3674_v0 = vadd.f32 %v9926_v57, %v3658_v34  ;;  %3848 = vmatmul.mubr.bf16.gmra.mrb[136].mxu0 %v3687_v29 }
 0x71e   : > { %3857 = vmatprep.mubr.bf16.mxu0 %v8999_v27 }
 0x71f   : > { %v3683_v2 = vmax.f32 %v3674_v0, 0.0 }
 0x721   : > { %v3688_v56 = vpack.c.bf16 %v3683_v2, %v3683_v2  ;;  %v8916_v2 = vld [vmem:[%s10683_s11 + $0x84] sm:$0xff]  }
 0x725   : > { %3858 = vmatmul.mubr.bf16.gmra.mrb[140].mxu0 %v3688_v56 }
 0x7d8   : > { %v3819_v33 = vpop.f32.mrb[124].mxu0 }
 0x7d9   : > { %v3821_v3 = vpop.f32.mrb[125].mxu0 }
 0x7da   : > { %v3823_v1 = vpop.f32.mrb[126].mxu0 }
 0x7db   : > { %v3866_v15 = vpack.c.bf16 %v3823_v1, %v3819_v33  ;;  %v3825_v32 = vpop.f32.mrb[127].mxu0  ;;  %v8917_v33 = vld [vmem:[%s10683_s11 + $0x8c] sm:$0xff]   ;;  %v8919_v1 = vld [vmem:[%s10683_s11 + $0x9c] sm:$0xff]  }
 0x7dc   : > { %v9944_v5 = vpack.c.bf16 %v3825_v32, %v3821_v3  ;;  %v8918_v3 = vld [vmem:[%s10683_s11 + $0x94] sm:$0xff]   ;;  %v8921_v32 = vld [vmem:[%s10683_s11 + $0xac] ss:$0 sps:$4 sm:$0xff]  }
 0x7dd   : > { %3932 = vrot.lane.b32.xlu0 %v3866_v15, %s9000_s27 }
 0x7e0   : > { %v3829_v35 = vpop.f32.mrb[128].mxu0 }
 0x7e1   : > { %v3831_v30 = vpop.f32.mrb[129].mxu0 }
 0x7e2   : > { %v3833_v4 = vpop.f32.mrb[130].mxu0 }
 0x7e3   : > { %v3868_v57 = vpack.c.bf16 %v3833_v4, %v3829_v35  ;;  %v3835_v6 = vpop.f32.mrb[131].mxu0  ;;  %v8923_v35 = vld [vmem:[%s10685_s13 + $0x8] sm:$0xff]   ;;  %v8925_v4 = vld [vmem:[%s10685_s13 + $0x18] sm:$0xff]  }
 0x7e4   : > { %v9947_v8 = vpack.c.bf16 %v3835_v6, %v3831_v30  ;;  %v8924_v30 = vld [vmem:[%s10685_s13 + $0x10] sm:$0xff]  }
 0x7e5   : > { %3934 = vrot.lane.b32.xlu0 %v3868_v57, %s9000_s27 }
 0x7e8   : > { %v3839_v27 = vpop.f32.mrb[132].mxu0 }
 0x7e9   : > { %v3841_v9 = vpop.f32.mrb[133].mxu0 }
 0x7ea   : > { %v3843_v7 = vpop.f32.mrb[134].mxu0 }
 0x7eb   : > { %v3870_v11 = vpack.c.bf16 %v3843_v7, %v3839_v27  ;;  %v3845_v14 = vpop.f32.mrb[135].mxu0 }
 0x7ec   : > { %v9950_v17 = vpack.c.bf16 %v3845_v14, %v3841_v9 }
 0x7ed   : > { %3936 = vrot.lane.b32.xlu1 %v3870_v11, %s9000_s27 }
 0x7f0   : > { %v3849_v19 = vpop.f32.mrb[136].mxu0 }
 0x7f1   : > { %v3851_v37 = vpop.f32.mrb[137].mxu0 }
 0x7f2   : > { %v3853_v36 = vpop.f32.mrb[138].mxu0 }
 0x7f3   : > { %v3872_v38 = vpack.c.bf16 %v3853_v36, %v3849_v19  ;;  %v3855_v39 = vpop.f32.mrb[139].mxu0 }
 0x7f4   : > { %v9957_v40 = vpack.c.bf16 %v3855_v39, %v3851_v37 }
 0x7f5   : > { %3938 = vrot.lane.b32.xlu1 %v3872_v38, %s9000_s27 }
 0x7f8   : > { %v3859_v41 = vpop.f32.mrb[140].mxu0 }
 0x7f9   : > { %v3874_v42 = vpack.c.bf16 %v3859_v41, %v3859_v41  ;;  %4374 = vrot.lane.b32.xlu1 %v9944_v5, %s9000_s27  ;;  %v3861_v44 = vpop.f32.mrb[141].mxu0 }
 0x7fa   : > { %v3863_v45 = vpop.f32.mrb[142].mxu0  ;;  %v9965_v46 = vpack.c.bf16 %v3861_v44, %v3861_v44  ;;  %v7083_v44 = vld [vmem:[%s10684_s12] ss:$0 sm:$0xff] }
 0x7fb   : > { %3940 = vrot.lane.b32.xlu0 %v3874_v42, %s9000_s27  ;;  %v3864_v51 = vpop.f32.mrb[143].mxu0  ;;  %v4095_v16 = vsel %vm2216_vm4, %v3874_v42, 0 }
 0x7fc   : > { %v4236_v31 = vsel %vm2216_vm4, %v9965_v46, 0 }
 0x7fd   : > { %4378 = vrot.lane.b32.xlu1 %v9950_v17, %s9000_s27 }
 0x7ff   : > { %4376 = vrot.lane.b32.xlu0 %v9947_v8, %s9000_s27 }
 0x801   : > { %4382 = vrot.lane.b32.xlu1 %v9965_v46, %s9000_s27 }
 0x803   : > { %4380 = vrot.lane.b32.xlu0 %v9957_v40, %s9000_s27 }
 0x84f   : > { %v3933_v50 = vpop.permute.xlu0 %3932 }
 0x850   : > { %8208 = vmatprep.subr.bf16.mxu1 %v3933_v50 }
 0x851   : > { %8209 = vmatpush3.bf16.msra.mxu1 %v3933_v50 }
 0x857   : > { %v3935_v43 = vpop.permute.xlu0 %3934 }
 0x858   : > { %8210 = vmatprep.subr.bf16.mxu1 %v3935_v43 }
 0x859   : > { %8211 = vmatpush3.bf16.msra.mxu1 %v3935_v43 }
 0x85f   : > { %v3937_v53 = vpop.permute.xlu1 %3936 }
 0x860   : > { %8212 = vmatprep.subr.bf16.mxu1 %v3937_v53 }
 0x861   : > { %8213 = vmatpush3.bf16.msra.mxu1 %v3937_v53 }
 0x867   : > { %v3939_v13 = vpop.permute.xlu1 %3938 }
 0x868   : > { %8214 = vmatprep.subr.bf16.mxu1 %v3939_v13 }
 0x869   : > { %8215 = vmatpush3.bf16.msra.mxu1 %v3939_v13 }
 0x86b   : > { %v4375_v28 = vpop.permute.xlu1 %4374 }
 0x86d   : > { %v3941_v52 = vpop.permute.xlu0 %3940 }
 0x86e   : > { %v3966_v48 = vsel %vm2216_vm4, %v3941_v52, 0  ;;  %8753 = vmatprep.subr.msk.bf16.mxu1 %vm2216_vm4, %v3941_v52 }
 0x86f   : > { %8217 = vmatpush3.bf16.msra.mxu1 %v3966_v48  ;;  %v4379_v34 = vpop.permute.xlu1 %4378 }
 0x870   : > { %8230 = vmatprep.subr.bf16.mxu1 %v3866_v15 }
 0x871   : > { %v4377_v59 = vpop.permute.xlu0 %4376 }
 0x872   : > { %8219 = vmatmul.mubr.msk.bf16.vlgmr.msra.gmra.mrb[228].mxu1 %vm3946_vm8, %v8899_v20 }
 0x873   : > { %8231 = vmatpush3.bf16.msra.mxu1 %v3866_v15  ;;  %8222 = vmatprep.mubr.msk.bf16.mxu1 %vm3946_vm8, %v8900_v47  ;;  %v4383_v0 = vpop.permute.xlu1 %4382  ;;  %v8920_v15 = vld [vmem:[%s10683_s11 + $0xa4] sm:$0xff]  }
 0x874   : > { %8232 = vmatprep.subr.bf16.mxu1 %v3868_v57  ;;  %v4407_v56 = vsel %vm2216_vm4, %v4383_v0, 0 }
 0x875   : > { %v4381_v29 = vpop.permute.xlu0 %4380 }
 0x877   : > { %8233 = vmatpush3.bf16.msra.mxu1 %v3868_v57 }
 0x878   : > { %8234 = vmatprep.subr.bf16.mxu1 %v3870_v11 }
 0x87a   : > { %8223 = vmatmul.mubr.msk.bf16.gmra.mrb[232].mxu1 %vm3946_vm8, %v8901_v62 }
 0x87b   : > { %8235 = vmatpush3.bf16.msra.mxu1 %v3870_v11  ;;  %8226 = vmatprep.mubr.msk.bf16.mxu1 %vm3946_vm8, %v8902_v12 }
 0x87c   : > { %8236 = vmatprep.subr.bf16.mxu1 %v3872_v38 }
 0x87f   : > { %8237 = vmatpush3.bf16.msra.mxu1 %v3872_v38 }
 0x880   : > { %8754 = vmatprep.subr.msk.bf16.mxu1 %vm2216_vm4, %v3874_v42 }
 0x882   : > { %8227 = vmatmul.mubr.msk.bf16.gmra.mrb[236].mxu1 %vm3946_vm8, %v8903_v18 }
 0x883   : > { %8239 = vmatpush3.bf16.msra.mxu1 %v4095_v16  ;;  %8240 = vmatprep.mubr.msk.bf16.mxu1 %vm3946_vm8, %v8904_v23 }
 0x884   : > { %8252 = vmatprep.subr.bf16.mxu1 %v9944_v5 }
 0x88a   : > { %8241 = vmatmul.mubr.msk.bf16.vlgmr.msra.gmra.mrb[228].mxu1 %vm3946_vm8, %v8905_v26 }
 0x88b   : > { %8253 = vmatpush3.bf16.msra.mxu1 %v9944_v5  ;;  %8244 = vmatprep.mubr.msk.bf16.mxu1 %vm3946_vm8, %v8906_v21  ;;  %v8922_v5 = vld [vmem:[%s10685_s13] sm:$0xff]  }
 0x88c   : > { %8254 = vmatprep.subr.bf16.mxu1 %v9947_v8  ;;  %8296 = vmatprep.subr.bf16.mxu0 %v8922_v5 }
 0x88d   : > { %8297 = vmatpush3.bf16.msra.mxu0 %v8922_v5 }
 0x88e   : > { %8298 = vmatprep.subr.bf16.mxu0 %v8923_v35 }
 0x88f   : > { %8255 = vmatpush3.bf16.msra.mxu1 %v9947_v8 }
 0x890   : > { %8256 = vmatprep.subr.bf16.mxu1 %v9950_v17 }
 0x891   : > { %8299 = vmatpush3.bf16.msra.mxu0 %v8923_v35 }
 0x892   : > { %8245 = vmatmul.mubr.msk.bf16.gmra.mrb[232].mxu1 %vm3946_vm8, %v8907_v25  ;;  %8300 = vmatprep.subr.bf16.mxu0 %v8924_v30 }
 0x893   : > { %8257 = vmatpush3.bf16.msra.mxu1 %v9950_v17  ;;  %8248 = vmatprep.mubr.msk.bf16.mxu1 %vm3946_vm8, %v8908_v61 }
 0x894   : > { %8258 = vmatprep.subr.bf16.mxu1 %v9957_v40 }
 0x895   : > { %8301 = vmatpush3.bf16.msra.mxu0 %v8924_v30 }
 0x896   : > { %8302 = vmatprep.subr.bf16.mxu0 %v8925_v4 }
 0x897   : > { %8259 = vmatpush3.bf16.msra.mxu1 %v9957_v40 }
 0x898   : > { %8755 = vmatprep.subr.msk.bf16.mxu1 %vm2216_vm4, %v9965_v46 }
 0x899   : > { %8303 = vmatpush3.bf16.msra.mxu0 %v8925_v4 }
 0x89a   : > { %8249 = vmatmul.mubr.msk.bf16.gmra.mrb[240].mxu1 %vm3946_vm8, %v8909_v49  ;;  %8316 = vmatprep.subr.bf16.mxu0 %v8997_v54 }
 0x89b   : > { %8261 = vmatpush3.bf16.msra.mxu1 %v4236_v31  ;;  %8262 = vmatprep.mubr.msk.bf16.mxu1 %vm3946_vm8, %v8910_v22 }
 0x89c   : > { %8274 = vmatprep.subr.bf16.mxu1 %v4375_v28 }
 0x8a2   : > { %8263 = vmatmul.mubr.msk.bf16.vlgmr.msra.gmra.mrb[228].mxu1 %vm3946_vm8, %v8911_v24 }
 0x8a3   : > { %8275 = vmatpush3.bf16.msra.mxu1 %v4375_v28  ;;  %8266 = vmatprep.mubr.msk.bf16.mxu1 %vm3946_vm8, %v8912_v55 }
 0x8a4   : > { %8276 = vmatprep.subr.bf16.mxu1 %v4377_v59 }
 0x8a7   : > { %8277 = vmatpush3.bf16.msra.mxu1 %v4377_v59 }
 0x8a8   : > { %8278 = vmatprep.subr.bf16.mxu1 %v4379_v34 }
 0x8aa   : > { %8267 = vmatmul.mubr.msk.bf16.gmra.mrb[232].mxu1 %vm3946_vm8, %v8913_v60 }
 0x8ab   : > { %8279 = vmatpush3.bf16.msra.mxu1 %v4379_v34  ;;  %8270 = vmatprep.mubr.msk.bf16.mxu1 %vm3946_vm8, %v8914_v63 }
 0x8ac   : > { %8280 = vmatprep.subr.bf16.mxu1 %v4381_v29 }
 0x8af   : > { %8281 = vmatpush3.bf16.msra.mxu1 %v4381_v29 }
 0x8b0   : > { %8756 = vmatprep.subr.msk.bf16.mxu1 %vm2216_vm4, %v4383_v0 }
 0x8b2   : > { %8271 = vmatmul.mubr.msk.bf16.gmra.mrb[244].mxu1 %vm3946_vm8, %v8915_v58 }
 0x8b3   : > { %8283 = vmatpush3.bf16.msra.mxu1 %v4407_v56  ;;  %8284 = vmatprep.mubr.msk.bf16.mxu1 %vm3946_vm8, %v8916_v2 }
 0x8b4   : > { %8396 = vmatprep.subr.bf16.mxu1 %v8997_v54 }
 0x8ba   : > { %8285 = vmatmul.mubr.msk.bf16.vlgmr.msra.gmra.mrb[228].mxu1 %vm3946_vm8, %v8917_v33 }
 0x8bb   : > { %8288 = vmatprep.mubr.msk.bf16.mxu1 %vm3946_vm8, %v8918_v3 }
 0x8c2   : > { %8289 = vmatmul.mubr.msk.bf16.gmra.mrb[232].mxu1 %vm3946_vm8, %v8919_v1 }
 0x8c3   : > { %8292 = vmatprep.mubr.msk.bf16.mxu1 %vm3946_vm8, %v8920_v15 }
 0x8ca   : > { %8293 = vmatmul.mubr.msk.bf16.gmra.mrb[248].mxu1 %vm3946_vm8, %v8921_v32 }
 0x8cb   : > { %8408 = vmatprep.mubr.msk.bf16.mxu1 %vm8998_vm1, %v8997_v54 }
 0x955   : > { %v8228_v57 = vpop.f32.mrb[236].mxu1 }
 0x956   : > { %v4034_v6 = vpop.f32.mrb[237].mxu1 }
 0x957   : > { %v8229_v8 = vpop.f32.mrb[238].mxu1 }
 0x958   : > { %v4037_v27 = vpop.f32.mrb[239].mxu1 }
 0x96d   : > { %v8250_v9 = vpop.f32.mrb[240].mxu1 }
 0x96e   : > { %v4172_v7 = vadd.f32 %v8250_v9, %v8228_v57  ;;  %v4163_v11 = vpop.f32.mrb[241].mxu1 }
 0x96f   : > { %v4164_v14 = vadd.f32 %v4163_v11, %v4034_v6  ;;  %v8251_v17 = vpop.f32.mrb[242].mxu1 }
 0x970   : > { %v4166_v10 = vpop.f32.mrb[243].mxu1 }
 0x971   : > { %v4167_v19 = vadd.f32 %v4166_v10, %v4037_v27 }
 0x985   : > { %v8272_v37 = vpop.f32.mrb[244].mxu1 }
 0x986   : > { %v4328_v36 = vadd.f32 %v8272_v37, %v4172_v7  ;;  %v4304_v38 = vpop.f32.mrb[245].mxu1 }
 0x987   : > { %v4326_v39 = vadd.f32 %v4304_v38, %v4164_v14  ;;  %v8273_v40 = vpop.f32.mrb[246].mxu1 }
 0x988   : > { %v4307_v41 = vpop.f32.mrb[247].mxu1 }
 0x989   : > { %v4327_v42 = vadd.f32 %v4307_v41, %v4167_v19 }
 0x98d   : > { %v8286_v45 = vpop.f32.mrb[228].mxu1 }
 0x98e   : > { %v4509_v51 = vadd.f32 %v8286_v45, %v7083_v44  ;;  %v4443_v46 = vpop.f32.mrb[229].mxu1 }
 0x98f   : > { %v4507_v50 = vadd.f32 %v7083_v44, %v4443_v46  ;;  %v8287_v43 = vpop.f32.mrb[230].mxu1 }
 0x990   : > { %v4510_v53 = vadd.f32 %v8287_v43, %v7083_v44  ;;  %v4446_v13 = vpop.f32.mrb[231].mxu1  ;;  %v4520_v48 = vmax.f32 %v4509_v51, 0.0 }
 0x991   : > { %v4508_v52 = vadd.f32 %v7083_v44, %v4446_v13  ;;  %v4518_v47 = vmax.f32 %v4507_v50, 0.0  ;;  %v8926_v13 = vld [vmem:[%s10686_s14 + $0x38] sm:$0xff]  }
 0x992   : > { %v4521_v20 = vmax.f32 %v4510_v53, 0.0 }
 0x993   : > { %v4519_v62 = vmax.f32 %v4508_v52, 0.0 }
 0x994   : > { %v4530_v12 = vpack.c.bf16 %v4521_v20, %v4520_v48  ;;  %v8927_v20 = vld [vmem:[%s10686_s14 + $0x40] sm:$0xff]  }
 0x995   : > { %v4529_v18 = vpack.c.bf16 %v4519_v62, %v4518_v47  ;;  %v8290_v23 = vpop.f32.mrb[232].mxu1 }
 0x996   : > { %v4513_v16 = vadd.f32 %v8290_v23, %v7083_v44  ;;  %v4459_v26 = vpop.f32.mrb[233].mxu1 }
 0x997   : > { %v4511_v21 = vadd.f32 %v7083_v44, %v4459_v26  ;;  %v8291_v25 = vpop.f32.mrb[234].mxu1  ;;  %8304 = vmatprep.mubr.msk.bf16.mxu0 %vm3188_vm7, %v4529_v18 }
 0x998   : > { %v4514_v61 = vadd.f32 %v8291_v25, %v7083_v44  ;;  %v4462_v49 = vpop.f32.mrb[235].mxu1  ;;  %8305 = vmatmul.mubr.msk.bf16.vlgmr.msra.gmra.mrb[144].mxu0 %vm3188_vm7, %v4530_v12  ;;  %v4524_v31 = vmax.f32 %v4513_v16, 0.0  ;;  %v8928_v12 = vld [vmem:[%s10686_s14 + $0x48] sm:$0xff]   ;;  %v8934_v16 = vld [vmem:[%s10686_s14 + $0x70] sm:$0xff]   ;;  %v8936_v25 = vld [vmem:[%s10686_s14 + $0x78] sm:$0xff]  }
 0x999   : > { %v4512_v22 = vadd.f32 %v7083_v44, %v4462_v49  ;;  %v4522_v24 = vmax.f32 %v4511_v21, 0.0  ;;  %v8929_v21 = vld [vmem:[%s10686_s14 + $0x50] sm:$0xff]   ;;  %v8938_v49 = vld [vmem:[%s10686_s14 + $0x80] sm:$0xff]  }
 0x99a   : > { %v4525_v28 = vmax.f32 %v4514_v61, 0.0  ;;  %v8930_v61 = vld [vmem:[%s10686_s14 + $0x58] sm:$0xff]  }
 0x99b   : > { %v4523_v55 = vmax.f32 %v4512_v22, 0.0  ;;  %v8931_v22 = vld [vmem:[%s10686_s14 + $0x60] sm:$0xff]  }
 0x99c   : > { %v4532_v59 = vpack.c.bf16 %v4525_v28, %v4524_v31  ;;  %v8940_v31 = vld [vmem:[%s10686_s14 + $0x88] sm:$0xff]  }
 0x99d   : > { %v4531_v60 = vpack.c.bf16 %v4523_v55, %v4522_v24  ;;  %v8294_v34 = vpop.f32.mrb[248].mxu1  ;;  %v8932_v24 = vld [vmem:[%s10686_s14 + $0x68] sm:$0xff]  }
 0x99e   : > { %v4499_v63 = vadd.f32 %v8294_v34, %v4328_v36  ;;  %v4475_v29 = vpop.f32.mrb[249].mxu1 }
 0x99f   : > { %v4497_v58 = vadd.f32 %v4475_v29, %v4326_v39  ;;  %v8295_v0 = vpop.f32.mrb[250].mxu1  ;;  %8308 = vmatprep.mubr.msk.bf16.mxu0 %vm3188_vm7, %v4531_v60  ;;  %v8933_v60 = vld [vmem:[%s10686_s14] sm:$0xff]   ;;  %v8935_v29 = vld [vmem:[%s10686_s14 + $0x8] sm:$0xff]  }
 0x9a0   : > { %v4517_v2 = vadd.f32 %v7083_v44, %v4499_v63  ;;  %v4478_v56 = vpop.f32.mrb[251].mxu1  ;;  %8309 = vmatmul.mubr.msk.bf16.gmra.mrb[148].mxu0 %vm3188_vm7, %v4532_v59  ;;  %v8942_v59 = vld [vmem:[%s10686_s14 + $0x90] sm:$0xff]   ;;  %v8944_v63 = vld [vmem:[%s10686_s14 + $0x98] sm:$0xff]   ;;  %v8946_v0 = vld [vmem:[%s10686_s14 + $0xa0] sm:$0xff]  }
 0x9a1   : > { %v4515_v33 = vadd.f32 %v7083_v44, %v4497_v58  ;;  %v4498_v3 = vadd.f32 %v4478_v56, %v4327_v42  ;;  %v8937_v56 = vld [vmem:[%s10686_s14 + $0x10] sm:$0xff]  }
 0x9a2   : > { %v4528_v15 = vmax.f32 %v4517_v2, 0.0 }
 0x9a3   : > { %v4516_v1 = vadd.f32 %v7083_v44, %v4498_v3  ;;  %v4526_v32 = vmax.f32 %v4515_v33, 0.0 }
 0x9a4   : > { %v4534_v30 = vpack.c.bf16 %v4528_v15, %v4528_v15  ;;  %v8941_v15 = vld [vmem:[%s10686_s14 + $0x20] sm:$0xff]  }
 0x9a5   : > { %v4527_v5 = vmax.f32 %v4516_v1, 0.0  ;;  %v8939_v1 = vld [vmem:[%s10686_s14 + $0x18] sm:$0xff]  }
 0x9a7   : > { %v4533_v35 = vpack.c.bf16 %v4527_v5, %v4526_v32  ;;  %v8943_v32 = vld [vmem:[%s10686_s14 + $0x28] sm:$0xff]   ;;  %v8945_v5 = vld [vmem:[%s10686_s14 + $0x30] sm:$0xff]  }
 0x9a9   : > { %8312 = vmatprep.mubr.msk.bf16.mxu0 %vm3188_vm7, %v4533_v35  ;;  %v8947_v35 = vld [vmem:[%s10686_s14 + $0xa8] sm:$0xff]  }
 0x9aa   : > { %8313 = vmatmul.mubr.msk.bf16.gmra.mrb[152].mxu0 %vm3188_vm7, %v4534_v30  ;;  %v8948_v30 = vld [vmem:[%s10686_s14 + $0xb0] sm:$0xff]  }
 0x9ab   : > { %8328 = vmatprep.mubr.msk.bf16.mxu0 %vm8998_vm1, %v8997_v54 }
 0xa6b   : > { %v8306_v4 = vpop.f32.mrb[144].mxu0 }
 0xa6c   : > { %v4619_v57 = vpop.f32.mrb[145].mxu0 }
 0xa6d   : > { %v8307_v6 = vpop.f32.mrb[146].mxu0 }
 0xa6e   : > { %v10110_v8 = vpack.c.bf16 %v8307_v6, %v8306_v4  ;;  %v4622_v27 = vpop.f32.mrb[147].mxu0  ;;  %v8949_v4 = vld [vmem:[%s10686_s14 + $0xb8] sm:$0xff]   ;;  %v8951_v6 = vld [vmem:[%s10686_s14 + $0xc8] sm:$0xff]  }
 0xa6f   : > { %v4665_v9 = vpack.c.bf16 %v4622_v27, %v4619_v57  ;;  %v8950_v57 = vld [vmem:[%s10686_s14 + $0xc0] sm:$0xff]   ;;  %v8953_v27 = vld [vmem:[%s10686_s14 + $0xd8] sm:$0xff]  }
 0xa70   : > { %4743 = vrot.lane.b32.xlu1 %v10110_v8, %s9001_s5 }
 0xa71   : > { %4741 = vrot.lane.b32.xlu0 %v4665_v9, %s9001_s5 }
 0xa73   : > { %v8310_v7 = vpop.f32.mrb[148].mxu0 }
 0xa74   : > { %v4635_v11 = vpop.f32.mrb[149].mxu0 }
 0xa75   : > { %v8311_v14 = vpop.f32.mrb[150].mxu0 }
 0xa76   : > { %v10113_v17 = vpack.c.bf16 %v8311_v14, %v8310_v7  ;;  %v4638_v10 = vpop.f32.mrb[151].mxu0  ;;  %v8955_v7 = vld [vmem:[%s10688_s16 + $0x8] sm:$0xff]  }
 0xa77   : > { %v4667_v19 = vpack.c.bf16 %v4638_v10, %v4635_v11 }
 0xa78   : > { %4747 = vrot.lane.b32.xlu1 %v10113_v17, %s9001_s5 }
 0xa79   : > { %4745 = vrot.lane.b32.xlu0 %v4667_v19, %s9001_s5 }
 0xa7d   : > { %v8314_v37 = vpop.f32.mrb[152].mxu0 }
 0xa7e   : > { %v10116_v36 = vpack.c.bf16 %v8314_v37, %v8314_v37  ;;  %v4651_v38 = vpop.f32.mrb[153].mxu0 }
 0xa7f   : > { %v8315_v39 = vpop.f32.mrb[154].mxu0 }
 0xa80   : > { %4751 = vrot.lane.b32.xlu1 %v10116_v36, %s9001_s5  ;;  %v4654_v40 = vpop.f32.mrb[155].mxu0  ;;  %v4928_v26 = vsel %vm2216_vm4, %v10116_v36, 0 }
 0xa81   : > { %v10119_v41 = vpack.c.bf16 %v4654_v40, %v4651_v38 }
 0xa83   : > { %4749 = vrot.lane.b32.xlu0 %v10119_v41, %s9001_s5  ;;  %s6739_s5 = sshll.u32 %s10714_s30, 3 }
 0xa84   : > { %5263 = vrot.lane.b32.xlu1 %v4665_v9, %s9002_s24  ;;  %s683_s2 = scalar_lea.vmem %s10694_s22, %s6739_s5 }
 0xa87   : > { %5069 = vrot.lane.b32.xlu0 %v4665_v9, %s9000_s27 }
 0xa88   : > { %5265 = vrot.lane.b32.xlu1 %v10110_v8, %s9002_s24 }
 0xa8b   : > { %5071 = vrot.lane.b32.xlu0 %v10110_v8, %s9000_s27 }
 0xa8c   : > { %5267 = vrot.lane.b32.xlu1 %v4667_v19, %s9002_s24 }
 0xa8f   : > { %5073 = vrot.lane.b32.xlu0 %v4667_v19, %s9000_s27 }
 0xa90   : > { %5269 = vrot.lane.b32.xlu1 %v10113_v17, %s9002_s24 }
 0xa93   : > { %5075 = vrot.lane.b32.xlu0 %v10113_v17, %s9000_s27 }
 0xa94   : > { %5271 = vrot.lane.b32.xlu1 %v10119_v41, %s9002_s24 }
 0xa97   : > { %5077 = vrot.lane.b32.xlu0 %v10119_v41, %s9000_s27 }
 0xa98   : > { %5273 = vrot.lane.b32.xlu1 %v10116_v36, %s9002_s24 }
 0xa9b   : > { %5079 = vrot.lane.b32.xlu0 %v10116_v36, %s9000_s27 }
 0xae2   : > { %v4744_v44 = vpop.permute.xlu1 %4743 }
 0xae3   : > { %v4742_v42 = vpop.permute.xlu0 %4741 }
 0xae4   : > { %8317 = vmatpush3.bf16.msra.mxu0 %v4742_v42 }
 0xae5   : > { %8318 = vmatprep.subr.bf16.mxu0 %v8997_v54 }
 0xae8   : > { %8319 = vmatpush3.bf16.msra.mxu0 %v4744_v44 }
 0xae9   : > { %8320 = vmatprep.subr.bf16.mxu0 %v8997_v54 }
 0xaea   : > { %v4748_v51 = vpop.permute.xlu1 %4747 }
 0xaeb   : > { %v4746_v45 = vpop.permute.xlu0 %4745 }
 0xaec   : > { %8321 = vmatpush3.bf16.msra.mxu0 %v4746_v45 }
 0xaed   : > { %8322 = vmatprep.subr.bf16.mxu0 %v8997_v54 }
 0xaf0   : > { %8323 = vmatpush3.bf16.msra.mxu0 %v4748_v51 }
 0xaf1   : > { %8324 = vmatprep.subr.bf16.mxu0 %v8997_v54 }
 0xaf2   : > { %v4752_v50 = vpop.permute.xlu1 %4751 }
 0xaf3   : > { %v4780_v43 = vsel %vm2216_vm4, %v4752_v50, 0 }
 0xaf5   : > { %v4750_v46 = vpop.permute.xlu0 %4749 }
 0xaf6   : > { %8325 = vmatpush3.bf16.msra.mxu0 %v4750_v46  ;;  %v5264_v28 = vpop.permute.xlu1 %5263 }
 0xaf7   : > { %8326 = vmatprep.subr.bf16.mxu0 %v8997_v54 }
 0xaf9   : > { %v5070_v53 = vpop.permute.xlu0 %5069 }
 0xafa   : > { %8327 = vmatpush3.bf16.msra.mxu0 %v4780_v43  ;;  %8397 = vmatpush3.bf16.msra.mxu1 %v5070_v53  ;;  %v5266_v55 = vpop.permute.xlu1 %5265 }
 0xafb   : > { %8356 = vmatprep.subr.bf16.mxu0 %v8997_v54  ;;  %8398 = vmatprep.subr.bf16.mxu1 %v8997_v54 }
 0xafd   : > { %8329 = vmatmul.mubr.msk.bf16.vlgmr.msra.gmra.mrb[156].mxu0 %vm2879_vm6, %v8926_v13  ;;  %v5072_v52 = vpop.permute.xlu0 %5071 }
 0xafe   : > { %8357 = vmatpush3.bf16.msra.mxu0 %v4665_v9  ;;  %8399 = vmatpush3.bf16.msra.mxu1 %v5072_v52  ;;  %v5268_v34 = vpop.permute.xlu1 %5267  ;;  %v8954_v9 = vld [vmem:[%s10688_s16] sm:$0xff]  }
 0xaff   : > { %8358 = vmatprep.subr.bf16.mxu0 %v8997_v54  ;;  %8400 = vmatprep.subr.bf16.mxu1 %v8997_v54 }
 0xb00   : > { %8332 = vmatprep.mubr.msk.bf16.mxu0 %vm8998_vm1, %v8997_v54 }
 0xb01   : > { %v5074_v48 = vpop.permute.xlu0 %5073 }
 0xb02   : > { %8359 = vmatpush3.bf16.msra.mxu0 %v10110_v8  ;;  %8401 = vmatpush3.bf16.msra.mxu1 %v5074_v48  ;;  %v5270_v58 = vpop.permute.xlu1 %5269  ;;  %v8952_v8 = vld [vmem:[%s10686_s14 + $0xd0] sm:$0xff]  }
 0xb03   : > { %8360 = vmatprep.subr.bf16.mxu0 %v8997_v54  ;;  %8402 = vmatprep.subr.bf16.mxu1 %v8997_v54 }
 0xb05   : > { %8333 = vmatmul.mubr.msk.bf16.gmra.mrb[160].mxu0 %vm2879_vm6, %v8927_v20  ;;  %v5076_v47 = vpop.permute.xlu0 %5075 }
 0xb06   : > { %8361 = vmatpush3.bf16.msra.mxu0 %v4667_v19  ;;  %8403 = vmatpush3.bf16.msra.mxu1 %v5076_v47  ;;  %v5272_v2 = vpop.permute.xlu1 %5271 }
 0xb07   : > { %8362 = vmatprep.subr.bf16.mxu0 %v8997_v54  ;;  %8404 = vmatprep.subr.bf16.mxu1 %v8997_v54 }
 0xb08   : > { %8336 = vmatprep.mubr.msk.bf16.mxu0 %vm8998_vm1, %v8997_v54 }
 0xb09   : > { %v5078_v62 = vpop.permute.xlu0 %5077 }
 0xb0a   : > { %8363 = vmatpush3.bf16.msra.mxu0 %v10113_v17  ;;  %8405 = vmatpush3.bf16.msra.mxu1 %v5078_v62  ;;  %v5274_v33 = vpop.permute.xlu1 %5273 }
 0xb0b   : > { %8364 = vmatprep.subr.bf16.mxu0 %v8997_v54  ;;  %8406 = vmatprep.subr.bf16.mxu1 %v8997_v54  ;;  %v5302_v3 = vsel %vm2216_vm4, %v5274_v33, 0 }
 0xb0d   : > { %8337 = vmatmul.mubr.msk.bf16.gmra.mrb[164].mxu0 %vm2879_vm6, %v8928_v12  ;;  %v5080_v18 = vpop.permute.xlu0 %5079 }
 0xb0e   : > { %v5108_v23 = vsel %vm2216_vm4, %v5080_v18, 0  ;;  %8365 = vmatpush3.bf16.msra.mxu0 %v10119_v41  ;;  %8340 = vmatprep.mubr.msk.bf16.mxu0 %vm8998_vm1, %v8997_v54 }
 0xb0f   : > { %8407 = vmatpush3.bf16.msra.mxu1 %v5108_v23  ;;  %8366 = vmatprep.subr.bf16.mxu0 %v8997_v54 }
 0xb10   : > { %8476 = vmatprep.subr.bf16.mxu1 %v8997_v54 }
 0xb12   : > { %8367 = vmatpush3.bf16.msra.mxu0 %v4928_v26  ;;  %8409 = vmatmul.mubr.msk.bf16.vlgmr.msra.gmra.mrb[252].mxu1 %vm2879_vm6, %v8934_v16 }
 0xb13   : > { %8436 = vmatprep.subr.bf16.mxu0 %v8997_v54  ;;  %8412 = vmatprep.mubr.msk.bf16.mxu1 %vm8998_vm1, %v8997_v54 }
 0xb14   : > { %8477 = vmatpush3.bf16.msra.mxu1 %v8954_v9 }
 0xb15   : > { %8341 = vmatmul.mubr.msk.bf16.gmra.mrb[168].mxu0 %vm2879_vm6, %v8929_v21  ;;  %8478 = vmatprep.subr.bf16.mxu1 %v8997_v54 }
 0xb16   : > { %8344 = vmatprep.mubr.msk.bf16.mxu0 %vm8998_vm1, %v8997_v54 }
 0xb18   : > { %8479 = vmatpush3.bf16.msra.mxu1 %v8955_v7 }
 0xb19   : > { %8628 = vmatprep.subr.bf16.mxu1 %v8997_v54 }
 0xb1a   : > { %8413 = vmatmul.mubr.msk.bf16.gmra.mrb[0].mxu1 %vm2879_vm6, %v8936_v25 }
 0xb1b   : > { %8416 = vmatprep.mubr.msk.bf16.mxu1 %vm8998_vm1, %v8997_v54 }
 0xb1d   : > { %8345 = vmatmul.mubr.msk.bf16.gmra.mrb[172].mxu0 %vm2879_vm6, %v8930_v61 }
 0xb1e   : > { %8348 = vmatprep.mubr.msk.bf16.mxu0 %vm8998_vm1, %v8997_v54 }
 0xb22   : > { %8417 = vmatmul.mubr.msk.bf16.gmra.mrb[4].mxu1 %vm2879_vm6, %v8938_v49 }
 0xb23   : > { %8420 = vmatprep.mubr.msk.bf16.mxu1 %vm8998_vm1, %v8997_v54 }
 0xb25   : > { %8349 = vmatmul.mubr.msk.bf16.gmra.mrb[176].mxu0 %vm2879_vm6, %v8931_v22 }
 0xb26   : > { %8352 = vmatprep.mubr.msk.bf16.mxu0 %vm8998_vm1, %v8997_v54 }
 0xb2a   : > { %8421 = vmatmul.mubr.msk.bf16.gmra.mrb[8].mxu1 %vm2879_vm6, %v8940_v31 }
 0xb2b   : > { %8424 = vmatprep.mubr.msk.bf16.mxu1 %vm8998_vm1, %v8997_v54 }
 0xb2d   : > { %8353 = vmatmul.mubr.msk.bf16.gmra.mrb[180].mxu0 %vm2879_vm6, %v8932_v24 }
 0xb2e   : > { %8368 = vmatprep.mubr.msk.bf16.mxu0 %vm8998_vm1, %v8997_v54 }
 0xb32   : > { %8425 = vmatmul.mubr.msk.bf16.gmra.mrb[12].mxu1 %vm2879_vm6, %v8942_v59 }
 0xb33   : > { %8428 = vmatprep.mubr.msk.bf16.mxu1 %vm8998_vm1, %v8997_v54 }
 0xb35   : > { %8369 = vmatmul.mubr.msk.bf16.vlgmr.msra.gmra.mrb[184].mxu0 %vm2879_vm6, %v8933_v60 }
 0xb36   : > { %8437 = vmatpush3.bf16.msra.mxu0 %v5264_v28  ;;  %8372 = vmatprep.mubr.msk.bf16.mxu0 %vm8998_vm1, %v8997_v54 }
 0xb37   : > { %8438 = vmatprep.subr.bf16.mxu0 %v8997_v54 }
 0xb3a   : > { %8439 = vmatpush3.bf16.msra.mxu0 %v5266_v55  ;;  %8429 = vmatmul.mubr.msk.bf16.gmra.mrb[16].mxu1 %vm2879_vm6, %v8944_v63 }
 0xb3b   : > { %8440 = vmatprep.subr.bf16.mxu0 %v8997_v54  ;;  %8432 = vmatprep.mubr.msk.bf16.mxu1 %vm8998_vm1, %v8997_v54 }
 0xb3d   : > { %8373 = vmatmul.mubr.msk.bf16.gmra.mrb[188].mxu0 %vm2879_vm6, %v8935_v29 }
 0xb3e   : > { %8441 = vmatpush3.bf16.msra.mxu0 %v5268_v34  ;;  %8376 = vmatprep.mubr.msk.bf16.mxu0 %vm8998_vm1, %v8997_v54 }
 0xb3f   : > { %8442 = vmatprep.subr.bf16.mxu0 %v8997_v54 }
 0xb42   : > { %8443 = vmatpush3.bf16.msra.mxu0 %v5270_v58  ;;  %8433 = vmatmul.mubr.msk.bf16.gmra.mrb[20].mxu1 %vm2879_vm6, %v8946_v0 }
 0xb43   : > { %8444 = vmatprep.subr.bf16.mxu0 %v8997_v54  ;;  %8480 = vmatprep.mubr.msk.bf16.mxu1 %vm8998_vm1, %v8997_v54 }
 0xb45   : > { %8377 = vmatmul.mubr.msk.bf16.gmra.mrb[192].mxu0 %vm2879_vm6, %v8937_v56 }
 0xb46   : > { %8445 = vmatpush3.bf16.msra.mxu0 %v5272_v2  ;;  %8380 = vmatprep.mubr.msk.bf16.mxu0 %vm8998_vm1, %v8997_v54 }
 0xb47   : > { %8446 = vmatprep.subr.bf16.mxu0 %v8997_v54 }
 0xb4a   : > { %8447 = vmatpush3.bf16.msra.mxu0 %v5302_v3 }
 0xb4d   : > { %8381 = vmatmul.mubr.msk.bf16.gmra.mrb[196].mxu0 %vm2879_vm6, %v8939_v1 }
 0xb4e   : > { %8384 = vmatprep.mubr.msk.bf16.mxu0 %vm8998_vm1, %v8997_v54 }
 0xb55   : > { %8385 = vmatmul.mubr.msk.bf16.gmra.mrb[200].mxu0 %vm2879_vm6, %v8941_v15 }
 0xb56   : > { %8388 = vmatprep.mubr.msk.bf16.mxu0 %vm8998_vm1, %v8997_v54 }
 0xb5d   : > { %8389 = vmatmul.mubr.msk.bf16.gmra.mrb[204].mxu0 %vm2879_vm6, %v8943_v32 }
 0xb5e   : > { %8392 = vmatprep.mubr.msk.bf16.mxu0 %vm8998_vm1, %v8997_v54 }
 0xb65   : > { %8393 = vmatmul.mubr.msk.bf16.gmra.mrb[208].mxu0 %vm2879_vm6, %v8945_v5 }
 0xb66   : > { %8448 = vmatprep.mubr.msk.bf16.mxu0 %vm8998_vm1, %v8997_v54 }
 0xb6d   : > { %8449 = vmatmul.mubr.msk.bf16.vlgmr.msra.gmra.mrb[212].mxu0 %vm2879_vm6, %v8947_v35 }
 0xb6e   : > { %8452 = vmatprep.mubr.msk.bf16.mxu0 %vm8998_vm1, %v8997_v54 }
 0xb75   : > { %8453 = vmatmul.mubr.msk.bf16.gmra.mrb[216].mxu0 %vm2879_vm6, %v8948_v30 }
 0xb76   : > { %8456 = vmatprep.mubr.msk.bf16.mxu0 %vm8998_vm1, %v8997_v54 }
 0xb7d   : > { %8457 = vmatmul.mubr.msk.bf16.gmra.mrb[220].mxu0 %vm2879_vm6, %v8949_v4 }
 0xb7e   : > { %8460 = vmatprep.mubr.msk.bf16.mxu0 %vm8998_vm1, %v8997_v54 }
 0xb85   : > { %8461 = vmatmul.mubr.msk.bf16.gmra.mrb[224].mxu0 %vm2879_vm6, %v8950_v57 }
 0xb86   : > { %8464 = vmatprep.mubr.msk.bf16.mxu0 %vm8998_vm1, %v8997_v54 }
 0xb8d   : > { %8465 = vmatmul.mubr.msk.bf16.gmra.mrb[228].mxu0 %vm2879_vm6, %v8951_v6 }
 0xb8e   : > { %8468 = vmatprep.mubr.msk.bf16.mxu0 %vm8998_vm1, %v8997_v54 }
 0xb95   : > { %8469 = vmatmul.mubr.msk.bf16.gmra.mrb[232].mxu0 %vm2879_vm6, %v8952_v8 }
 0xb96   : > { %8472 = vmatprep.mubr.msk.bf16.mxu0 %vm8998_vm1, %v8997_v54 }
 0xb9d   : > { %8473 = vmatmul.mubr.msk.bf16.gmra.mrb[236].mxu0 %vm2879_vm6, %v8953_v27 }
 0xbd0   : > { %v4816_v11 = vpop.f32.mrb[156].mxu0 }
 0xbd1   : > { %v8330_v14 = vpop.f32.mrb[157].mxu0 }
 0xbd2   : > { %v4819_v17 = vpop.f32.mrb[158].mxu0 }
 0xbd3   : > { %v8331_v10 = vpop.f32.mrb[159].mxu0 }
 0xbd8   : > { %v4824_v19 = vpop.f32.mrb[160].mxu0 }
 0xbd9   : > { %v8334_v37 = vpop.f32.mrb[161].mxu0 }
 0xbda   : > { %v4827_v36 = vpop.f32.mrb[162].mxu0 }
 0xbdb   : > { %v8335_v38 = vpop.f32.mrb[163].mxu0 }
 0xbe0   : > { %v10341_v39 = vpop.f32.mrb[164].mxu0 }
 0xbe1   : > { %v8338_v40 = vpop.f32.mrb[165].mxu0 }
 0xbe2   : > { %v10343_v41 = vpop.f32.mrb[166].mxu0 }
 0xbe3   : > { %v8339_v42 = vpop.f32.mrb[167].mxu0 }
 0xbe5   : > { %v5144_v44 = vpop.f32.mrb[252].mxu1 }
 0xbe6   : > { %v8410_v45 = vpop.f32.mrb[253].mxu1 }
 0xbe7   : > { %v5147_v51 = vpop.f32.mrb[254].mxu1 }
 0xbe8   : > { %v10345_v46 = vpop.f32.mrb[168].mxu0  ;;  %v8411_v50 = vpop.f32.mrb[255].mxu1 }
 0xbe9   : > { %v8342_v43 = vpop.f32.mrb[169].mxu0 }
 0xbea   : > { %v10347_v53 = vpop.f32.mrb[170].mxu0 }
 0xbeb   : > { %v8343_v13 = vpop.f32.mrb[171].mxu0 }
 0xbed   : > { %v5152_v52 = vpop.f32.mrb[0].mxu1 }
 0xbee   : > { %v8414_v48 = vpop.f32.mrb[1].mxu1 }
 0xbef   : > { %v5155_v20 = vpop.f32.mrb[2].mxu1 }
 0xbf0   : > { %v10349_v47 = vpop.f32.mrb[172].mxu0  ;;  %v8415_v62 = vpop.f32.mrb[3].mxu1 }
 0xbf1   : > { %v8346_v12 = vpop.f32.mrb[173].mxu0 }
 0xbf2   : > { %v10351_v18 = vpop.f32.mrb[174].mxu0 }
 0xbf3   : > { %v8347_v23 = vpop.f32.mrb[175].mxu0 }
 0xbf5   : > { %v5160_v16 = vpop.f32.mrb[4].mxu1 }
 0xbf6   : > { %v8418_v26 = vpop.f32.mrb[5].mxu1 }
 0xbf7   : > { %v5163_v21 = vpop.f32.mrb[6].mxu1 }
 0xbf8   : > { %v10353_v25 = vpop.f32.mrb[176].mxu0  ;;  %v8419_v61 = vpop.f32.mrb[7].mxu1 }
 0xbf9   : > { %v8350_v49 = vpop.f32.mrb[177].mxu0 }
 0xbfa   : > { %v10355_v22 = vpop.f32.mrb[178].mxu0 }
 0xbfb   : > { %v8351_v31 = vpop.f32.mrb[179].mxu0 }
 0xbfd   : > { %v5168_v28 = vpop.f32.mrb[8].mxu1 }
 0xbfe   : > { %v8422_v24 = vpop.f32.mrb[9].mxu1 }
 0xbff   : > { %v5171_v55 = vpop.f32.mrb[10].mxu1 }
 0xc00   : > { %v10357_v59 = vpop.f32.mrb[180].mxu0  ;;  %v8423_v60 = vpop.f32.mrb[11].mxu1 }
 0xc01   : > { %v8354_v34 = vpop.f32.mrb[181].mxu0 }
 0xc02   : > { %v10359_v63 = vpop.f32.mrb[182].mxu0 }
 0xc03   : > { %v8355_v29 = vpop.f32.mrb[183].mxu0 }
 0xc05   : > { %v5176_v58 = vpop.f32.mrb[12].mxu1 }
 0xc06   : > { %v8426_v0 = vpop.f32.mrb[13].mxu1 }
 0xc07   : > { %v5179_v2 = vpop.f32.mrb[14].mxu1 }
 0xc08   : > { %v4964_v56 = vpop.f32.mrb[184].mxu0  ;;  %v8427_v33 = vpop.f32.mrb[15].mxu1 }
 0xc09   : > { %v4965_v3 = vadd.f32 %v4964_v56, %v4816_v11  ;;  %v8370_v1 = vpop.f32.mrb[185].mxu0 }
 0xc0a   : > { %v4967_v15 = vpop.f32.mrb[186].mxu0 }
 0xc0b   : > { %v4968_v32 = vadd.f32 %v4967_v15, %v4819_v17  ;;  %v5199_v5 = vadd.f32 %v5144_v44, %v4965_v3  ;;  %v8371_v35 = vpop.f32.mrb[187].mxu0 }
 0xc0d   : > { %v10361_v30 = vadd.f32 %v5147_v51, %v4968_v32  ;;  %v5184_v4 = vpop.f32.mrb[16].mxu1 }
 0xc0e   : > { %v8430_v57 = vpop.f32.mrb[17].mxu1 }
 0xc0f   : > { %v5187_v6 = vpop.f32.mrb[18].mxu1 }
 0xc10   : > { %v4972_v8 = vpop.f32.mrb[188].mxu0  ;;  %v8431_v27 = vpop.f32.mrb[19].mxu1 }
 0xc11   : > { %v4973_v9 = vadd.f32 %v4972_v8, %v4824_v19  ;;  %v8374_v7 = vpop.f32.mrb[189].mxu0 }
 0xc12   : > { %v4975_v14 = vpop.f32.mrb[190].mxu0 }
 0xc13   : > { %v4976_v10 = vadd.f32 %v4975_v14, %v4827_v36  ;;  %v5201_v37 = vadd.f32 %v5152_v52, %v4973_v9  ;;  %v8375_v38 = vpop.f32.mrb[191].mxu0 }
 0xc15   : > { %v5202_v40 = vadd.f32 %v5155_v20, %v4976_v10  ;;  %v5192_v11 = vpop.f32.mrb[20].mxu1 }
 0xc16   : > { %v8434_v42 = vpop.f32.mrb[21].mxu1 }
 0xc17   : > { %v5195_v45 = vpop.f32.mrb[22].mxu1 }
 0xc18   : > { %v4980_v17 = vpop.f32.mrb[192].mxu0  ;;  %v8435_v44 = vpop.f32.mrb[23].mxu1 }
 0xc19   : > { %v4981_v51 = vadd.f32 %v4980_v17, %v10341_v39  ;;  %v8378_v50 = vpop.f32.mrb[193].mxu0 }
 0xc1a   : > { %v4983_v43 = vpop.f32.mrb[194].mxu0 }
 0xc1b   : > { %v4984_v13 = vadd.f32 %v4983_v43, %v10343_v41  ;;  %v5203_v48 = vadd.f32 %v5160_v16, %v4981_v51  ;;  %v8379_v62 = vpop.f32.mrb[195].mxu0 }
 0xc1d   : > { %v10365_v19 = vadd.f32 %v5163_v21, %v4984_v13 }
 0xc20   : > { %v4988_v12 = vpop.f32.mrb[196].mxu0 }
 0xc21   : > { %v4989_v36 = vadd.f32 %v4988_v12, %v10345_v46  ;;  %v8382_v52 = vpop.f32.mrb[197].mxu0 }
 0xc22   : > { %v4991_v20 = vpop.f32.mrb[198].mxu0 }
 0xc23   : > { %v4992_v23 = vadd.f32 %v4991_v20, %v10347_v53  ;;  %v10369_v26 = vadd.f32 %v5168_v28, %v4989_v36  ;;  %v8383_v61 = vpop.f32.mrb[199].mxu0 }
 0xc25   : > { %v10371_v49 = vadd.f32 %v5171_v55, %v4992_v23 }
 0xc28   : > { %v4996_v39 = vpop.f32.mrb[200].mxu0 }
 0xc29   : > { %v4997_v31 = vadd.f32 %v4996_v39, %v10349_v47  ;;  %v8386_v41 = vpop.f32.mrb[201].mxu0 }
 0xc2a   : > { %v4999_v16 = vpop.f32.mrb[202].mxu0 }
 0xc2b   : > { %v5000_v21 = vadd.f32 %v4999_v16, %v10351_v18  ;;  %v10375_v24 = vadd.f32 %v5176_v58, %v4997_v31  ;;  %v8387_v60 = vpop.f32.mrb[203].mxu0 }
 0xc2d   : > { %v10377_v46 = vadd.f32 %v5179_v2, %v5000_v21 }
 0xc30   : > { %v5004_v34 = vpop.f32.mrb[204].mxu0 }
 0xc31   : > { %v5005_v53 = vadd.f32 %v5004_v34, %v10353_v25  ;;  %v8390_v28 = vpop.f32.mrb[205].mxu0 }
 0xc32   : > { %v5007_v29 = vpop.f32.mrb[206].mxu0 }
 0xc33   : > { %v5008_v55 = vadd.f32 %v5007_v29, %v10355_v22  ;;  %v10381_v0 = vadd.f32 %v5184_v4, %v5005_v53  ;;  %v8391_v56 = vpop.f32.mrb[207].mxu0  ;;  %v10394_v22 = vld [vmem:[%s10687_s15] ss:$0 sm:$0xff] }
 0xc35   : > { %v10383_v47 = vadd.f32 %v5187_v6, %v5008_v55 }
 0xc38   : > { %v5012_v33 = vpop.f32.mrb[208].mxu0 }
 0xc39   : > { %v5013_v18 = vadd.f32 %v5012_v33, %v10357_v59  ;;  %v8394_v58 = vpop.f32.mrb[209].mxu0 }
 0xc3a   : > { %v5015_v3 = vpop.f32.mrb[210].mxu0 }
 0xc3b   : > { %v5016_v2 = vadd.f32 %v5015_v3, %v10359_v63  ;;  %v10387_v1 = vadd.f32 %v5192_v11, %v5013_v18  ;;  %v8395_v15 = vpop.f32.mrb[211].mxu0 }
 0xc3d   : > { %v10389_v25 = vadd.f32 %v5195_v45, %v5016_v2 }
 0xc40   : > { %v5338_v32 = vpop.f32.mrb[212].mxu0 }
 0xc41   : > { %v5393_v35 = vadd.f32 %v5338_v32, %v5199_v5  ;;  %v8450_v4 = vpop.f32.mrb[213].mxu0 }
 0xc42   : > { %v5341_v57 = vpop.f32.mrb[214].mxu0 }
 0xc43   : > { %v5414_v59 = vadd.f32 %v10394_v22, %v5393_v35  ;;  %v5394_v6 = vadd.f32 %v5341_v57, %v10361_v30  ;;  %v8451_v8 = vpop.f32.mrb[215].mxu0 }
 0xc45   : > { %v5415_v63 = vadd.f32 %v10394_v22, %v5394_v6  ;;  %v5428_v27 = vmax.f32 %v5414_v59, 0.0 }
 0xc47   : > { %v5429_v9 = vmax.f32 %v5415_v63, 0.0 }
 0xc48   : > { %v5346_v7 = vpop.f32.mrb[216].mxu0 }
 0xc49   : > { %v5442_v14 = vpack.c.bf16 %v5429_v9, %v5428_v27  ;;  %v5395_v10 = vadd.f32 %v5346_v7, %v5201_v37  ;;  %v8454_v38 = vpop.f32.mrb[217].mxu0 }
 0xc4a   : > { %v5349_v11 = vpop.f32.mrb[218].mxu0 }
 0xc4b   : > { %v5416_v42 = vadd.f32 %v10394_v22, %v5395_v10  ;;  %v5396_v45 = vadd.f32 %v5349_v11, %v5202_v40  ;;  %8481 = vmatmul.mubr.msk.bf16.vlgmr.msra.gmra.mrb[24].mxu1 %vm2240_vm5, %v5442_v14  ;;  %v8455_v5 = vpop.f32.mrb[219].mxu0 }
 0xc4c   : > { %8484 = vmatprep.mubr.msk.bf16.mxu1 %vm8998_vm1, %v8997_v54 }
 0xc4d   : > { %v5417_v30 = vadd.f32 %v10394_v22, %v5396_v45  ;;  %v5430_v17 = vmax.f32 %v5416_v42, 0.0 }
 0xc4f   : > { %v5431_v44 = vmax.f32 %v5417_v30, 0.0 }
 0xc50   : > { %v5354_v51 = vpop.f32.mrb[220].mxu0 }
 0xc51   : > { %v5443_v50 = vpack.c.bf16 %v5431_v44, %v5430_v17  ;;  %v5397_v43 = vadd.f32 %v5354_v51, %v5203_v48  ;;  %v8458_v13 = vpop.f32.mrb[221].mxu0 }
 0xc52   : > { %v5357_v37 = vpop.f32.mrb[222].mxu0 }
 0xc53   : > { %v5418_v62 = vadd.f32 %v10394_v22, %v5397_v43  ;;  %v5398_v12 = vadd.f32 %v5357_v37, %v10365_v19  ;;  %8485 = vmatmul.mubr.msk.bf16.gmra.mrb[28].mxu1 %vm2240_vm5, %v5443_v50  ;;  %v8459_v40 = vpop.f32.mrb[223].mxu0 }
 0xc54   : > { %8488 = vmatprep.mubr.msk.bf16.mxu1 %vm8998_vm1, %v8997_v54 }
 0xc55   : > { %v5419_v36 = vadd.f32 %v10394_v22, %v5398_v12  ;;  %v5432_v52 = vmax.f32 %v5418_v62, 0.0 }
 0xc57   : > { %v5433_v20 = vmax.f32 %v5419_v36, 0.0 }
 0xc58   : > { %v5362_v23 = vpop.f32.mrb[224].mxu0 }
 0xc59   : > { %v5444_v61 = vpack.c.bf16 %v5433_v20, %v5432_v52  ;;  %v5399_v48 = vadd.f32 %v5362_v23, %v10369_v26  ;;  %v8462_v39 = vpop.f32.mrb[225].mxu0 }
 0xc5a   : > { %v5365_v31 = vpop.f32.mrb[226].mxu0 }
 0xc5b   : > { %v5420_v41 = vadd.f32 %v10394_v22, %v5399_v48  ;;  %v5400_v19 = vadd.f32 %v5365_v31, %v10371_v49  ;;  %8489 = vmatmul.mubr.msk.bf16.gmra.mrb[32].mxu1 %vm2240_vm5, %v5444_v61  ;;  %v8463_v16 = vpop.f32.mrb[227].mxu0 }
 0xc5c   : > { %8492 = vmatprep.mubr.msk.bf16.mxu1 %vm8998_vm1, %v8997_v54 }
 0xc5d   : > { %v5421_v21 = vadd.f32 %v10394_v22, %v5400_v19  ;;  %v5434_v60 = vmax.f32 %v5420_v41, 0.0 }
 0xc5f   : > { %v5435_v34 = vmax.f32 %v5421_v21, 0.0 }
 0xc60   : > { %v5370_v53 = vpop.f32.mrb[228].mxu0 }
 0xc61   : > { %v5445_v28 = vpack.c.bf16 %v5435_v34, %v5434_v60  ;;  %v5401_v26 = vadd.f32 %v5370_v53, %v10375_v24  ;;  %v8466_v29 = vpop.f32.mrb[229].mxu0  ;;  %v8956_v34 = vld [vmem:[%s10689_s17 + $0x40] sm:$0xff]  }
 0xc62   : > { %v5373_v55 = vpop.f32.mrb[230].mxu0  ;;  %8522 = vmatprep.mubr.msk.bf16.mxu0 %vm1903_vm3, %v8956_v34 }
 0xc63   : > { %v5422_v56 = vadd.f32 %v10394_v22, %v5401_v26  ;;  %v5402_v49 = vadd.f32 %v5373_v55, %v10377_v46  ;;  %8493 = vmatmul.mubr.msk.bf16.gmra.mrb[36].mxu1 %vm2240_vm5, %v5445_v28  ;;  %v8467_v33 = vpop.f32.mrb[231].mxu0 }
 0xc64   : > { %8496 = vmatprep.mubr.msk.bf16.mxu1 %vm8998_vm1, %v8997_v54 }
 0xc65   : > { %v5423_v18 = vadd.f32 %v10394_v22, %v5402_v49  ;;  %v5436_v58 = vmax.f32 %v5422_v56, 0.0 }
 0xc67   : > { %v5437_v3 = vmax.f32 %v5423_v18, 0.0 }
 0xc68   : > { %v5378_v2 = vpop.f32.mrb[232].mxu0 }
 0xc69   : > { %v5446_v15 = vpack.c.bf16 %v5437_v3, %v5436_v58  ;;  %v5403_v24 = vadd.f32 %v5378_v2, %v10381_v0  ;;  %v8470_v32 = vpop.f32.mrb[233].mxu0 }
 0xc6a   : > { %v5381_v35 = vpop.f32.mrb[234].mxu0  ;;  %v8957_v32 = vld [vmem:[%s10689_s17 + $0x48] sm:$0xff]  }
 0xc6b   : > { %v5424_v4 = vadd.f32 %v10394_v22, %v5403_v24  ;;  %v5404_v46 = vadd.f32 %v5381_v35, %v10383_v47  ;;  %8497 = vmatmul.mubr.msk.bf16.gmra.mrb[40].mxu1 %vm2240_vm5, %v5446_v15  ;;  %v8471_v57 = vpop.f32.mrb[235].mxu0  ;;  %v8958_v35 = vld [vmem:[%s10689_s17 + $0x50] sm:$0xff]  }
 0xc6c   : > { %8500 = vmatprep.mubr.msk.bf16.mxu1 %vm8998_vm1, %v8997_v54  ;;  %v8961_v57 = vld [vmem:[%s10689_s17 + $0x68] sm:$0xff]  }
 0xc6d   : > { %v5425_v59 = vadd.f32 %v10394_v22, %v5404_v46  ;;  %v5438_v6 = vmax.f32 %v5424_v4, 0.0  ;;  %v8959_v4 = vld [vmem:[%s10689_s17 + $0x58] sm:$0xff]   ;;  %v8960_v46 = vld [vmem:[%s10689_s17 + $0x60] sm:$0xff]  }
 0xc6f   : > { %v5439_v8 = vmax.f32 %v5425_v59, 0.0  ;;  %v8962_v59 = vld [vmem:[%s10689_s17 + $0x70] sm:$0xff]  }
 0xc70   : > { %v5386_v63 = vpop.f32.mrb[236].mxu0 }
 0xc71   : > { %v5447_v27 = vpack.c.bf16 %v5439_v8, %v5438_v6  ;;  %v5405_v0 = vadd.f32 %v5386_v63, %v10387_v1  ;;  %v8474_v9 = vpop.f32.mrb[237].mxu0  ;;  %v8963_v6 = vld [vmem:[%s10689_s17 + $0x78] sm:$0xff]   ;;  %v8964_v8 = vld [vmem:[%s10689_s17] sm:$0xff]  }
 0xc72   : > { %v5389_v7 = vpop.f32.mrb[238].mxu0 }
 0xc73   : > { %v5426_v14 = vadd.f32 %v10394_v22, %v5405_v0  ;;  %v5406_v47 = vadd.f32 %v5389_v7, %v10389_v25  ;;  %8501 = vmatmul.mubr.msk.bf16.gmra.mrb[44].mxu1 %vm2240_vm5, %v5447_v27  ;;  %v8475_v10 = vpop.f32.mrb[239].mxu0  ;;  %v8965_v27 = vld [vmem:[%s10689_s17 + $0x8] sm:$0xff]   ;;  %v8966_v0 = vld [vmem:[%s10689_s17 + $0x10] sm:$0xff]   ;;  %v8967_v7 = vld [vmem:[%s10689_s17 + $0x18] sm:$0xff]  }
 0xc74   : > { %8504 = vmatprep.mubr.msk.bf16.mxu1 %vm8998_vm1, %v8997_v54 }
 0xc75   : > { %v5427_v38 = vadd.f32 %v10394_v22, %v5406_v47  ;;  %v5440_v11 = vmax.f32 %v5426_v14, 0.0  ;;  %v8968_v47 = vld [vmem:[%s10689_s17 + $0x20] sm:$0xff]  }
 0xc77   : > { %v5441_v42 = vmax.f32 %v5427_v38, 0.0  ;;  %v8969_v38 = vld [vmem:[%s10689_s17 + $0x28] sm:$0xff]  }
 0xc79   : > { %v5448_v45 = vpack.c.bf16 %v5441_v42, %v5440_v11  ;;  %v8970_v42 = vld [vmem:[%s10689_s17 + $0x30] sm:$0xff]  }
 0xc7b   : > { %8505 = vmatmul.mubr.msk.bf16.gmra.mrb[48].mxu1 %vm2240_vm5, %v5448_v45 }
 0xc7c   : > { %8644 = vmatprep.mubr.msk.bf16.mxu1 %vm8998_vm1, %v8997_v54 }
 0xd1e   : > { %v5520_v1 = vpop.f32.mrb[24].mxu1 }
 0xd1f   : > { %v8482_v5 = vpop.f32.mrb[25].mxu1 }
 0xd20   : > { %v5523_v30 = vpop.f32.mrb[26].mxu1 }
 0xd21   : > { %v10441_v25 = vpack.c.bf16 %v5523_v30, %v5520_v1  ;;  %v8483_v17 = vpop.f32.mrb[27].mxu1  ;;  %v8971_v1 = vld [vmem:[%s10689_s17 + $0x38] sm:$0xff]   ;;  %v8972_v30 = vld [vmem:[%s10689_s17 + $0x80] sm:$0xff]  }
 0xd22   : > { %v8973_v17 = vld [vmem:[%s10689_s17 + $0x88] sm:$0xff]  }
 0xd23   : > { %5662 = vrot.lane.b32.xlu0 %v10441_v25, %s9003_s26 }
 0xd26   : > { %v5528_v44 = vpop.f32.mrb[28].mxu1 }
 0xd27   : > { %v8486_v22 = vpop.f32.mrb[29].mxu1 }
 0xd28   : > { %v5531_v51 = vpop.f32.mrb[30].mxu1 }
 0xd29   : > { %v10445_v50 = vpack.c.bf16 %v5531_v51, %v5528_v44  ;;  %v8487_v43 = vpop.f32.mrb[31].mxu1  ;;  %v8974_v44 = vld [vmem:[%s10689_s17 + $0x90] sm:$0xff]   ;;  %v8975_v51 = vld [vmem:[%s10689_s17 + $0x98] sm:$0xff]  }
 0xd2a   : > { %v8976_v43 = vld [vmem:[%s10689_s17 + $0xa0] sm:$0xff]  }
 0xd2b   : > { %5664 = vrot.lane.b32.xlu1 %v10445_v50, %s9003_s26 }
 0xd2e   : > { %v5536_v13 = vpop.f32.mrb[32].mxu1 }
 0xd2f   : > { %v8490_v37 = vpop.f32.mrb[33].mxu1 }
 0xd30   : > { %v5539_v62 = vpop.f32.mrb[34].mxu1  ;;  %v8977_v37 = vld [vmem:[%s10689_s17 + $0xa8] sm:$0xff]  }
 0xd31   : > { %v10449_v12 = vpack.c.bf16 %v5539_v62, %v5536_v13  ;;  %v8491_v40 = vpop.f32.mrb[35].mxu1 }
 0xd33   : > { %5666 = vrot.lane.b32.xlu0 %v10449_v12, %s9003_s26 }
 0xd36   : > { %v5544_v36 = vpop.f32.mrb[36].mxu1 }
 0xd37   : > { %v8494_v52 = vpop.f32.mrb[37].mxu1 }
 0xd38   : > { %v5547_v20 = vpop.f32.mrb[38].mxu1 }
 0xd39   : > { %v10453_v23 = vpack.c.bf16 %v5547_v20, %v5544_v36  ;;  %v8495_v61 = vpop.f32.mrb[39].mxu1  ;;  %v8979_v36 = vld [vmem:[%s10689_s17 + $0xb8] sm:$0xff]   ;;  %v8980_v20 = vld [vmem:[%s10689_s17 + $0xc0] sm:$0xff]  }
 0xd3a   : > { %v8982_v61 = vld [vmem:[%s10689_s17 + $0xd0] sm:$0xff]  }
 0xd3b   : > { %5668 = vrot.lane.b32.xlu1 %v10453_v23, %s9003_s26 }
 0xd3e   : > { %v5552_v48 = vpop.f32.mrb[40].mxu1 }
 0xd3f   : > { %v8498_v39 = vpop.f32.mrb[41].mxu1 }
 0xd40   : > { %v5555_v31 = vpop.f32.mrb[42].mxu1  ;;  %v8984_v39 = vld [vmem:[%s10689_s17 + $0xe0] sm:$0xff]  }
 0xd41   : > { %v10457_v41 = vpack.c.bf16 %v5555_v31, %v5552_v48  ;;  %v8499_v19 = vpop.f32.mrb[43].mxu1  ;;  %v8983_v48 = vld [vmem:[%s10689_s17 + $0xd8] sm:$0xff]   ;;  %v8985_v31 = vld [vmem:[%s10689_s17 + $0xe8] sm:$0xff]  }
 0xd42   : > { %v8987_v19 = vld [vmem:[%s10689_s17 + $0xf8] sm:$0xff]  }
 0xd43   : > { %5670 = vrot.lane.b32.xlu0 %v10457_v41, %s9003_s26 }
 0xd46   : > { %v5560_v16 = vpop.f32.mrb[44].mxu1 }
 0xd47   : > { %v8502_v21 = vpop.f32.mrb[45].mxu1 }
 0xd48   : > { %v5563_v60 = vpop.f32.mrb[46].mxu1 }
 0xd49   : > { %v10464_v53 = vpack.c.bf16 %v5563_v60, %v5560_v16  ;;  %v8503_v28 = vpop.f32.mrb[47].mxu1  ;;  %v7314_v16 = vld [vmem:[#allocation2] ss:$0 sm:$0xff] }
 0xd4b   : > { %5672 = vrot.lane.b32.xlu1 %v10464_v53, %s9003_s26 }
 0xd4e   : > { %v5568_v26 = vpop.f32.mrb[48].mxu1 }
 0xd4f   : > { %6022 = vrot.lane.b32.xlu1 %v10441_v25, %s9004_s0  ;;  %v8506_v29 = vpop.f32.mrb[49].mxu1 }
 0xd50   : > { %v5571_v55 = vpop.f32.mrb[50].mxu1 }
 0xd51   : > { %v10470_v56 = vpack.c.bf16 %v5571_v55, %v5568_v26  ;;  %v8507_v49 = vpop.f32.mrb[51].mxu1 }
 0xd53   : > { %6026 = vrot.lane.b32.xlu1 %v10449_v12, %s9004_s0  ;;  %5674 = vrot.lane.b32.xlu0 %v10470_v56, %s9003_s26 }
 0xd57   : > { %6030 = vrot.lane.b32.xlu1 %v10457_v41, %s9004_s0  ;;  %6024 = vrot.lane.b32.xlu0 %v10445_v50, %s9004_s0 }
 0xd5b   : > { %6034 = vrot.lane.b32.xlu1 %v10470_v56, %s9004_s0  ;;  %6028 = vrot.lane.b32.xlu0 %v10453_v23, %s9004_s0 }
 0xd5f   : > { %6239 = vrot.lane.b32.xlu1 %v10445_v50, %s9005_s23  ;;  %6032 = vrot.lane.b32.xlu0 %v10464_v53, %s9004_s0 }
 0xd63   : > { %6243 = vrot.lane.b32.xlu1 %v10453_v23, %s9005_s23  ;;  %6237 = vrot.lane.b32.xlu0 %v10441_v25, %s9005_s23 }
 0xd67   : > { %6247 = vrot.lane.b32.xlu1 %v10464_v53, %s9005_s23  ;;  %6241 = vrot.lane.b32.xlu0 %v10449_v12, %s9005_s23 }
 0xd6b   : > { %6245 = vrot.lane.b32.xlu0 %v10457_v41, %s9005_s23 }
 0xd6f   : > { %6249 = vrot.lane.b32.xlu0 %v10470_v56, %s9005_s23 }
 0xd95   : > { %v5663_v33 = vpop.permute.xlu0 %5662 }
 0xd96   : > { %8508 = vmatprep.subr.bf16.mxu0 %v5663_v33 }
 0xd97   : > { %8509 = vmatpush3.bf16.msra.mxu0 %v5663_v33 }
 0xd9d   : > { %v5665_v18 = vpop.permute.xlu1 %5664 }
 0xd9e   : > { %8510 = vmatprep.subr.bf16.mxu0 %v5665_v18 }
 0xd9f   : > { %8511 = vmatpush3.bf16.msra.mxu0 %v5665_v18 }
 0xda5   : > { %v5667_v58 = vpop.permute.xlu0 %5666 }
 0xda6   : > { %8512 = vmatprep.subr.bf16.mxu0 %v5667_v58 }
 0xda7   : > { %8513 = vmatpush3.bf16.msra.mxu0 %v5667_v58 }
 0xdad   : > { %v5669_v3 = vpop.permute.xlu1 %5668 }
 0xdae   : > { %8514 = vmatprep.subr.bf16.mxu0 %v5669_v3 }
 0xdaf   : > { %8515 = vmatpush3.bf16.msra.mxu0 %v5669_v3 }
 0xdb5   : > { %v5671_v2 = vpop.permute.xlu0 %5670 }
 0xdb6   : > { %8516 = vmatprep.subr.bf16.mxu0 %v5671_v2 }
 0xdb7   : > { %8517 = vmatpush3.bf16.msra.mxu0 %v5671_v2 }
 0xdbd   : > { %v5673_v15 = vpop.permute.xlu1 %5672 }
 0xdbe   : > { %8518 = vmatprep.subr.bf16.mxu0 %v5673_v15 }
 0xdbf   : > { %8519 = vmatpush3.bf16.msra.mxu0 %v5673_v15 }
 0xdc1   : > { %v6023_v63 = vpop.permute.xlu1 %6022 }
 0xdc5   : > { %v5675_v24 = vpop.permute.xlu0 %5674  ;;  %v6027_v14 = vpop.permute.xlu1 %6026 }
 0xdc6   : > { %8520 = vmatprep.subr.bf16.mxu0 %v5675_v24 }
 0xdc7   : > { %8521 = vmatpush3.bf16.msra.mxu0 %v5675_v24 }
 0xdc8   : > { %8538 = vmatprep.subr.bf16.mxu0 %v10441_v25 }
 0xdc9   : > { %v6025_v9 = vpop.permute.xlu0 %6024  ;;  %v6031_v11 = vpop.permute.xlu1 %6030 }
 0xdca   : > { %8523 = vmatmul.mubr.msk.bf16.vlgmr.msra.gmra.mrb[240].mxu0 %vm1903_vm3, %v8957_v32 }
 0xdcb   : > { %8539 = vmatpush3.bf16.msra.mxu0 %v10441_v25  ;;  %8526 = vmatprep.mubr.msk.bf16.mxu0 %vm1903_vm3, %v8958_v35 }
 0xdcc   : > { %8540 = vmatprep.subr.bf16.mxu0 %v10445_v50 }
 0xdcd   : > { %v6029_v10 = vpop.permute.xlu0 %6028  ;;  %v6035_v5 = vpop.permute.xlu1 %6034 }
 0xdcf   : > { %8541 = vmatpush3.bf16.msra.mxu0 %v10445_v50 }
 0xdd0   : > { %8542 = vmatprep.subr.bf16.mxu0 %v10449_v12 }
 0xdd1   : > { %v6033_v45 = vpop.permute.xlu0 %6032  ;;  %v6240_v22 = vpop.permute.xlu1 %6239 }
 0xdd2   : > { %8527 = vmatmul.mubr.msk.bf16.gmra.mrb[244].mxu0 %vm1903_vm3, %v8959_v4 }
 0xdd3   : > { %8543 = vmatpush3.bf16.msra.mxu0 %v10449_v12  ;;  %8530 = vmatprep.mubr.msk.bf16.mxu0 %vm1903_vm3, %v8960_v46  ;;  %v8978_v12 = vld [vmem:[%s10689_s17 + $0xb0] sm:$0xff]  }
 0xdd4   : > { %8544 = vmatprep.subr.bf16.mxu0 %v10453_v23 }
 0xdd5   : > { %v6238_v25 = vpop.permute.xlu0 %6237  ;;  %v6244_v13 = vpop.permute.xlu1 %6243 }
 0xdd7   : > { %8545 = vmatpush3.bf16.msra.mxu0 %v10453_v23  ;;  %v8981_v23 = vld [vmem:[%s10689_s17 + $0xc8] sm:$0xff]  }
 0xdd8   : > { %8546 = vmatprep.subr.bf16.mxu0 %v10457_v41 }
 0xdd9   : > { %v6242_v50 = vpop.permute.xlu0 %6241  ;;  %v6248_v40 = vpop.permute.xlu1 %6247 }
 0xdda   : > { %8531 = vmatmul.mubr.msk.bf16.gmra.mrb[248].mxu0 %vm1903_vm3, %v8961_v57 }
 0xddb   : > { %8547 = vmatpush3.bf16.msra.mxu0 %v10457_v41  ;;  %8534 = vmatprep.mubr.msk.bf16.mxu0 %vm1903_vm3, %v8962_v59  ;;  %v8986_v41 = vld [vmem:[%s10689_s17 + $0xf0] sm:$0xff]  }
 0xddc   : > { %8548 = vmatprep.subr.bf16.mxu0 %v10464_v53 }
 0xddd   : > { %v6246_v62 = vpop.permute.xlu0 %6245 }
 0xddf   : > { %8549 = vmatpush3.bf16.msra.mxu0 %v10464_v53 }
 0xde0   : > { %8550 = vmatprep.subr.bf16.mxu0 %v10470_v56 }
 0xde1   : > { %v6250_v52 = vpop.permute.xlu0 %6249 }
 0xde2   : > { %8535 = vmatmul.mubr.msk.bf16.gmra.mrb[252].mxu0 %vm1903_vm3, %v8963_v6 }
 0xde3   : > { %8551 = vmatpush3.bf16.msra.mxu0 %v10470_v56  ;;  %8552 = vmatprep.mubr.msk.bf16.mxu0 %vm1903_vm3, %v8964_v8 }
 0xde4   : > { %8568 = vmatprep.subr.bf16.mxu0 %v6023_v63 }
 0xdea   : > { %8553 = vmatmul.mubr.msk.bf16.vlgmr.msra.gmra.mrb[240].mxu0 %vm1903_vm3, %v8965_v27 }
 0xdeb   : > { %8569 = vmatpush3.bf16.msra.mxu0 %v6023_v63  ;;  %8556 = vmatprep.mubr.msk.bf16.mxu0 %vm1903_vm3, %v8966_v0 }
 0xdec   : > { %8570 = vmatprep.subr.bf16.mxu0 %v6025_v9 }
 0xdef   : > { %8571 = vmatpush3.bf16.msra.mxu0 %v6025_v9 }
 0xdf0   : > { %8572 = vmatprep.subr.bf16.mxu0 %v6027_v14 }
 0xdf2   : > { %8557 = vmatmul.mubr.msk.bf16.gmra.mrb[244].mxu0 %vm1903_vm3, %v8967_v7 }
 0xdf3   : > { %8573 = vmatpush3.bf16.msra.mxu0 %v6027_v14  ;;  %8560 = vmatprep.mubr.msk.bf16.mxu0 %vm1903_vm3, %v8968_v47 }
 0xdf4   : > { %8574 = vmatprep.subr.bf16.mxu0 %v6029_v10 }
 0xdf7   : > { %8575 = vmatpush3.bf16.msra.mxu0 %v6029_v10  ;;  %v7321_v10 = vld [vmem:[%s10692_s20] sm:$0xff]  }
 0xdf8   : > { %8576 = vmatprep.subr.bf16.mxu0 %v6031_v11 }
 0xdfa   : > { %8561 = vmatmul.mubr.msk.bf16.gmra.mrb[248].mxu0 %vm1903_vm3, %v8969_v38  ;;  %v7322_v38 = vunpack.c.l.bf16 %v7321_v10 }
 0xdfb   : > { %8577 = vmatpush3.bf16.msra.mxu0 %v6031_v11  ;;  %8564 = vmatprep.mubr.msk.bf16.mxu0 %vm1903_vm3, %v8970_v42  ;;  %v7323_v11 = vunpack.c.h.bf16 %v7321_v10 }
 0xdfc   : > { %8578 = vmatprep.subr.bf16.mxu0 %v6033_v45 }
 0xdff   : > { %8579 = vmatpush3.bf16.msra.mxu0 %v6033_v45 }
 0xe00   : > { %8580 = vmatprep.subr.bf16.mxu0 %v6035_v5 }
 0xe02   : > { %8565 = vmatmul.mubr.msk.bf16.gmra.mrb[252].mxu0 %vm1903_vm3, %v8971_v1  ;;  %v7352_v1 = vld [vmem:[%s10692_s20 + $0x8] sm:$0xff]  }
 0xe03   : > { %8581 = vmatpush3.bf16.msra.mxu0 %v6035_v5  ;;  %8582 = vmatprep.mubr.msk.bf16.mxu0 %vm1903_vm3, %v8972_v30 }
 0xe04   : > { %8598 = vmatprep.subr.bf16.mxu0 %v6238_v25 }
 0xe0a   : > { %8583 = vmatmul.mubr.msk.bf16.vlgmr.msra.gmra.mrb[240].mxu0 %vm1903_vm3, %v8973_v17 }
 0xe0b   : > { %8599 = vmatpush3.bf16.msra.mxu0 %v6238_v25  ;;  %8586 = vmatprep.mubr.msk.bf16.mxu0 %vm1903_vm3, %v8974_v44  ;;  %v7326_v44 = vunpack.c.l.bf16 %v7352_v1 }
 0xe0c   : > { %8600 = vmatprep.subr.bf16.mxu0 %v6240_v22 }
 0xe0f   : > { %8601 = vmatpush3.bf16.msra.mxu0 %v6240_v22  ;;  %v7327_v22 = vunpack.c.h.bf16 %v7352_v1 }
 0xe10   : > { %8602 = vmatprep.subr.bf16.mxu0 %v6242_v50 }
 0xe12   : > { %8587 = vmatmul.mubr.msk.bf16.gmra.mrb[244].mxu0 %vm1903_vm3, %v8975_v51  ;;  %v7353_v51 = vld [vmem:[%s10692_s20 + $0x10] sm:$0xff]  }
 0xe13   : > { %8603 = vmatpush3.bf16.msra.mxu0 %v6242_v50  ;;  %8590 = vmatprep.mubr.msk.bf16.mxu0 %vm1903_vm3, %v8976_v43 }
 0xe14   : > { %8604 = vmatprep.subr.bf16.mxu0 %v6244_v13 }
 0xe17   : > { %8605 = vmatpush3.bf16.msra.mxu0 %v6244_v13 }
 0xe18   : > { %8606 = vmatprep.subr.bf16.mxu0 %v6246_v62 }
 0xe1a   : > { %8591 = vmatmul.mubr.msk.bf16.gmra.mrb[248].mxu0 %vm1903_vm3, %v8977_v37 }
 0xe1b   : > { %8607 = vmatpush3.bf16.msra.mxu0 %v6246_v62  ;;  %8594 = vmatprep.mubr.msk.bf16.mxu0 %vm1903_vm3, %v8978_v12  ;;  %v7330_v62 = vunpack.c.l.bf16 %v7353_v51  ;;  %v7331_v12 = vunpack.c.h.bf16 %v7353_v51 }
 0xe1c   : > { %8608 = vmatprep.subr.bf16.mxu0 %v6248_v40 }
 0xe1f   : > { %8609 = vmatpush3.bf16.msra.mxu0 %v6248_v40  ;;  %v7354_v40 = vld [vmem:[%s10692_s20 + $0x18] sm:$0xff]  }
 0xe20   : > { %8610 = vmatprep.subr.bf16.mxu0 %v6250_v52 }
 0xe22   : > { %8595 = vmatmul.mubr.msk.bf16.gmra.mrb[252].mxu0 %vm1903_vm3, %v8979_v36 }
 0xe23   : > { %8611 = vmatpush3.bf16.msra.mxu0 %v6250_v52  ;;  %8612 = vmatprep.mubr.msk.bf16.mxu0 %vm1903_vm3, %v8980_v20 }
 0xe2a   : > { %8613 = vmatmul.mubr.msk.bf16.vlgmr.msra.gmra.mrb[240].mxu0 %vm1903_vm3, %v8981_v23 }
 0xe2b   : > { %8616 = vmatprep.mubr.msk.bf16.mxu0 %vm1903_vm3, %v8982_v61  ;;  %v7334_v61 = vunpack.c.l.bf16 %v7354_v40 }
 0xe32   : > { %8617 = vmatmul.mubr.msk.bf16.gmra.mrb[244].mxu0 %vm1903_vm3, %v8983_v48 }
 0xe33   : > { %8620 = vmatprep.mubr.msk.bf16.mxu0 %vm1903_vm3, %v8984_v39  ;;  %v7335_v39 = vunpack.c.h.bf16 %v7354_v40 }
 0xe3a   : > { %8621 = vmatmul.mubr.msk.bf16.gmra.mrb[248].mxu0 %vm1903_vm3, %v8985_v31  ;;  %v7355_v31 = vld [vmem:[%s10692_s20 + $0x20] sm:$0xff]  }
 0xe3b   : > { %8624 = vmatprep.mubr.msk.bf16.mxu0 %vm1903_vm3, %v8986_v41 }
 0xe42   : > { %8625 = vmatmul.mubr.msk.bf16.gmra.mrb[252].mxu0 %vm1903_vm3, %v8987_v19 }
 0xefd   : > { %v8614_v21 = vpop.f32.mrb[240].mxu0 }
 0xefe   : > { %v6316_v60 = vpop.f32.mrb[241].mxu0  ;;  %v6404_v29 = vadd.f32 %v8614_v21, %v7314_v16 }
 0xeff   : > { %v6402_v34 = vadd.f32 %v7314_v16, %v6316_v60  ;;  %v8615_v53 = vpop.f32.mrb[242].mxu0 }
 0xf00   : > { %v6319_v28 = vpop.f32.mrb[243].mxu0  ;;  %v6405_v49 = vadd.f32 %v8615_v53, %v7314_v16  ;;  %v7339_v53 = vunpack.c.h.bf16 %v7355_v31 }
 0xf01   : > { %v6403_v26 = vadd.f32 %v7314_v16, %v6319_v28  ;;  %6452 = vperm.xlu1 %8775, %v6402_v34   ;;  %v7338_v34 = vunpack.c.l.bf16 %v7355_v31  ;;  %v7356_v28 = vld [vmem:[%s10692_s20 + $0x28] sm:$0xff]  }
 0xf03   : > { %6457 = vperm.xlu0 %8776, %v6403_v26  }
 0xf05   : > { %6462 = vperm.xlu1 %8775, %v6404_v29   ;;  %v8618_v55 = vpop.f32.mrb[244].mxu0 }
 0xf06   : > { %v6332_v56 = vpop.f32.mrb[245].mxu0  ;;  %v6408_v3 = vadd.f32 %v8618_v55, %v7314_v16 }
 0xf07   : > { %v6406_v33 = vadd.f32 %v7314_v16, %v6332_v56  ;;  %v8619_v18 = vpop.f32.mrb[246].mxu0 }
 0xf08   : > { %v6335_v58 = vpop.f32.mrb[247].mxu0  ;;  %v6409_v32 = vadd.f32 %v8619_v18, %v7314_v16  ;;  %v7343_v18 = vunpack.c.h.bf16 %v7356_v28 }
 0xf09   : > { %6467 = vperm.xlu1 %8775, %v6405_v49   ;;  %6472 = vperm.xlu0 %8776, %v6406_v33   ;;  %v6407_v2 = vadd.f32 %v7314_v16, %v6335_v58  ;;  %v7342_v49 = vunpack.c.l.bf16 %v7356_v28  ;;  %v7357_v58 = vld [vmem:[%s10692_s20 + $0x30] sm:$0xff]  }
 0xf0d   : > { %6482 = vperm.xlu0 %8776, %v6408_v3   ;;  %6477 = vperm.xlu1 %8775, %v6407_v2   ;;  %v8622_v15 = vpop.f32.mrb[248].mxu0 }
 0xf0e   : > { %v6348_v24 = vpop.f32.mrb[249].mxu0  ;;  %v6412_v57 = vadd.f32 %v8622_v15, %v7314_v16 }
 0xf0f   : > { %v6410_v35 = vadd.f32 %v7314_v16, %v6348_v24  ;;  %v8623_v4 = vpop.f32.mrb[250].mxu0 }
 0xf10   : > { %v6351_v46 = vpop.f32.mrb[251].mxu0  ;;  %v6413_v63 = vadd.f32 %v8623_v4, %v7314_v16  ;;  %v7347_v4 = vunpack.c.h.bf16 %v7357_v58 }
 0xf11   : > { %6487 = vperm.xlu1 %8775, %v6409_v32   ;;  %6492 = vperm.xlu0 %8776, %v6410_v35   ;;  %v6411_v59 = vadd.f32 %v7314_v16, %v6351_v46  ;;  %v7346_v35 = vunpack.c.l.bf16 %v7357_v58  ;;  %v7358_v46 = vld [vmem:[%s10692_s20 + $0x38] sm:$0xff]  }
 0xf15   : > { %6502 = vperm.xlu0 %8776, %v6412_v57   ;;  %6497 = vperm.xlu1 %8775, %v6411_v59   ;;  %v8626_v6 = vpop.f32.mrb[252].mxu0 }
 0xf16   : > { %v6364_v8 = vpop.f32.mrb[253].mxu0  ;;  %v6416_v7 = vadd.f32 %v8626_v6, %v7314_v16 }
 0xf17   : > { %v6414_v27 = vadd.f32 %v7314_v16, %v6364_v8  ;;  %v8627_v0 = vpop.f32.mrb[254].mxu0  ;;  %v7350_v8 = vunpack.c.l.bf16 %v7358_v46 }
 0xf18   : > { %v6367_v9 = vpop.f32.mrb[255].mxu0  ;;  %v6417_v47 = vadd.f32 %v8627_v0, %v7314_v16 }
 0xf19   : > { %6507 = vperm.xlu1 %8775, %v6413_v63   ;;  %6512 = vperm.xlu0 %8776, %v6414_v27   ;;  %v6415_v14 = vadd.f32 %v7314_v16, %v6367_v9  ;;  %v7351_v27 = vunpack.c.h.bf16 %v7358_v46 }
 0xf1d   : > { %6522 = vperm.xlu0 %8776, %v6416_v7   ;;  %6517 = vperm.xlu1 %8775, %v6415_v14  }
 0xf21   : > { %6527 = vperm.xlu1 %8775, %v6417_v47  }
 0xf80   : > { %v6453_v42 = vpop.permute.xlu1 %6452 }
 0xf81   : > { %v6530_v5 = vmul.f32 %v7322_v38, %v6453_v42  ;;  %v8988_v38 = vld [vmem:[%s10691_s19] sm:$0xff]  }
 0xf82   : > { %v6458_v45 = vpop.permute.xlu0 %6457 }
 0xf83   : > { %v6531_v30 = vmul.f32 %v7323_v11, %v6458_v45 }
 0xf84   : > { %v6463_v25 = vpop.permute.xlu1 %6462 }
 0xf85   : > { %v6546_v17 = vpack.c.bf16 %v6531_v30, %v6530_v5  ;;  %v6532_v13 = vmul.f32 %v7326_v44, %v6463_v25 }
 0xf87   : > { %8629 = vmatpush3.bf16.msra.mxu1 %v6546_v17 }
 0xf88   : > { %v6468_v50 = vpop.permute.xlu1 %6467  ;;  %v6473_v43 = vpop.permute.xlu0 %6472  ;;  %8630 = vmatprep.subr.bf16.mxu1 %v8997_v54 }
 0xf89   : > { %v6533_v37 = vmul.f32 %v7327_v22, %v6468_v50  ;;  %v6534_v23 = vmul.f32 %v7330_v62, %v6473_v43 }
 0xf8b   : > { %v6547_v36 = vpack.c.bf16 %v6533_v37, %v6532_v13  ;;  %v6617_v13 = vld [vmem:[%s10693_s21] sm:$0xff] }
 0xf8c   : > { %v6483_v52 = vpop.permute.xlu0 %6482  ;;  %v6478_v20 = vpop.permute.xlu1 %6477 }
 0xf8d   : > { %v6535_v48 = vmul.f32 %v7331_v12, %v6478_v20  ;;  %8631 = vmatpush3.bf16.msra.mxu1 %v6547_v36  ;;  %v6536_v21 = vmul.f32 %v7334_v61, %v6483_v52 }
 0xf8e   : > { %8632 = vmatprep.subr.bf16.mxu1 %v8997_v54 }
 0xf8f   : > { %v6548_v41 = vpack.c.bf16 %v6535_v48, %v6534_v23 }
 0xf90   : > { %v6488_v19 = vpop.permute.xlu1 %6487  ;;  %v6493_v16 = vpop.permute.xlu0 %6492 }
 0xf91   : > { %v6537_v60 = vmul.f32 %v7335_v39, %v6488_v19  ;;  %8633 = vmatpush3.bf16.msra.mxu1 %v6548_v41  ;;  %v6538_v56 = vmul.f32 %v7338_v34, %v6493_v16 }
 0xf92   : > { %8634 = vmatprep.subr.bf16.mxu1 %v8997_v54 }
 0xf93   : > { %v6549_v26 = vpack.c.bf16 %v6537_v60, %v6536_v21 }
 0xf94   : > { %v6503_v29 = vpop.permute.xlu0 %6502  ;;  %v6498_v55 = vpop.permute.xlu1 %6497 }
 0xf95   : > { %v6539_v33 = vmul.f32 %v7339_v53, %v6498_v55  ;;  %8635 = vmatpush3.bf16.msra.mxu1 %v6549_v26  ;;  %v6540_v24 = vmul.f32 %v7342_v49, %v6503_v29 }
 0xf96   : > { %8636 = vmatprep.subr.bf16.mxu1 %v8997_v54 }
 0xf97   : > { %v6550_v3 = vpack.c.bf16 %v6539_v33, %v6538_v56 }
 0xf98   : > { %v6508_v2 = vpop.permute.xlu1 %6507  ;;  %v6513_v15 = vpop.permute.xlu0 %6512 }
 0xf99   : > { %v6541_v32 = vmul.f32 %v7343_v18, %v6508_v2  ;;  %8637 = vmatpush3.bf16.msra.mxu1 %v6550_v3  ;;  %v6542_v6 = vmul.f32 %v7346_v35, %v6513_v15 }
 0xf9a   : > { %8638 = vmatprep.subr.bf16.mxu1 %v8997_v54 }
 0xf9b   : > { %v6551_v57 = vpack.c.bf16 %v6541_v32, %v6540_v24 }
 0xf9c   : > { %v6518_v59 = vpop.permute.xlu1 %6517  ;;  %v6523_v0 = vpop.permute.xlu0 %6522 }
 0xf9d   : > { %v6543_v63 = vmul.f32 %v7347_v4, %v6518_v59  ;;  %8639 = vmatpush3.bf16.msra.mxu1 %v6551_v57  ;;  %v6544_v14 = vmul.f32 %v7350_v8, %v6523_v0 }
 0xf9e   : > { %8640 = vmatprep.subr.bf16.mxu1 %v8997_v54 }
 0xf9f   : > { %v6552_v9 = vpack.c.bf16 %v6543_v63, %v6542_v6 }
 0xfa0   : > { %v6528_v7 = vpop.permute.xlu1 %6527 }
 0xfa1   : > { %v6545_v47 = vmul.f32 %v7351_v27, %v6528_v7  ;;  %8641 = vmatpush3.bf16.msra.mxu1 %v6552_v9 }
 0xfa2   : > { %8642 = vmatprep.subr.bf16.mxu1 %v8997_v54 }
 0xfa3   : > { %v6553_v10 = vpack.c.bf16 %v6545_v47, %v6544_v14 }
 0xfa5   : > { %8643 = vmatpush3.bf16.msra.mxu1 %v6553_v10 }
 0xfa6   : > { %8648 = vmatprep.subr.bf16.mxu1 %v8997_v54 }
 0xfa8   : > { %8645 = vmatmul.mubr.bf16.vlgmr.msra.gmra.mrb[52].mxu1 %v8988_v38 }
 0xfa9   : > { %8650 = vmatprep.mubr.msk.bf16.mxu1 %vm8998_vm1, %v8997_v54 }
0x107b   : > { %v6596_v11 = vpop.f32.mrb[52].mxu1 }
0x107c   : > { %v6603_v42 = vsub.f32 0.0, %v6596_v11  ;;  %v8646_v45 = vpop.f32.mrb[53].mxu1 }
0x107d   : > { %v6599_v1 = vpop.f32.mrb[54].mxu1 }
0x107e   : > { %v8777_v5 = vpack.i.bf16 %v6603_v42, %v6599_v1  ;;  %v6616_v30 = vpack.c.bf16 %v6599_v1, %v6596_v11  ;;  %v8647_v25 = vpop.f32.mrb[55].mxu1 }
0x1080   : > { %8778 = vrot.lane.b32.xlu0 %v8777_v5, %s9006_s1  ;;  %6618 = vxpose.xlu1.c.b16.start.end [1/1] (short) (narrow) %v6616_v30, 16 }
0x10e6   : > { %v6626_v54 = vpop.trf.xlu1 }
0x10f2   : > { %v8779_v17 = vpop.permute.xlu0 %8778 }
0x10f3   : > { %v8781_v44 = vunpack.i.h.bf16 %v8779_v17  ;;  %v8780_v22 = vunpack.i.l.bf16 %v8779_v17 }
0x10f5   : > { %v6614_v51 = vsel %vm6612_vm9, %v6599_v1, %v8781_v44  ;;  %v6613_v50 = vsel %vm6612_vm9, %v6596_v11, %v8780_v22 }
0x10f6   : > { %v6615_v43 = vpack.c.bf16 %v6614_v51, %v6613_v50 }
0x10f8   : > { %8649 = vmatpush3.bf16.msra.mxu1 %v6615_v43 }
0x10fb   : > { %8651 = vmatmul.mubr.msk.bf16.vlgmr.msra.gmra.mrb[56].mxu1 %vm6634_vm10, %v6626_v54 }
0x11ce   : > { %v6672_v37 = vpop.f32.mrb[56].mxu1 }
0x11cf   : > { %v6673_v62 = vadd.f32 %v6672_v37, %v6617_v13  ;;  %v8652_v12 = vpop.f32.mrb[57].mxu1 }
0x11d0   : > { %v6675_v40 = vpop.f32.mrb[58].mxu1 }
0x11d1   : > { %6678 = vst.msk [vmem:[%s683_s2] sm:$0xff] %vm6634_vm10, %v6673_v62  ;;  %v8653_v36 = vpop.f32.mrb[59].mxu1 }
0x11d2 PF: > { %s34_s29 = sadd.s32 1, %s8995_s29  }
0x11d3   : > { %p31_p4 = scmp.ge.s32.totalorder %s34_s29, 4  }
0x11d5   :  { %33 = sbr.rel (!%p31_p4) target bundleno = 8 (0x8), region = 156 }

</bundles_post_ra>
